<compile_context>
chip_gen: v7x
topology: tpu7x:2x2x1
jax: 0.10.0
libtpu: 0.0.40
codegen_flags: <defaults>
</compile_context>

<pallas_src>
import functools
import math

import jax
import jax.numpy as jnp
from jax.experimental import pallas as pl
from jax.experimental.pallas import tpu as pltpu

# ----------------------------- small config ---------------------------------
B = 2
C_IN, IMG, PATCH = 3, 16, 8
NUM_PATCHES = (IMG // PATCH) ** 2            # 4 patches
S_V = NUM_PATCHES + 1                        # + class token
D_V, HEADS_V, MLP_V, LAYERS_V = 32, 2, 64, 2     # CLIP vision tower
VOCAB_T, SEQ_T = 64, 8
D_T, HEADS_T, MLP_T, LAYERS_T = 32, 2, 64, 2     # CLIP text tower
D_G, HEADS_G, MLP_G, LAYERS_G = 64, 2, 128, 2    # GPT-2 decoder (== projection dim)
MAX_POS_G, VOCAB_G = 64, 8
INTER, NUM_CLASS = 32, 18
CLS_PAD = 128                                # lane-dense classifier output, sliced in JAX
LN_EPS = 1e-5
NEG = -1e9

VMEM = pl.BlockSpec(memory_space=pltpu.MemorySpace.VMEM)


# ----------------------------- in-kernel helpers ------------------------------
def _layernorm(x, g, b, eps=LN_EPS):
    mean = jnp.mean(x, axis=-1, keepdims=True)
    var = jnp.mean(jnp.square(x - mean), axis=-1, keepdims=True)
    return (x - mean) * jax.lax.rsqrt(var + eps) * g + b


def _quick_gelu(x):                           # CLIP activation: x * sigmoid(1.702 x)
    return x * jax.nn.sigmoid(1.702 * x)


def _gelu_new(x):                             # GPT-2 tanh-approx GELU
    return 0.5 * x * (1.0 + jnp.tanh(math.sqrt(2.0 / math.pi) * (x + 0.044715 * x * x * x)))


def _linear(x, w, b=None):
    y = jnp.dot(x, w, preferred_element_type=jnp.float32)
    return y if b is None else y + b


def _attn_bias(mask_row, seq):
    """Additive causal + padding bias built in-kernel.  mask_row: (1, seq), 1.0 = keep."""
    r = jax.lax.broadcasted_iota(jnp.int32, (seq, seq), 0)
    c = jax.lax.broadcasted_iota(jnp.int32, (seq, seq), 1)
    causal = jnp.where(r >= c, 0.0, NEG)
    return causal + (1.0 - mask_row) * NEG


def _mha_out(h_ln, lp, l, num_heads, bias):
    """Fused QKV matmul + per-head softmax-attention + folded output projection.

    h_ln: (S, D).  Returns (S, D), already multiplied by o_w and with o_b added,
    so no head-merge concat is needed (sum over per-head row-blocks of o_w).
    """
    d = h_ln.shape[-1]
    dh = d // num_heads
    scale = dh ** -0.5
    qkv = _linear(h_ln, lp["qkv_w"][l], lp["qkv_b"][l])       # (S, 3D), single MXU pass
    o_w = lp["o_w"][l]                                        # (D, D)
    acc = None
    for hd in range(num_heads):                               # static unroll, static slices
        q = qkv[:, hd * dh:(hd + 1) * dh]
        k = qkv[:, d + hd * dh:d + (hd + 1) * dh]
        v = qkv[:, 2 * d + hd * dh:2 * d + (hd + 1) * dh]
        s = jax.lax.dot_general(q, k, (((1,), (1,)), ((), ())),
                                preferred_element_type=jnp.float32) * scale
        if bias is not None:
            s = s + bias
        s = s - jnp.max(s, axis=-1, keepdims=True)
        p = jnp.exp(s)
        p = p * pl.reciprocal(jnp.sum(p, axis=-1, keepdims=True), approx=True)
        o_h = jnp.dot(p, v, preferred_element_type=jnp.float32)           # (S, dh)
        contrib = jnp.dot(o_h, o_w[hd * dh:(hd + 1) * dh, :],             # (S, D)
                          preferred_element_type=jnp.float32)
        acc = contrib if acc is None else acc + contrib
    return acc + lp["o_b"][l]


def _encoder_layer(x, lp, l, num_heads, bias, act):
    """Pre-LN transformer layer (shared shape for CLIP encoder layer / GPT-2 block)."""
    h = _layernorm(x, lp["ln1_g"][l], lp["ln1_b"][l])
    x = x + _mha_out(h, lp, l, num_heads, bias)
    h = _layernorm(x, lp["ln2_g"][l], lp["ln2_b"][l])
    h = act(_linear(h, lp["fc1_w"][l], lp["fc1_b"][l]))
    return x + _linear(h, lp["fc2_w"][l], lp["fc2_b"][l])


# ----------------------------- fused tower kernels ----------------------------
def _vision_kernel(bat, p, o_ref):
    # bat["x"]: (S_V, C*P*P+1) augmented patches; row 0 is a one-hot class-token
    # indicator, so one matmul yields [class_emb; patch_embeds].
    h = _linear(bat["x"][...], p["patch_w"][...])             # conv-as-matmul, no bias
    h = h + p["pos_emb"][...]
    h = _layernorm(h, p["pre_ln_g"][...], p["pre_ln_b"][...])
    for l in range(LAYERS_V):
        h = _encoder_layer(h, p["layers"], l, HEADS_V, None, _quick_gelu)
    # HF CLIP returns last_hidden_state (post_layernorm only touches the pooled output)
    o_ref[...] = _linear(h, p["proj_w"][...], p["proj_b"][...]).astype(o_ref.dtype)


def _text_kernel(bat, p, o_ref):
    h = bat["h"][...]                                         # (S_T, D_T)
    bias = _attn_bias(bat["mask"][...], h.shape[0])           # causal + padding, in-kernel
    for l in range(LAYERS_T):
        h = _encoder_layer(h, p["layers"], l, HEADS_T, bias, _quick_gelu)
    h = _layernorm(h, p["final_ln_g"][...], p["final_ln_b"][...])
    o_ref[...] = _linear(h, p["proj_w"][...], p["proj_b"][...]).astype(o_ref.dtype)


def _gpt2_kernel(bat, p, o_ref):
    h = bat["h"][...]                                         # (S_G, D_G)
    bias = _attn_bias(bat["mask"][...], h.shape[0])
    for l in range(LAYERS_G):
        h = _encoder_layer(h, p["layers"], l, HEADS_G, bias, _gelu_new)
    h = _layernorm(h, p["ln_f_g"][...], p["ln_f_b"][...])
    pooled = jnp.mean(h, axis=0, keepdims=True)               # adaptive_avg_pool1d(., 1)
    out = _linear(pooled, p["inter_w"][...], p["inter_b"][...])
    out = _layernorm(out, p["head_ln_g"][...], p["head_ln_b"][...])
    # TODO(synk): dropout(p=0.1) treated as identity (inference/eval mode).
    o_ref[...] = _linear(out, p["cls_w"][...], p["cls_b"][...]).astype(o_ref.dtype)


# ----------------------------- generic fused caller ---------------------------
def _fused_call(kernel_fn, batched, shared, out_inner, batch):
    """One pallas_call, grid over the batch.  `batched` arrays have a leading batch
    dim and are blocked per grid step; `shared` (weights) live whole in VMEM."""
    b_flat, b_tree = jax.tree_util.tree_flatten(batched)
    s_flat, s_tree = jax.tree_util.tree_flatten(shared)
    nb, ns = len(b_flat), len(s_flat)

    def batched_spec(x):
        rest = x.shape[1:]
        zeros = (0,) * len(rest)
        return pl.BlockSpec((None,) + rest, lambda i: (i,) + zeros)

    in_specs = [batched_spec(x) for x in b_flat] + [VMEM] * ns
    out_zeros = (0,) * len(out_inner)
    out_spec = pl.BlockSpec((None,) + out_inner, lambda i: (i,) + out_zeros)

    def body(*refs):
        bat = jax.tree_util.tree_unflatten(b_tree, refs[:nb])
        shr = jax.tree_util.tree_unflatten(s_tree, refs[nb:nb + ns])
        kernel_fn(bat, shr, refs[nb + ns])

    return pl.pallas_call(
        body,
        grid=(batch,),
        out_shape=jax.ShapeDtypeStruct((batch,) + out_inner, jnp.float32),
        in_specs=in_specs,
        out_specs=out_spec,
        compiler_params=pltpu.CompilerParams(
            dimension_semantics=("parallel",)),      # v7x: 2 TCs over the batch
    )(*b_flat, *s_flat)


# ----------------------------- full forward -----------------------------------
def clip_gpt2_classification(params, input_ids, pixel_values, attention_mask):
    b = pixel_values.shape[0]

    # glue: non-overlapping patchify (stride-P conv as matmul) + class-token indicator row
    x = pixel_values.reshape(b, C_IN, IMG // PATCH, PATCH, IMG // PATCH, PATCH)
    patches = x.transpose(0, 2, 4, 1, 3, 5).reshape(b, NUM_PATCHES, C_IN * PATCH * PATCH)
    patches = jnp.concatenate(
        [patches, jnp.zeros((b, NUM_PATCHES, 1), jnp.float32)], axis=-1)
    cls_row = jnp.concatenate(
        [jnp.zeros((b, 1, C_IN * PATCH * PATCH), jnp.float32),
         jnp.ones((b, 1, 1), jnp.float32)], axis=-1)
    x_aug = jnp.concatenate([cls_row, patches], axis=1)          # (B, S_V, C*P*P+1)

    # fused CLIP vision tower (+ visual projection)
    image_embeds = _fused_call(
        _vision_kernel, batched=dict(x=x_aug), shared=params["vision"],
        out_inner=(S_V, D_G), batch=b)

    # glue: CLIP text embedding gathers; fused text tower (+ text projection)
    tp = params["text"]
    ts = input_ids.shape[1]
    t_h = tp["tok_emb"][input_ids] + tp["pos_emb"][jnp.arange(ts)][None]
    mask_f = attention_mask.astype(jnp.float32)
    text_shared = {k: v for k, v in tp.items() if k not in ("tok_emb", "pos_emb")}
    text_embeds = _fused_call(
        _text_kernel,
        batched=dict(h=t_h, mask=mask_f.reshape(b, 1, ts)),
        shared=text_shared, out_inner=(ts, D_G), batch=b)

    # glue: assemble GPT-2 decoder inputs (vis_pos_emb == 'zeroes' path)
    gp = params["gpt2"]
    vs = S_V
    visual_attention_mask = jnp.ones((b, vs), jnp.float32)
    visual_token_type_id = jnp.ones((b, vs), jnp.int32)
    visual_position_id = jnp.zeros((b, vs), jnp.int32)
    text_token_type_id = jnp.zeros((b, ts), jnp.int32)
    text_position_id = jnp.broadcast_to(jnp.arange(ts, dtype=jnp.int32)[None], (b, ts))

    inputs_embeds = jnp.concatenate([text_embeds, image_embeds], axis=1)
    inputs_mask = jnp.concatenate([mask_f, visual_attention_mask], axis=1)
    token_type = jnp.concatenate([text_token_type_id, visual_token_type_id], axis=1)
    position_id = jnp.concatenate([text_position_id, visual_position_id], axis=1)
    h0 = inputs_embeds + gp["wpe"][position_id] + gp["wte"][token_type]
    s_g = ts + vs

    # fused GPT-2 decoder + mean-pool + intermediate + LN + classifier
    gpt_shared = {k: v for k, v in gp.items() if k not in ("wte", "wpe")}
    logits_pad = _fused_call(
        _gpt2_kernel,
        batched=dict(h=h0, mask=inputs_mask.reshape(b, 1, s_g)),
        shared=gpt_shared, out_inner=(1, CLS_PAD), batch=b)
    return logits_pad[:, 0, :NUM_CLASS]


# ----------------------------- deterministic init -----------------------------
def _stacked_layers(keyit, n_layers, d, d_mlp, std=0.02):
    def w(shape):
        return jax.random.normal(next(keyit), shape, jnp.float32) * std
    return dict(
        ln1_g=jnp.ones((n_layers, 1, d), jnp.float32),
        ln1_b=jnp.zeros((n_layers, 1, d), jnp.float32),
        ln2_g=jnp.ones((n_layers, 1, d), jnp.float32),
        ln2_b=jnp.zeros((n_layers, 1, d), jnp.float32),
        qkv_w=w((n_layers, d, 3 * d)),                   # fused [q|k|v] projection
        qkv_b=jnp.zeros((n_layers, 1, 3 * d), jnp.float32),
        o_w=w((n_layers, d, d)),
        o_b=jnp.zeros((n_layers, 1, d), jnp.float32),
        fc1_w=w((n_layers, d, d_mlp)),
        fc1_b=jnp.zeros((n_layers, 1, d_mlp), jnp.float32),
        fc2_w=w((n_layers, d_mlp, d)),
        fc2_b=jnp.zeros((n_layers, 1, d), jnp.float32),
    )


def init_params(key, std=0.02):
    keyit = iter(jax.random.split(key, 64))

    def w(shape):
        return jax.random.normal(next(keyit), shape, jnp.float32) * std

    patch_w = w((C_IN * PATCH * PATCH, D_V))
    class_emb = w((1, D_V))
    vision = dict(
        # augmented patch weight: last row = class embedding (selected by the
        # one-hot indicator row of the augmented input)
        patch_w=jnp.concatenate([patch_w, class_emb], axis=0),   # (C*P*P+1, D_V)
        pos_emb=w((S_V, D_V)),
        pre_ln_g=jnp.ones((1, D_V), jnp.float32),
        pre_ln_b=jnp.zeros((1, D_V), jnp.float32),
        layers=_stacked_layers(keyit, LAYERS_V, D_V, MLP_V, std),
        proj_w=w((D_V, D_G)), proj_b=jnp.zeros((1, D_G), jnp.float32),
    )
    text = dict(
        tok_emb=w((VOCAB_T, D_T)),
        pos_emb=w((SEQ_T, D_T)),
        layers=_stacked_layers(keyit, LAYERS_T, D_T, MLP_T, std),
        final_ln_g=jnp.ones((1, D_T), jnp.float32),
        final_ln_b=jnp.zeros((1, D_T), jnp.float32),
        proj_w=w((D_T, D_G)), proj_b=jnp.zeros((1, D_G), jnp.float32),
    )
    cls_w = jnp.zeros((INTER, CLS_PAD), jnp.float32).at[:, :NUM_CLASS].set(
        w((INTER, NUM_CLASS)))
    gpt2 = dict(
        wte=w((VOCAB_G, D_G)),
        wpe=w((MAX_POS_G, D_G)),
        layers=_stacked_layers(keyit, LAYERS_G, D_G, MLP_G, std),
        ln_f_g=jnp.ones((1, D_G), jnp.float32), ln_f_b=jnp.zeros((1, D_G), jnp.float32),
        inter_w=w((D_G, INTER)), inter_b=jnp.zeros((1, INTER), jnp.float32),
        head_ln_g=jnp.ones((1, INTER), jnp.float32),
        head_ln_b=jnp.zeros((1, INTER), jnp.float32),
        cls_w=cls_w, cls_b=jnp.zeros((1, CLS_PAD), jnp.float32),
    )
    return dict(vision=vision, text=text, gpt2=gpt2)


# ----------------------------- run --------------------------------------------
if __name__ == "__main__":
    key = jax.random.PRNGKey(0)
    pkey, ikey, xkey = jax.random.split(key, 3)
    params = init_params(pkey)

    input_ids = jax.random.randint(ikey, (B, SEQ_T), 0, VOCAB_T)
    pixel_values = jax.random.normal(xkey, (B, C_IN, IMG, IMG), jnp.float32)
    attention_mask = jnp.ones((B, SEQ_T), jnp.float32)

    fwd = jax.jit(functools.partial(clip_gpt2_classification, params))
    logits = fwd(input_ids, pixel_values, attention_mask)
    jax.block_until_ready(logits)

    assert logits.shape == (B, NUM_CLASS), logits.shape
    assert bool(jnp.all(jnp.isfinite(logits)))
    print("KERNEL_OK")
</pallas_src>

<mosaic_0001>
module attributes {stable_mosaic.version = 11 : i64} {
  func.func @body(%arg0: i32, %arg1: memref<1x5x193xf32, #tpu.memory_space<vmem>>, %arg2: memref<2x1x64xf32, #tpu.memory_space<vmem>>, %arg3: memref<2x32x64xf32, #tpu.memory_space<vmem>>, %arg4: memref<2x1x32xf32, #tpu.memory_space<vmem>>, %arg5: memref<2x64x32xf32, #tpu.memory_space<vmem>>, %arg6: memref<2x1x32xf32, #tpu.memory_space<vmem>>, %arg7: memref<2x1x32xf32, #tpu.memory_space<vmem>>, %arg8: memref<2x1x32xf32, #tpu.memory_space<vmem>>, %arg9: memref<2x1x32xf32, #tpu.memory_space<vmem>>, %arg10: memref<2x1x32xf32, #tpu.memory_space<vmem>>, %arg11: memref<2x32x32xf32, #tpu.memory_space<vmem>>, %arg12: memref<2x1x96xf32, #tpu.memory_space<vmem>>, %arg13: memref<2x32x96xf32, #tpu.memory_space<vmem>>, %arg14: memref<193x32xf32, #tpu.memory_space<vmem>>, %arg15: memref<5x32xf32, #tpu.memory_space<vmem>>, %arg16: memref<1x32xf32, #tpu.memory_space<vmem>>, %arg17: memref<1x32xf32, #tpu.memory_space<vmem>>, %arg18: memref<1x64xf32, #tpu.memory_space<vmem>>, %arg19: memref<32x64xf32, #tpu.memory_space<vmem>>, %arg20: memref<1x5x64xf32, #tpu.memory_space<vmem>>) attributes {dimension_semantics = [#tpu.dimension_semantics<parallel>], iteration_bounds = array<i64: 2>, scalar_prefetch = 0 : i64, scratch_operands = 0 : i64, tpu.core_type = #tpu.core_type<tc>, window_params = [{transform_indices = @transform_0, window_bounds = array<i64: 1, 5, 193>}, {pipeline_mode = #tpu.pipeline_mode<synchronous>, transform_indices = @transform_1, window_bounds = array<i64: 2, 1, 64>}, {pipeline_mode = #tpu.pipeline_mode<synchronous>, transform_indices = @transform_2, window_bounds = array<i64: 2, 32, 64>}, {pipeline_mode = #tpu.pipeline_mode<synchronous>, transform_indices = @transform_3, window_bounds = array<i64: 2, 1, 32>}, {pipeline_mode = #tpu.pipeline_mode<synchronous>, transform_indices = @transform_4, window_bounds = array<i64: 2, 64, 32>}, {pipeline_mode = #tpu.pipeline_mode<synchronous>, transform_indices = @transform_5, window_bounds = array<i64: 2, 1, 32>}, {pipeline_mode = #tpu.pipeline_mode<synchronous>, transform_indices = @transform_6, window_bounds = array<i64: 2, 1, 32>}, {pipeline_mode = #tpu.pipeline_mode<synchronous>, transform_indices = @transform_7, window_bounds = array<i64: 2, 1, 32>}, {pipeline_mode = #tpu.pipeline_mode<synchronous>, transform_indices = @transform_8, window_bounds = array<i64: 2, 1, 32>}, {pipeline_mode = #tpu.pipeline_mode<synchronous>, transform_indices = @transform_9, window_bounds = array<i64: 2, 1, 32>}, {pipeline_mode = #tpu.pipeline_mode<synchronous>, transform_indices = @transform_10, window_bounds = array<i64: 2, 32, 32>}, {pipeline_mode = #tpu.pipeline_mode<synchronous>, transform_indices = @transform_11, window_bounds = array<i64: 2, 1, 96>}, {pipeline_mode = #tpu.pipeline_mode<synchronous>, transform_indices = @transform_12, window_bounds = array<i64: 2, 32, 96>}, {pipeline_mode = #tpu.pipeline_mode<synchronous>, transform_indices = @transform_13, window_bounds = array<i64: 193, 32>}, {pipeline_mode = #tpu.pipeline_mode<synchronous>, transform_indices = @transform_14, window_bounds = array<i64: 5, 32>}, {pipeline_mode = #tpu.pipeline_mode<synchronous>, transform_indices = @transform_15, window_bounds = array<i64: 1, 32>}, {pipeline_mode = #tpu.pipeline_mode<synchronous>, transform_indices = @transform_16, window_bounds = array<i64: 1, 32>}, {pipeline_mode = #tpu.pipeline_mode<synchronous>, transform_indices = @transform_17, window_bounds = array<i64: 1, 64>}, {pipeline_mode = #tpu.pipeline_mode<synchronous>, transform_indices = @transform_18, window_bounds = array<i64: 32, 64>}, {transform_indices = @transform_19, window_bounds = array<i64: 1, 5, 64>}]} {
    %c0 = arith.constant 0 : index
    %c0_0 = arith.constant 0 : index
    %c0_1 = arith.constant 0 : index
    %0 = vector.load %arg1[%c0, %c0_0, %c0_1] : memref<1x5x193xf32, #tpu.memory_space<vmem>>, vector<1x5x193xf32>
    %1 = vector.shape_cast %0 : vector<1x5x193xf32> to vector<5x193xf32>
    %c0_2 = arith.constant 0 : index
    %c0_3 = arith.constant 0 : index
    %2 = vector.load %arg14[%c0_2, %c0_3] : memref<193x32xf32, #tpu.memory_space<vmem>>, vector<193x32xf32>
    %cst = arith.constant dense<0.000000e+00> : vector<5x32xf32>
    %3 = tpu.matmul %1, %2, %cst {dimension_numbers = #tpu.dot_dimension_numbers<[1], [0], [0], [1], [0, 0, 1, 1], [], []>} : vector<5x193xf32>, vector<193x32xf32>, vector<5x32xf32> -> vector<5x32xf32>
    %c0_4 = arith.constant 0 : index
    %c0_5 = arith.constant 0 : index
    %4 = vector.load %arg15[%c0_4, %c0_5] : memref<5x32xf32, #tpu.memory_space<vmem>>, vector<5x32xf32>
    %5 = arith.addf %3, %4 : vector<5x32xf32>
    %c0_6 = arith.constant 0 : index
    %c0_7 = arith.constant 0 : index
    %6 = vector.load %arg17[%c0_6, %c0_7] : memref<1x32xf32, #tpu.memory_space<vmem>>, vector<1x32xf32>
    %c0_8 = arith.constant 0 : index
    %c0_9 = arith.constant 0 : index
    %7 = vector.load %arg16[%c0_8, %c0_9] : memref<1x32xf32, #tpu.memory_space<vmem>>, vector<1x32xf32>
    %cst_10 = arith.constant dense<0.000000e+00> : vector<5xf32>
    %8 = vector.multi_reduction <add>, %5, %cst_10 [1] : vector<5x32xf32> to vector<5xf32>
    %9 = vector.shape_cast %8 : vector<5xf32> to vector<5x1xf32>
    %cst_11 = arith.constant 3.200000e+01 : f32
    %10 = vector.broadcast %cst_11 : f32 to vector<5x1xf32>
    %11 = arith.divf %9, %10 : vector<5x1xf32>
    %12 = vector.broadcast %11 : vector<5x1xf32> to vector<5x32xf32>
    %13 = arith.subf %5, %12 : vector<5x32xf32>
    %14 = arith.mulf %13, %13 : vector<5x32xf32>
    %cst_12 = arith.constant dense<0.000000e+00> : vector<5xf32>
    %15 = vector.multi_reduction <add>, %14, %cst_12 [1] : vector<5x32xf32> to vector<5xf32>
    %16 = vector.shape_cast %15 : vector<5xf32> to vector<5x1xf32>
    %cst_13 = arith.constant 3.200000e+01 : f32
    %17 = vector.broadcast %cst_13 : f32 to vector<5x1xf32>
    %18 = arith.divf %16, %17 : vector<5x1xf32>
    %19 = vector.broadcast %11 : vector<5x1xf32> to vector<5x32xf32>
    %20 = arith.subf %5, %19 : vector<5x32xf32>
    %cst_14 = arith.constant 9.99999974E-6 : f32
    %21 = vector.broadcast %cst_14 : f32 to vector<5x1xf32>
    %22 = arith.addf %18, %21 : vector<5x1xf32>
    %23 = math.rsqrt %22 : vector<5x1xf32>
    %24 = vector.broadcast %23 : vector<5x1xf32> to vector<5x32xf32>
    %25 = arith.mulf %20, %24 : vector<5x32xf32>
    %26 = vector.broadcast %6 : vector<1x32xf32> to vector<5x32xf32>
    %27 = arith.mulf %25, %26 : vector<5x32xf32>
    %28 = vector.broadcast %7 : vector<1x32xf32> to vector<5x32xf32>
    %29 = arith.addf %27, %28 : vector<5x32xf32>
    %c0_15 = arith.constant 0 : index
    %c0_16 = arith.constant 0 : index
    %c0_17 = arith.constant 0 : index
    %30 = vector.load %arg7[%c0_15, %c0_16, %c0_17] : memref<2x1x32xf32, #tpu.memory_space<vmem>>, vector<1x1x32xf32>
    %31 = vector.shape_cast %30 : vector<1x1x32xf32> to vector<1x32xf32>
    %c0_18 = arith.constant 0 : index
    %c0_19 = arith.constant 0 : index
    %c0_20 = arith.constant 0 : index
    %32 = vector.load %arg6[%c0_18, %c0_19, %c0_20] : memref<2x1x32xf32, #tpu.memory_space<vmem>>, vector<1x1x32xf32>
    %33 = vector.shape_cast %32 : vector<1x1x32xf32> to vector<1x32xf32>
    %cst_21 = arith.constant dense<0.000000e+00> : vector<5xf32>
    %34 = vector.multi_reduction <add>, %29, %cst_21 [1] : vector<5x32xf32> to vector<5xf32>
    %35 = vector.shape_cast %34 : vector<5xf32> to vector<5x1xf32>
    %cst_22 = arith.constant 3.200000e+01 : f32
    %36 = vector.broadcast %cst_22 : f32 to vector<5x1xf32>
    %37 = arith.divf %35, %36 : vector<5x1xf32>
    %38 = vector.broadcast %37 : vector<5x1xf32> to vector<5x32xf32>
    %39 = arith.subf %29, %38 : vector<5x32xf32>
    %40 = arith.mulf %39, %39 : vector<5x32xf32>
    %cst_23 = arith.constant dense<0.000000e+00> : vector<5xf32>
    %41 = vector.multi_reduction <add>, %40, %cst_23 [1] : vector<5x32xf32> to vector<5xf32>
    %42 = vector.shape_cast %41 : vector<5xf32> to vector<5x1xf32>
    %cst_24 = arith.constant 3.200000e+01 : f32
    %43 = vector.broadcast %cst_24 : f32 to vector<5x1xf32>
    %44 = arith.divf %42, %43 : vector<5x1xf32>
    %45 = vector.broadcast %37 : vector<5x1xf32> to vector<5x32xf32>
    %46 = arith.subf %29, %45 : vector<5x32xf32>
    %cst_25 = arith.constant 9.99999974E-6 : f32
    %47 = vector.broadcast %cst_25 : f32 to vector<5x1xf32>
    %48 = arith.addf %44, %47 : vector<5x1xf32>
    %49 = math.rsqrt %48 : vector<5x1xf32>
    %50 = vector.broadcast %49 : vector<5x1xf32> to vector<5x32xf32>
    %51 = arith.mulf %46, %50 : vector<5x32xf32>
    %52 = vector.broadcast %31 : vector<1x32xf32> to vector<5x32xf32>
    %53 = arith.mulf %51, %52 : vector<5x32xf32>
    %54 = vector.broadcast %33 : vector<1x32xf32> to vector<5x32xf32>
    %55 = arith.addf %53, %54 : vector<5x32xf32>
    %c0_26 = arith.constant 0 : index
    %c0_27 = arith.constant 0 : index
    %c0_28 = arith.constant 0 : index
    %56 = vector.load %arg13[%c0_26, %c0_27, %c0_28] : memref<2x32x96xf32, #tpu.memory_space<vmem>>, vector<1x32x96xf32>
    %57 = vector.shape_cast %56 : vector<1x32x96xf32> to vector<32x96xf32>
    %c0_29 = arith.constant 0 : index
    %c0_30 = arith.constant 0 : index
    %c0_31 = arith.constant 0 : index
    %58 = vector.load %arg12[%c0_29, %c0_30, %c0_31] : memref<2x1x96xf32, #tpu.memory_space<vmem>>, vector<1x1x96xf32>
    %59 = vector.shape_cast %58 : vector<1x1x96xf32> to vector<1x96xf32>
    %cst_32 = arith.constant dense<0.000000e+00> : vector<5x96xf32>
    %60 = tpu.matmul %55, %57, %cst_32 {dimension_numbers = #tpu.dot_dimension_numbers<[1], [0], [0], [1], [0, 0, 1, 1], [], []>} : vector<5x32xf32>, vector<32x96xf32>, vector<5x96xf32> -> vector<5x96xf32>
    %61 = vector.broadcast %59 : vector<1x96xf32> to vector<5x96xf32>
    %62 = arith.addf %60, %61 : vector<5x96xf32>
    %c0_33 = arith.constant 0 : index
    %c0_34 = arith.constant 0 : index
    %c0_35 = arith.constant 0 : index
    %63 = vector.load %arg11[%c0_33, %c0_34, %c0_35] : memref<2x32x32xf32, #tpu.memory_space<vmem>>, vector<1x32x32xf32>
    %64 = vector.shape_cast %63 : vector<1x32x32xf32> to vector<32x32xf32>
    %65 = vector.extract_strided_slice %62 {offsets = [0, 0], sizes = [5, 16], strides = [1, 1]} : vector<5x96xf32> to vector<5x16xf32>
    %66 = vector.extract_strided_slice %62 {offsets = [0, 32], sizes = [5, 16], strides = [1, 1]} : vector<5x96xf32> to vector<5x16xf32>
    %67 = vector.extract_strided_slice %62 {offsets = [0, 64], sizes = [5, 16], strides = [1, 1]} : vector<5x96xf32> to vector<5x16xf32>
    %cst_36 = arith.constant dense<0.000000e+00> : vector<5x5xf32>
    %68 = tpu.matmul %65, %66, %cst_36 {dimension_numbers = #tpu.dot_dimension_numbers<[1], [1], [0], [0], [0, 0, 1, 0], [], []>} : vector<5x16xf32>, vector<5x16xf32>, vector<5x5xf32> -> vector<5x5xf32>
    %cst_37 = arith.constant 2.500000e-01 : f32
    %69 = vector.broadcast %cst_37 : f32 to vector<5x5xf32>
    %70 = arith.mulf %68, %69 : vector<5x5xf32>
    %cst_38 = arith.constant dense<0xFF800000> : vector<5xf32>
    %71 = vector.multi_reduction <maximumf>, %70, %cst_38 [1] : vector<5x5xf32> to vector<5xf32>
    %72 = vector.shape_cast %71 : vector<5xf32> to vector<5x1xf32>
    %73 = vector.broadcast %72 : vector<5x1xf32> to vector<5x5xf32>
    %74 = arith.subf %70, %73 : vector<5x5xf32>
    %75 = math.exp %74 : vector<5x5xf32>
    %cst_39 = arith.constant dense<0.000000e+00> : vector<5xf32>
    %76 = vector.multi_reduction <add>, %75, %cst_39 [1] : vector<5x5xf32> to vector<5xf32>
    %77 = vector.shape_cast %76 : vector<5xf32> to vector<5x1xf32>
    %78 = tpu.reciprocal %77 {approx = true} : vector<5x1xf32> -> vector<5x1xf32>
    %79 = vector.broadcast %78 : vector<5x1xf32> to vector<5x5xf32>
    %80 = arith.mulf %75, %79 : vector<5x5xf32>
    %cst_40 = arith.constant dense<0.000000e+00> : vector<5x16xf32>
    %81 = tpu.matmul %80, %67, %cst_40 {dimension_numbers = #tpu.dot_dimension_numbers<[1], [0], [0], [1], [0, 0, 1, 1], [], []>} : vector<5x5xf32>, vector<5x16xf32>, vector<5x16xf32> -> vector<5x16xf32>
    %82 = vector.extract_strided_slice %64 {offsets = [0, 0], sizes = [16, 32], strides = [1, 1]} : vector<32x32xf32> to vector<16x32xf32>
    %cst_41 = arith.constant dense<0.000000e+00> : vector<5x32xf32>
    %83 = tpu.matmul %81, %82, %cst_41 {dimension_numbers = #tpu.dot_dimension_numbers<[1], [0], [0], [1], [0, 0, 1, 1], [], []>} : vector<5x16xf32>, vector<16x32xf32>, vector<5x32xf32> -> vector<5x32xf32>
    %84 = vector.extract_strided_slice %62 {offsets = [0, 16], sizes = [5, 16], strides = [1, 1]} : vector<5x96xf32> to vector<5x16xf32>
    %85 = vector.extract_strided_slice %62 {offsets = [0, 48], sizes = [5, 16], strides = [1, 1]} : vector<5x96xf32> to vector<5x16xf32>
    %86 = vector.extract_strided_slice %62 {offsets = [0, 80], sizes = [5, 16], strides = [1, 1]} : vector<5x96xf32> to vector<5x16xf32>
    %cst_42 = arith.constant dense<0.000000e+00> : vector<5x5xf32>
    %87 = tpu.matmul %84, %85, %cst_42 {dimension_numbers = #tpu.dot_dimension_numbers<[1], [1], [0], [0], [0, 0, 1, 0], [], []>} : vector<5x16xf32>, vector<5x16xf32>, vector<5x5xf32> -> vector<5x5xf32>
    %cst_43 = arith.constant 2.500000e-01 : f32
    %88 = vector.broadcast %cst_43 : f32 to vector<5x5xf32>
    %89 = arith.mulf %87, %88 : vector<5x5xf32>
    %cst_44 = arith.constant dense<0xFF800000> : vector<5xf32>
    %90 = vector.multi_reduction <maximumf>, %89, %cst_44 [1] : vector<5x5xf32> to vector<5xf32>
    %91 = vector.shape_cast %90 : vector<5xf32> to vector<5x1xf32>
    %92 = vector.broadcast %91 : vector<5x1xf32> to vector<5x5xf32>
    %93 = arith.subf %89, %92 : vector<5x5xf32>
    %94 = math.exp %93 : vector<5x5xf32>
    %cst_45 = arith.constant dense<0.000000e+00> : vector<5xf32>
    %95 = vector.multi_reduction <add>, %94, %cst_45 [1] : vector<5x5xf32> to vector<5xf32>
    %96 = vector.shape_cast %95 : vector<5xf32> to vector<5x1xf32>
    %97 = tpu.reciprocal %96 {approx = true} : vector<5x1xf32> -> vector<5x1xf32>
    %98 = vector.broadcast %97 : vector<5x1xf32> to vector<5x5xf32>
    %99 = arith.mulf %94, %98 : vector<5x5xf32>
    %cst_46 = arith.constant dense<0.000000e+00> : vector<5x16xf32>
    %100 = tpu.matmul %99, %86, %cst_46 {dimension_numbers = #tpu.dot_dimension_numbers<[1], [0], [0], [1], [0, 0, 1, 1], [], []>} : vector<5x5xf32>, vector<5x16xf32>, vector<5x16xf32> -> vector<5x16xf32>
    %101 = vector.extract_strided_slice %64 {offsets = [16, 0], sizes = [16, 32], strides = [1, 1]} : vector<32x32xf32> to vector<16x32xf32>
    %cst_47 = arith.constant dense<0.000000e+00> : vector<5x32xf32>
    %102 = tpu.matmul %100, %101, %cst_47 {dimension_numbers = #tpu.dot_dimension_numbers<[1], [0], [0], [1], [0, 0, 1, 1], [], []>} : vector<5x16xf32>, vector<16x32xf32>, vector<5x32xf32> -> vector<5x32xf32>
    %103 = arith.addf %83, %102 : vector<5x32xf32>
    %c0_48 = arith.constant 0 : index
    %c0_49 = arith.constant 0 : index
    %c0_50 = arith.constant 0 : index
    %104 = vector.load %arg10[%c0_48, %c0_49, %c0_50] : memref<2x1x32xf32, #tpu.memory_space<vmem>>, vector<1x1x32xf32>
    %105 = vector.shape_cast %104 : vector<1x1x32xf32> to vector<1x32xf32>
    %106 = vector.broadcast %105 : vector<1x32xf32> to vector<5x32xf32>
    %107 = arith.addf %103, %106 : vector<5x32xf32>
    %108 = arith.addf %29, %107 : vector<5x32xf32>
    %c0_51 = arith.constant 0 : index
    %c0_52 = arith.constant 0 : index
    %c0_53 = arith.constant 0 : index
    %109 = vector.load %arg9[%c0_51, %c0_52, %c0_53] : memref<2x1x32xf32, #tpu.memory_space<vmem>>, vector<1x1x32xf32>
    %110 = vector.shape_cast %109 : vector<1x1x32xf32> to vector<1x32xf32>
    %c0_54 = arith.constant 0 : index
    %c0_55 = arith.constant 0 : index
    %c0_56 = arith.constant 0 : index
    %111 = vector.load %arg8[%c0_54, %c0_55, %c0_56] : memref<2x1x32xf32, #tpu.memory_space<vmem>>, vector<1x1x32xf32>
    %112 = vector.shape_cast %111 : vector<1x1x32xf32> to vector<1x32xf32>
    %cst_57 = arith.constant dense<0.000000e+00> : vector<5xf32>
    %113 = vector.multi_reduction <add>, %108, %cst_57 [1] : vector<5x32xf32> to vector<5xf32>
    %114 = vector.shape_cast %113 : vector<5xf32> to vector<5x1xf32>
    %cst_58 = arith.constant 3.200000e+01 : f32
    %115 = vector.broadcast %cst_58 : f32 to vector<5x1xf32>
    %116 = arith.divf %114, %115 : vector<5x1xf32>
    %117 = vector.broadcast %116 : vector<5x1xf32> to vector<5x32xf32>
    %118 = arith.subf %108, %117 : vector<5x32xf32>
    %119 = arith.mulf %118, %118 : vector<5x32xf32>
    %cst_59 = arith.constant dense<0.000000e+00> : vector<5xf32>
    %120 = vector.multi_reduction <add>, %119, %cst_59 [1] : vector<5x32xf32> to vector<5xf32>
    %121 = vector.shape_cast %120 : vector<5xf32> to vector<5x1xf32>
    %cst_60 = arith.constant 3.200000e+01 : f32
    %122 = vector.broadcast %cst_60 : f32 to vector<5x1xf32>
    %123 = arith.divf %121, %122 : vector<5x1xf32>
    %124 = vector.broadcast %116 : vector<5x1xf32> to vector<5x32xf32>
    %125 = arith.subf %108, %124 : vector<5x32xf32>
    %cst_61 = arith.constant 9.99999974E-6 : f32
    %126 = vector.broadcast %cst_61 : f32 to vector<5x1xf32>
    %127 = arith.addf %123, %126 : vector<5x1xf32>
    %128 = math.rsqrt %127 : vector<5x1xf32>
    %129 = vector.broadcast %128 : vector<5x1xf32> to vector<5x32xf32>
    %130 = arith.mulf %125, %129 : vector<5x32xf32>
    %131 = vector.broadcast %110 : vector<1x32xf32> to vector<5x32xf32>
    %132 = arith.mulf %130, %131 : vector<5x32xf32>
    %133 = vector.broadcast %112 : vector<1x32xf32> to vector<5x32xf32>
    %134 = arith.addf %132, %133 : vector<5x32xf32>
    %c0_62 = arith.constant 0 : index
    %c0_63 = arith.constant 0 : index
    %c0_64 = arith.constant 0 : index
    %135 = vector.load %arg3[%c0_62, %c0_63, %c0_64] : memref<2x32x64xf32, #tpu.memory_space<vmem>>, vector<1x32x64xf32>
    %136 = vector.shape_cast %135 : vector<1x32x64xf32> to vector<32x64xf32>
    %c0_65 = arith.constant 0 : index
    %c0_66 = arith.constant 0 : index
    %c0_67 = arith.constant 0 : index
    %137 = vector.load %arg2[%c0_65, %c0_66, %c0_67] : memref<2x1x64xf32, #tpu.memory_space<vmem>>, vector<1x1x64xf32>
    %138 = vector.shape_cast %137 : vector<1x1x64xf32> to vector<1x64xf32>
    %cst_68 = arith.constant dense<0.000000e+00> : vector<5x64xf32>
    %139 = tpu.matmul %134, %136, %cst_68 {dimension_numbers = #tpu.dot_dimension_numbers<[1], [0], [0], [1], [0, 0, 1, 1], [], []>} : vector<5x32xf32>, vector<32x64xf32>, vector<5x64xf32> -> vector<5x64xf32>
    %140 = vector.broadcast %138 : vector<1x64xf32> to vector<5x64xf32>
    %141 = arith.addf %139, %140 : vector<5x64xf32>
    %cst_69 = arith.constant 1.702000e+00 : f32
    %142 = vector.broadcast %cst_69 : f32 to vector<5x64xf32>
    %143 = arith.mulf %142, %141 : vector<5x64xf32>
    %144 = arith.negf %143 : vector<5x64xf32>
    %145 = math.exp %144 : vector<5x64xf32>
    %cst_70 = arith.constant 1.000000e+00 : f32
    %146 = vector.broadcast %cst_70 : f32 to vector<5x64xf32>
    %147 = arith.addf %146, %145 : vector<5x64xf32>
    %148 = arith.divf %146, %147 : vector<5x64xf32>
    %149 = arith.mulf %141, %148 : vector<5x64xf32>
    %c0_71 = arith.constant 0 : index
    %c0_72 = arith.constant 0 : index
    %c0_73 = arith.constant 0 : index
    %150 = vector.load %arg5[%c0_71, %c0_72, %c0_73] : memref<2x64x32xf32, #tpu.memory_space<vmem>>, vector<1x64x32xf32>
    %151 = vector.shape_cast %150 : vector<1x64x32xf32> to vector<64x32xf32>
    %c0_74 = arith.constant 0 : index
    %c0_75 = arith.constant 0 : index
    %c0_76 = arith.constant 0 : index
    %152 = vector.load %arg4[%c0_74, %c0_75, %c0_76] : memref<2x1x32xf32, #tpu.memory_space<vmem>>, vector<1x1x32xf32>
    %153 = vector.shape_cast %152 : vector<1x1x32xf32> to vector<1x32xf32>
    %cst_77 = arith.constant dense<0.000000e+00> : vector<5x32xf32>
    %154 = tpu.matmul %149, %151, %cst_77 {dimension_numbers = #tpu.dot_dimension_numbers<[1], [0], [0], [1], [0, 0, 1, 1], [], []>} : vector<5x64xf32>, vector<64x32xf32>, vector<5x32xf32> -> vector<5x32xf32>
    %155 = vector.broadcast %153 : vector<1x32xf32> to vector<5x32xf32>
    %156 = arith.addf %154, %155 : vector<5x32xf32>
    %157 = arith.addf %108, %156 : vector<5x32xf32>
    %c1 = arith.constant 1 : index
    %c0_78 = arith.constant 0 : index
    %c0_79 = arith.constant 0 : index
    %158 = vector.load %arg7[%c1, %c0_78, %c0_79] : memref<2x1x32xf32, #tpu.memory_space<vmem>>, vector<1x1x32xf32>
    %159 = vector.shape_cast %158 : vector<1x1x32xf32> to vector<1x32xf32>
    %c1_80 = arith.constant 1 : index
    %c0_81 = arith.constant 0 : index
    %c0_82 = arith.constant 0 : index
    %160 = vector.load %arg6[%c1_80, %c0_81, %c0_82] : memref<2x1x32xf32, #tpu.memory_space<vmem>>, vector<1x1x32xf32>
    %161 = vector.shape_cast %160 : vector<1x1x32xf32> to vector<1x32xf32>
    %cst_83 = arith.constant dense<0.000000e+00> : vector<5xf32>
    %162 = vector.multi_reduction <add>, %157, %cst_83 [1] : vector<5x32xf32> to vector<5xf32>
    %163 = vector.shape_cast %162 : vector<5xf32> to vector<5x1xf32>
    %cst_84 = arith.constant 3.200000e+01 : f32
    %164 = vector.broadcast %cst_84 : f32 to vector<5x1xf32>
    %165 = arith.divf %163, %164 : vector<5x1xf32>
    %166 = vector.broadcast %165 : vector<5x1xf32> to vector<5x32xf32>
    %167 = arith.subf %157, %166 : vector<5x32xf32>
    %168 = arith.mulf %167, %167 : vector<5x32xf32>
    %cst_85 = arith.constant dense<0.000000e+00> : vector<5xf32>
    %169 = vector.multi_reduction <add>, %168, %cst_85 [1] : vector<5x32xf32> to vector<5xf32>
    %170 = vector.shape_cast %169 : vector<5xf32> to vector<5x1xf32>
    %cst_86 = arith.constant 3.200000e+01 : f32
    %171 = vector.broadcast %cst_86 : f32 to vector<5x1xf32>
    %172 = arith.divf %170, %171 : vector<5x1xf32>
    %173 = vector.broadcast %165 : vector<5x1xf32> to vector<5x32xf32>
    %174 = arith.subf %157, %173 : vector<5x32xf32>
    %cst_87 = arith.constant 9.99999974E-6 : f32
    %175 = vector.broadcast %cst_87 : f32 to vector<5x1xf32>
    %176 = arith.addf %172, %175 : vector<5x1xf32>
    %177 = math.rsqrt %176 : vector<5x1xf32>
    %178 = vector.broadcast %177 : vector<5x1xf32> to vector<5x32xf32>
    %179 = arith.mulf %174, %178 : vector<5x32xf32>
    %180 = vector.broadcast %159 : vector<1x32xf32> to vector<5x32xf32>
    %181 = arith.mulf %179, %180 : vector<5x32xf32>
    %182 = vector.broadcast %161 : vector<1x32xf32> to vector<5x32xf32>
    %183 = arith.addf %181, %182 : vector<5x32xf32>
    %c1_88 = arith.constant 1 : index
    %c0_89 = arith.constant 0 : index
    %c0_90 = arith.constant 0 : index
    %184 = vector.load %arg13[%c1_88, %c0_89, %c0_90] : memref<2x32x96xf32, #tpu.memory_space<vmem>>, vector<1x32x96xf32>
    %185 = vector.shape_cast %184 : vector<1x32x96xf32> to vector<32x96xf32>
    %c1_91 = arith.constant 1 : index
    %c0_92 = arith.constant 0 : index
    %c0_93 = arith.constant 0 : index
    %186 = vector.load %arg12[%c1_91, %c0_92, %c0_93] : memref<2x1x96xf32, #tpu.memory_space<vmem>>, vector<1x1x96xf32>
    %187 = vector.shape_cast %186 : vector<1x1x96xf32> to vector<1x96xf32>
    %cst_94 = arith.constant dense<0.000000e+00> : vector<5x96xf32>
    %188 = tpu.matmul %183, %185, %cst_94 {dimension_numbers = #tpu.dot_dimension_numbers<[1], [0], [0], [1], [0, 0, 1, 1], [], []>} : vector<5x32xf32>, vector<32x96xf32>, vector<5x96xf32> -> vector<5x96xf32>
    %189 = vector.broadcast %187 : vector<1x96xf32> to vector<5x96xf32>
    %190 = arith.addf %188, %189 : vector<5x96xf32>
    %c1_95 = arith.constant 1 : index
    %c0_96 = arith.constant 0 : index
    %c0_97 = arith.constant 0 : index
    %191 = vector.load %arg11[%c1_95, %c0_96, %c0_97] : memref<2x32x32xf32, #tpu.memory_space<vmem>>, vector<1x32x32xf32>
    %192 = vector.shape_cast %191 : vector<1x32x32xf32> to vector<32x32xf32>
    %193 = vector.extract_strided_slice %190 {offsets = [0, 0], sizes = [5, 16], strides = [1, 1]} : vector<5x96xf32> to vector<5x16xf32>
    %194 = vector.extract_strided_slice %190 {offsets = [0, 32], sizes = [5, 16], strides = [1, 1]} : vector<5x96xf32> to vector<5x16xf32>
    %195 = vector.extract_strided_slice %190 {offsets = [0, 64], sizes = [5, 16], strides = [1, 1]} : vector<5x96xf32> to vector<5x16xf32>
    %cst_98 = arith.constant dense<0.000000e+00> : vector<5x5xf32>
    %196 = tpu.matmul %193, %194, %cst_98 {dimension_numbers = #tpu.dot_dimension_numbers<[1], [1], [0], [0], [0, 0, 1, 0], [], []>} : vector<5x16xf32>, vector<5x16xf32>, vector<5x5xf32> -> vector<5x5xf32>
    %cst_99 = arith.constant 2.500000e-01 : f32
    %197 = vector.broadcast %cst_99 : f32 to vector<5x5xf32>
    %198 = arith.mulf %196, %197 : vector<5x5xf32>
    %cst_100 = arith.constant dense<0xFF800000> : vector<5xf32>
    %199 = vector.multi_reduction <maximumf>, %198, %cst_100 [1] : vector<5x5xf32> to vector<5xf32>
    %200 = vector.shape_cast %199 : vector<5xf32> to vector<5x1xf32>
    %201 = vector.broadcast %200 : vector<5x1xf32> to vector<5x5xf32>
    %202 = arith.subf %198, %201 : vector<5x5xf32>
    %203 = math.exp %202 : vector<5x5xf32>
    %cst_101 = arith.constant dense<0.000000e+00> : vector<5xf32>
    %204 = vector.multi_reduction <add>, %203, %cst_101 [1] : vector<5x5xf32> to vector<5xf32>
    %205 = vector.shape_cast %204 : vector<5xf32> to vector<5x1xf32>
    %206 = tpu.reciprocal %205 {approx = true} : vector<5x1xf32> -> vector<5x1xf32>
    %207 = vector.broadcast %206 : vector<5x1xf32> to vector<5x5xf32>
    %208 = arith.mulf %203, %207 : vector<5x5xf32>
    %cst_102 = arith.constant dense<0.000000e+00> : vector<5x16xf32>
    %209 = tpu.matmul %208, %195, %cst_102 {dimension_numbers = #tpu.dot_dimension_numbers<[1], [0], [0], [1], [0, 0, 1, 1], [], []>} : vector<5x5xf32>, vector<5x16xf32>, vector<5x16xf32> -> vector<5x16xf32>
    %210 = vector.extract_strided_slice %192 {offsets = [0, 0], sizes = [16, 32], strides = [1, 1]} : vector<32x32xf32> to vector<16x32xf32>
    %cst_103 = arith.constant dense<0.000000e+00> : vector<5x32xf32>
    %211 = tpu.matmul %209, %210, %cst_103 {dimension_numbers = #tpu.dot_dimension_numbers<[1], [0], [0], [1], [0, 0, 1, 1], [], []>} : vector<5x16xf32>, vector<16x32xf32>, vector<5x32xf32> -> vector<5x32xf32>
    %212 = vector.extract_strided_slice %190 {offsets = [0, 16], sizes = [5, 16], strides = [1, 1]} : vector<5x96xf32> to vector<5x16xf32>
    %213 = vector.extract_strided_slice %190 {offsets = [0, 48], sizes = [5, 16], strides = [1, 1]} : vector<5x96xf32> to vector<5x16xf32>
    %214 = vector.extract_strided_slice %190 {offsets = [0, 80], sizes = [5, 16], strides = [1, 1]} : vector<5x96xf32> to vector<5x16xf32>
    %cst_104 = arith.constant dense<0.000000e+00> : vector<5x5xf32>
    %215 = tpu.matmul %212, %213, %cst_104 {dimension_numbers = #tpu.dot_dimension_numbers<[1], [1], [0], [0], [0, 0, 1, 0], [], []>} : vector<5x16xf32>, vector<5x16xf32>, vector<5x5xf32> -> vector<5x5xf32>
    %cst_105 = arith.constant 2.500000e-01 : f32
    %216 = vector.broadcast %cst_105 : f32 to vector<5x5xf32>
    %217 = arith.mulf %215, %216 : vector<5x5xf32>
    %cst_106 = arith.constant dense<0xFF800000> : vector<5xf32>
    %218 = vector.multi_reduction <maximumf>, %217, %cst_106 [1] : vector<5x5xf32> to vector<5xf32>
    %219 = vector.shape_cast %218 : vector<5xf32> to vector<5x1xf32>
    %220 = vector.broadcast %219 : vector<5x1xf32> to vector<5x5xf32>
    %221 = arith.subf %217, %220 : vector<5x5xf32>
    %222 = math.exp %221 : vector<5x5xf32>
    %cst_107 = arith.constant dense<0.000000e+00> : vector<5xf32>
    %223 = vector.multi_reduction <add>, %222, %cst_107 [1] : vector<5x5xf32> to vector<5xf32>
    %224 = vector.shape_cast %223 : vector<5xf32> to vector<5x1xf32>
    %225 = tpu.reciprocal %224 {approx = true} : vector<5x1xf32> -> vector<5x1xf32>
    %226 = vector.broadcast %225 : vector<5x1xf32> to vector<5x5xf32>
    %227 = arith.mulf %222, %226 : vector<5x5xf32>
    %cst_108 = arith.constant dense<0.000000e+00> : vector<5x16xf32>
    %228 = tpu.matmul %227, %214, %cst_108 {dimension_numbers = #tpu.dot_dimension_numbers<[1], [0], [0], [1], [0, 0, 1, 1], [], []>} : vector<5x5xf32>, vector<5x16xf32>, vector<5x16xf32> -> vector<5x16xf32>
    %229 = vector.extract_strided_slice %192 {offsets = [16, 0], sizes = [16, 32], strides = [1, 1]} : vector<32x32xf32> to vector<16x32xf32>
    %cst_109 = arith.constant dense<0.000000e+00> : vector<5x32xf32>
    %230 = tpu.matmul %228, %229, %cst_109 {dimension_numbers = #tpu.dot_dimension_numbers<[1], [0], [0], [1], [0, 0, 1, 1], [], []>} : vector<5x16xf32>, vector<16x32xf32>, vector<5x32xf32> -> vector<5x32xf32>
    %231 = arith.addf %211, %230 : vector<5x32xf32>
    %c1_110 = arith.constant 1 : index
    %c0_111 = arith.constant 0 : index
    %c0_112 = arith.constant 0 : index
    %232 = vector.load %arg10[%c1_110, %c0_111, %c0_112] : memref<2x1x32xf32, #tpu.memory_space<vmem>>, vector<1x1x32xf32>
    %233 = vector.shape_cast %232 : vector<1x1x32xf32> to vector<1x32xf32>
    %234 = vector.broadcast %233 : vector<1x32xf32> to vector<5x32xf32>
    %235 = arith.addf %231, %234 : vector<5x32xf32>
    %236 = arith.addf %157, %235 : vector<5x32xf32>
    %c1_113 = arith.constant 1 : index
    %c0_114 = arith.constant 0 : index
    %c0_115 = arith.constant 0 : index
    %237 = vector.load %arg9[%c1_113, %c0_114, %c0_115] : memref<2x1x32xf32, #tpu.memory_space<vmem>>, vector<1x1x32xf32>
    %238 = vector.shape_cast %237 : vector<1x1x32xf32> to vector<1x32xf32>
    %c1_116 = arith.constant 1 : index
    %c0_117 = arith.constant 0 : index
    %c0_118 = arith.constant 0 : index
    %239 = vector.load %arg8[%c1_116, %c0_117, %c0_118] : memref<2x1x32xf32, #tpu.memory_space<vmem>>, vector<1x1x32xf32>
    %240 = vector.shape_cast %239 : vector<1x1x32xf32> to vector<1x32xf32>
    %cst_119 = arith.constant dense<0.000000e+00> : vector<5xf32>
    %241 = vector.multi_reduction <add>, %236, %cst_119 [1] : vector<5x32xf32> to vector<5xf32>
    %242 = vector.shape_cast %241 : vector<5xf32> to vector<5x1xf32>
    %cst_120 = arith.constant 3.200000e+01 : f32
    %243 = vector.broadcast %cst_120 : f32 to vector<5x1xf32>
    %244 = arith.divf %242, %243 : vector<5x1xf32>
    %245 = vector.broadcast %244 : vector<5x1xf32> to vector<5x32xf32>
    %246 = arith.subf %236, %245 : vector<5x32xf32>
    %247 = arith.mulf %246, %246 : vector<5x32xf32>
    %cst_121 = arith.constant dense<0.000000e+00> : vector<5xf32>
    %248 = vector.multi_reduction <add>, %247, %cst_121 [1] : vector<5x32xf32> to vector<5xf32>
    %249 = vector.shape_cast %248 : vector<5xf32> to vector<5x1xf32>
    %cst_122 = arith.constant 3.200000e+01 : f32
    %250 = vector.broadcast %cst_122 : f32 to vector<5x1xf32>
    %251 = arith.divf %249, %250 : vector<5x1xf32>
    %252 = vector.broadcast %244 : vector<5x1xf32> to vector<5x32xf32>
    %253 = arith.subf %236, %252 : vector<5x32xf32>
    %cst_123 = arith.constant 9.99999974E-6 : f32
    %254 = vector.broadcast %cst_123 : f32 to vector<5x1xf32>
    %255 = arith.addf %251, %254 : vector<5x1xf32>
    %256 = math.rsqrt %255 : vector<5x1xf32>
    %257 = vector.broadcast %256 : vector<5x1xf32> to vector<5x32xf32>
    %258 = arith.mulf %253, %257 : vector<5x32xf32>
    %259 = vector.broadcast %238 : vector<1x32xf32> to vector<5x32xf32>
    %260 = arith.mulf %258, %259 : vector<5x32xf32>
    %261 = vector.broadcast %240 : vector<1x32xf32> to vector<5x32xf32>
    %262 = arith.addf %260, %261 : vector<5x32xf32>
    %c1_124 = arith.constant 1 : index
    %c0_125 = arith.constant 0 : index
    %c0_126 = arith.constant 0 : index
    %263 = vector.load %arg3[%c1_124, %c0_125, %c0_126] : memref<2x32x64xf32, #tpu.memory_space<vmem>>, vector<1x32x64xf32>
    %264 = vector.shape_cast %263 : vector<1x32x64xf32> to vector<32x64xf32>
    %c1_127 = arith.constant 1 : index
    %c0_128 = arith.constant 0 : index
    %c0_129 = arith.constant 0 : index
    %265 = vector.load %arg2[%c1_127, %c0_128, %c0_129] : memref<2x1x64xf32, #tpu.memory_space<vmem>>, vector<1x1x64xf32>
    %266 = vector.shape_cast %265 : vector<1x1x64xf32> to vector<1x64xf32>
    %cst_130 = arith.constant dense<0.000000e+00> : vector<5x64xf32>
    %267 = tpu.matmul %262, %264, %cst_130 {dimension_numbers = #tpu.dot_dimension_numbers<[1], [0], [0], [1], [0, 0, 1, 1], [], []>} : vector<5x32xf32>, vector<32x64xf32>, vector<5x64xf32> -> vector<5x64xf32>
    %268 = vector.broadcast %266 : vector<1x64xf32> to vector<5x64xf32>
    %269 = arith.addf %267, %268 : vector<5x64xf32>
    %cst_131 = arith.constant 1.702000e+00 : f32
    %270 = vector.broadcast %cst_131 : f32 to vector<5x64xf32>
    %271 = arith.mulf %270, %269 : vector<5x64xf32>
    %272 = arith.negf %271 : vector<5x64xf32>
    %273 = math.exp %272 : vector<5x64xf32>
    %cst_132 = arith.constant 1.000000e+00 : f32
    %274 = vector.broadcast %cst_132 : f32 to vector<5x64xf32>
    %275 = arith.addf %274, %273 : vector<5x64xf32>
    %276 = arith.divf %274, %275 : vector<5x64xf32>
    %277 = arith.mulf %269, %276 : vector<5x64xf32>
    %c1_133 = arith.constant 1 : index
    %c0_134 = arith.constant 0 : index
    %c0_135 = arith.constant 0 : index
    %278 = vector.load %arg5[%c1_133, %c0_134, %c0_135] : memref<2x64x32xf32, #tpu.memory_space<vmem>>, vector<1x64x32xf32>
    %279 = vector.shape_cast %278 : vector<1x64x32xf32> to vector<64x32xf32>
    %c1_136 = arith.constant 1 : index
    %c0_137 = arith.constant 0 : index
    %c0_138 = arith.constant 0 : index
    %280 = vector.load %arg4[%c1_136, %c0_137, %c0_138] : memref<2x1x32xf32, #tpu.memory_space<vmem>>, vector<1x1x32xf32>
    %281 = vector.shape_cast %280 : vector<1x1x32xf32> to vector<1x32xf32>
    %cst_139 = arith.constant dense<0.000000e+00> : vector<5x32xf32>
    %282 = tpu.matmul %277, %279, %cst_139 {dimension_numbers = #tpu.dot_dimension_numbers<[1], [0], [0], [1], [0, 0, 1, 1], [], []>} : vector<5x64xf32>, vector<64x32xf32>, vector<5x32xf32> -> vector<5x32xf32>
    %283 = vector.broadcast %281 : vector<1x32xf32> to vector<5x32xf32>
    %284 = arith.addf %282, %283 : vector<5x32xf32>
    %285 = arith.addf %236, %284 : vector<5x32xf32>
    %c0_140 = arith.constant 0 : index
    %c0_141 = arith.constant 0 : index
    %286 = vector.load %arg19[%c0_140, %c0_141] : memref<32x64xf32, #tpu.memory_space<vmem>>, vector<32x64xf32>
    %c0_142 = arith.constant 0 : index
    %c0_143 = arith.constant 0 : index
    %287 = vector.load %arg18[%c0_142, %c0_143] : memref<1x64xf32, #tpu.memory_space<vmem>>, vector<1x64xf32>
    %cst_144 = arith.constant dense<0.000000e+00> : vector<5x64xf32>
    %288 = tpu.matmul %285, %286, %cst_144 {dimension_numbers = #tpu.dot_dimension_numbers<[1], [0], [0], [1], [0, 0, 1, 1], [], []>} : vector<5x32xf32>, vector<32x64xf32>, vector<5x64xf32> -> vector<5x64xf32>
    %289 = vector.broadcast %287 : vector<1x64xf32> to vector<5x64xf32>
    %290 = arith.addf %288, %289 : vector<5x64xf32>
    %c0_145 = arith.constant 0 : index
    %c0_146 = arith.constant 0 : index
    %c0_147 = arith.constant 0 : index
    %291 = vector.load %arg20[%c0_145, %c0_146, %c0_147] : memref<1x5x64xf32, #tpu.memory_space<vmem>>, vector<1x5x64xf32>
    %292 = vector.shape_cast %291 : vector<1x5x64xf32> to vector<5x64xf32>
    %293 = vector.shape_cast %290 : vector<5x64xf32> to vector<1x5x64xf32>
    tpu.vector_store %arg20[%c0_145, %c0_146, %c0_147], %293 {strides = array<i32>} : memref<1x5x64xf32, #tpu.memory_space<vmem>>, vector<1x5x64xf32>,
    return
  }
  func.func @transform_0(%arg0: i32) -> (i32, i32, i32) {
    %c0_i32 = arith.constant 0 : i32
    %c0_i32_0 = arith.constant 0 : i32
    %c0_i32_1 = arith.constant 0 : i32
    return %arg0, %c0_i32, %c0_i32_0 : i32, i32, i32
  }
  func.func @transform_1(%arg0: i32) -> (i32, i32, i32) {
    %c0_i32 = arith.constant 0 : i32
    %c0_i32_0 = arith.constant 0 : i32
    %c0_i32_1 = arith.constant 0 : i32
    %c0_i32_2 = arith.constant 0 : i32
    return %c0_i32, %c0_i32_0, %c0_i32_1 : i32, i32, i32
  }
  func.func @transform_2(%arg0: i32) -> (i32, i32, i32) {
    %c0_i32 = arith.constant 0 : i32
    %c0_i32_0 = arith.constant 0 : i32
    %c0_i32_1 = arith.constant 0 : i32
    %c0_i32_2 = arith.constant 0 : i32
    return %c0_i32, %c0_i32_0, %c0_i32_1 : i32, i32, i32
  }
  func.func @transform_3(%arg0: i32) -> (i32, i32, i32) {
    %c0_i32 = arith.constant 0 : i32
    %c0_i32_0 = arith.constant 0 : i32
    %c0_i32_1 = arith.constant 0 : i32
    %c0_i32_2 = arith.constant 0 : i32
    return %c0_i32, %c0_i32_0, %c0_i32_1 : i32, i32, i32
  }
  func.func @transform_4(%arg0: i32) -> (i32, i32, i32) {
    %c0_i32 = arith.constant 0 : i32
    %c0_i32_0 = arith.constant 0 : i32
    %c0_i32_1 = arith.constant 0 : i32
    %c0_i32_2 = arith.constant 0 : i32
    return %c0_i32, %c0_i32_0, %c0_i32_1 : i32, i32, i32
  }
  func.func @transform_5(%arg0: i32) -> (i32, i32, i32) {
    %c0_i32 = arith.constant 0 : i32
    %c0_i32_0 = arith.constant 0 : i32
    %c0_i32_1 = arith.constant 0 : i32
    %c0_i32_2 = arith.constant 0 : i32
    return %c0_i32, %c0_i32_0, %c0_i32_1 : i32, i32, i32
  }
  func.func @transform_6(%arg0: i32) -> (i32, i32, i32) {
    %c0_i32 = arith.constant 0 : i32
    %c0_i32_0 = arith.constant 0 : i32
    %c0_i32_1 = arith.constant 0 : i32
    %c0_i32_2 = arith.constant 0 : i32
    return %c0_i32, %c0_i32_0, %c0_i32_1 : i32, i32, i32
  }
  func.func @transform_7(%arg0: i32) -> (i32, i32, i32) {
    %c0_i32 = arith.constant 0 : i32
    %c0_i32_0 = arith.constant 0 : i32
    %c0_i32_1 = arith.constant 0 : i32
    %c0_i32_2 = arith.constant 0 : i32
    return %c0_i32, %c0_i32_0, %c0_i32_1 : i32, i32, i32
  }
  func.func @transform_8(%arg0: i32) -> (i32, i32, i32) {
    %c0_i32 = arith.constant 0 : i32
    %c0_i32_0 = arith.constant 0 : i32
    %c0_i32_1 = arith.constant 0 : i32
    %c0_i32_2 = arith.constant 0 : i32
    return %c0_i32, %c0_i32_0, %c0_i32_1 : i32, i32, i32
  }
  func.func @transform_9(%arg0: i32) -> (i32, i32, i32) {
    %c0_i32 = arith.constant 0 : i32
    %c0_i32_0 = arith.constant 0 : i32
    %c0_i32_1 = arith.constant 0 : i32
    %c0_i32_2 = arith.constant 0 : i32
    return %c0_i32, %c0_i32_0, %c0_i32_1 : i32, i32, i32
  }
  func.func @transform_10(%arg0: i32) -> (i32, i32, i32) {
    %c0_i32 = arith.constant 0 : i32
    %c0_i32_0 = arith.constant 0 : i32
    %c0_i32_1 = arith.constant 0 : i32
    %c0_i32_2 = arith.constant 0 : i32
    return %c0_i32, %c0_i32_0, %c0_i32_1 : i32, i32, i32
  }
  func.func @transform_11(%arg0: i32) -> (i32, i32, i32) {
    %c0_i32 = arith.constant 0 : i32
    %c0_i32_0 = arith.constant 0 : i32
    %c0_i32_1 = arith.constant 0 : i32
    %c0_i32_2 = arith.constant 0 : i32
    return %c0_i32, %c0_i32_0, %c0_i32_1 : i32, i32, i32
  }
  func.func @transform_12(%arg0: i32) -> (i32, i32, i32) {
    %c0_i32 = arith.constant 0 : i32
    %c0_i32_0 = arith.constant 0 : i32
    %c0_i32_1 = arith.constant 0 : i32
    %c0_i32_2 = arith.constant 0 : i32
    return %c0_i32, %c0_i32_0, %c0_i32_1 : i32, i32, i32
  }
  func.func @transform_13(%arg0: i32) -> (i32, i32) {
    %c0_i32 = arith.constant 0 : i32
    %c0_i32_0 = arith.constant 0 : i32
    %c0_i32_1 = arith.constant 0 : i32
    return %c0_i32, %c0_i32_0 : i32, i32
  }
  func.func @transform_14(%arg0: i32) -> (i32, i32) {
    %c0_i32 = arith.constant 0 : i32
    %c0_i32_0 = arith.constant 0 : i32
    %c0_i32_1 = arith.constant 0 : i32
    return %c0_i32, %c0_i32_0 : i32, i32
  }
  func.func @transform_15(%arg0: i32) -> (i32, i32) {
    %c0_i32 = arith.constant 0 : i32
    %c0_i32_0 = arith.constant 0 : i32
    %c0_i32_1 = arith.constant 0 : i32
    return %c0_i32, %c0_i32_0 : i32, i32
  }
  func.func @transform_16(%arg0: i32) -> (i32, i32) {
    %c0_i32 = arith.constant 0 : i32
    %c0_i32_0 = arith.constant 0 : i32
    %c0_i32_1 = arith.constant 0 : i32
    return %c0_i32, %c0_i32_0 : i32, i32
  }
  func.func @transform_17(%arg0: i32) -> (i32, i32) {
    %c0_i32 = arith.constant 0 : i32
    %c0_i32_0 = arith.constant 0 : i32
    %c0_i32_1 = arith.constant 0 : i32
    return %c0_i32, %c0_i32_0 : i32, i32
  }
  func.func @transform_18(%arg0: i32) -> (i32, i32) {
    %c0_i32 = arith.constant 0 : i32
    %c0_i32_0 = arith.constant 0 : i32
    %c0_i32_1 = arith.constant 0 : i32
    return %c0_i32, %c0_i32_0 : i32, i32
  }
  func.func @transform_19(%arg0: i32) -> (i32, i32, i32) {
    %c0_i32 = arith.constant 0 : i32
    %c0_i32_0 = arith.constant 0 : i32
    %c0_i32_1 = arith.constant 0 : i32
    return %arg0, %c0_i32, %c0_i32_0 : i32, i32, i32
  }
}

module attributes {stable_mosaic.version = 11 : i64} {
  func.func @body(%arg0: i32, %arg1: memref<1x8x32xf32, #tpu.memory_space<vmem>>, %arg2: memref<1x1x8xf32, #tpu.memory_space<vmem>>, %arg3: memref<1x32xf32, #tpu.memory_space<vmem>>, %arg4: memref<1x32xf32, #tpu.memory_space<vmem>>, %arg5: memref<2x1x64xf32, #tpu.memory_space<vmem>>, %arg6: memref<2x32x64xf32, #tpu.memory_space<vmem>>, %arg7: memref<2x1x32xf32, #tpu.memory_space<vmem>>, %arg8: memref<2x64x32xf32, #tpu.memory_space<vmem>>, %arg9: memref<2x1x32xf32, #tpu.memory_space<vmem>>, %arg10: memref<2x1x32xf32, #tpu.memory_space<vmem>>, %arg11: memref<2x1x32xf32, #tpu.memory_space<vmem>>, %arg12: memref<2x1x32xf32, #tpu.memory_space<vmem>>, %arg13: memref<2x1x32xf32, #tpu.memory_space<vmem>>, %arg14: memref<2x32x32xf32, #tpu.memory_space<vmem>>, %arg15: memref<2x1x96xf32, #tpu.memory_space<vmem>>, %arg16: memref<2x32x96xf32, #tpu.memory_space<vmem>>, %arg17: memref<1x64xf32, #tpu.memory_space<vmem>>, %arg18: memref<32x64xf32, #tpu.memory_space<vmem>>, %arg19: memref<1x8x64xf32, #tpu.memory_space<vmem>>) attributes {dimension_semantics = [#tpu.dimension_semantics<parallel>], iteration_bounds = array<i64: 2>, scalar_prefetch = 0 : i64, scratch_operands = 0 : i64, tpu.core_type = #tpu.core_type<tc>, window_params = [{transform_indices = @transform_0, window_bounds = array<i64: 1, 8, 32>}, {transform_indices = @transform_1, window_bounds = array<i64: 1, 1, 8>}, {pipeline_mode = #tpu.pipeline_mode<synchronous>, transform_indices = @transform_2, window_bounds = array<i64: 1, 32>}, {pipeline_mode = #tpu.pipeline_mode<synchronous>, transform_indices = @transform_3, window_bounds = array<i64: 1, 32>}, {pipeline_mode = #tpu.pipeline_mode<synchronous>, transform_indices = @transform_4, window_bounds = array<i64: 2, 1, 64>}, {pipeline_mode = #tpu.pipeline_mode<synchronous>, transform_indices = @transform_5, window_bounds = array<i64: 2, 32, 64>}, {pipeline_mode = #tpu.pipeline_mode<synchronous>, transform_indices = @transform_6, window_bounds = array<i64: 2, 1, 32>}, {pipeline_mode = #tpu.pipeline_mode<synchronous>, transform_indices = @transform_7, window_bounds = array<i64: 2, 64, 32>}, {pipeline_mode = #tpu.pipeline_mode<synchronous>, transform_indices = @transform_8, window_bounds = array<i64: 2, 1, 32>}, {pipeline_mode = #tpu.pipeline_mode<synchronous>, transform_indices = @transform_9, window_bounds = array<i64: 2, 1, 32>}, {pipeline_mode = #tpu.pipeline_mode<synchronous>, transform_indices = @transform_10, window_bounds = array<i64: 2, 1, 32>}, {pipeline_mode = #tpu.pipeline_mode<synchronous>, transform_indices = @transform_11, window_bounds = array<i64: 2, 1, 32>}, {pipeline_mode = #tpu.pipeline_mode<synchronous>, transform_indices = @transform_12, window_bounds = array<i64: 2, 1, 32>}, {pipeline_mode = #tpu.pipeline_mode<synchronous>, transform_indices = @transform_13, window_bounds = array<i64: 2, 32, 32>}, {pipeline_mode = #tpu.pipeline_mode<synchronous>, transform_indices = @transform_14, window_bounds = array<i64: 2, 1, 96>}, {pipeline_mode = #tpu.pipeline_mode<synchronous>, transform_indices = @transform_15, window_bounds = array<i64: 2, 32, 96>}, {pipeline_mode = #tpu.pipeline_mode<synchronous>, transform_indices = @transform_16, window_bounds = array<i64: 1, 64>}, {pipeline_mode = #tpu.pipeline_mode<synchronous>, transform_indices = @transform_17, window_bounds = array<i64: 32, 64>}, {transform_indices = @transform_18, window_bounds = array<i64: 1, 8, 64>}]} {
    %c0 = arith.constant 0 : index
    %c0_0 = arith.constant 0 : index
    %c0_1 = arith.constant 0 : index
    %0 = vector.load %arg1[%c0, %c0_0, %c0_1] : memref<1x8x32xf32, #tpu.memory_space<vmem>>, vector<1x8x32xf32>
    %1 = vector.shape_cast %0 : vector<1x8x32xf32> to vector<8x32xf32>
    %c0_2 = arith.constant 0 : index
    %c0_3 = arith.constant 0 : index
    %c0_4 = arith.constant 0 : index
    %2 = vector.load %arg2[%c0_2, %c0_3, %c0_4] : memref<1x1x8xf32, #tpu.memory_space<vmem>>, vector<1x1x8xf32>
    %3 = vector.shape_cast %2 : vector<1x1x8xf32> to vector<1x8xf32>
    %4 = tpu.iota {dimensions = array<i32: 0>} : vector<8x8xi32>
    %5 = tpu.iota {dimensions = array<i32: 1>} : vector<8x8xi32>
    %6 = arith.cmpi sge, %4, %5 : vector<8x8xi32>
    %cst = arith.constant 0.000000e+00 : f32
    %cst_5 = arith.constant -1.000000e+09 : f32
    %7 = vector.broadcast %cst : f32 to vector<8x8xf32>
    %8 = vector.broadcast %cst_5 : f32 to vector<8x8xf32>
    %9 = arith.select %6, %7, %8 : vector<8x8xi1>, vector<8x8xf32>
    %cst_6 = arith.constant 1.000000e+00 : f32
    %10 = vector.broadcast %cst_6 : f32 to vector<1x8xf32>
    %11 = arith.subf %10, %3 : vector<1x8xf32>
    %cst_7 = arith.constant -1.000000e+09 : f32
    %12 = vector.broadcast %cst_7 : f32 to vector<1x8xf32>
    %13 = arith.mulf %11, %12 : vector<1x8xf32>
    %14 = vector.broadcast %13 : vector<1x8xf32> to vector<8x8xf32>
    %15 = arith.addf %9, %14 : vector<8x8xf32>
    %c0_8 = arith.constant 0 : index
    %c0_9 = arith.constant 0 : index
    %c0_10 = arith.constant 0 : index
    %16 = vector.load %arg10[%c0_8, %c0_9, %c0_10] : memref<2x1x32xf32, #tpu.memory_space<vmem>>, vector<1x1x32xf32>
    %17 = vector.shape_cast %16 : vector<1x1x32xf32> to vector<1x32xf32>
    %c0_11 = arith.constant 0 : index
    %c0_12 = arith.constant 0 : index
    %c0_13 = arith.constant 0 : index
    %18 = vector.load %arg9[%c0_11, %c0_12, %c0_13] : memref<2x1x32xf32, #tpu.memory_space<vmem>>, vector<1x1x32xf32>
    %19 = vector.shape_cast %18 : vector<1x1x32xf32> to vector<1x32xf32>
    %cst_14 = arith.constant dense<0.000000e+00> : vector<8xf32>
    %20 = vector.multi_reduction <add>, %1, %cst_14 [1] : vector<8x32xf32> to vector<8xf32>
    %21 = vector.shape_cast %20 : vector<8xf32> to vector<8x1xf32>
    %cst_15 = arith.constant 3.200000e+01 : f32
    %22 = vector.broadcast %cst_15 : f32 to vector<8x1xf32>
    %23 = arith.divf %21, %22 : vector<8x1xf32>
    %24 = vector.broadcast %23 : vector<8x1xf32> to vector<8x32xf32>
    %25 = arith.subf %1, %24 : vector<8x32xf32>
    %26 = arith.mulf %25, %25 : vector<8x32xf32>
    %cst_16 = arith.constant dense<0.000000e+00> : vector<8xf32>
    %27 = vector.multi_reduction <add>, %26, %cst_16 [1] : vector<8x32xf32> to vector<8xf32>
    %28 = vector.shape_cast %27 : vector<8xf32> to vector<8x1xf32>
    %cst_17 = arith.constant 3.200000e+01 : f32
    %29 = vector.broadcast %cst_17 : f32 to vector<8x1xf32>
    %30 = arith.divf %28, %29 : vector<8x1xf32>
    %31 = vector.broadcast %23 : vector<8x1xf32> to vector<8x32xf32>
    %32 = arith.subf %1, %31 : vector<8x32xf32>
    %cst_18 = arith.constant 9.99999974E-6 : f32
    %33 = vector.broadcast %cst_18 : f32 to vector<8x1xf32>
    %34 = arith.addf %30, %33 : vector<8x1xf32>
    %35 = math.rsqrt %34 : vector<8x1xf32>
    %36 = vector.broadcast %35 : vector<8x1xf32> to vector<8x32xf32>
    %37 = arith.mulf %32, %36 : vector<8x32xf32>
    %38 = vector.broadcast %17 : vector<1x32xf32> to vector<8x32xf32>
    %39 = arith.mulf %37, %38 : vector<8x32xf32>
    %40 = vector.broadcast %19 : vector<1x32xf32> to vector<8x32xf32>
    %41 = arith.addf %39, %40 : vector<8x32xf32>
    %c0_19 = arith.constant 0 : index
    %c0_20 = arith.constant 0 : index
    %c0_21 = arith.constant 0 : index
    %42 = vector.load %arg16[%c0_19, %c0_20, %c0_21] : memref<2x32x96xf32, #tpu.memory_space<vmem>>, vector<1x32x96xf32>
    %43 = vector.shape_cast %42 : vector<1x32x96xf32> to vector<32x96xf32>
    %c0_22 = arith.constant 0 : index
    %c0_23 = arith.constant 0 : index
    %c0_24 = arith.constant 0 : index
    %44 = vector.load %arg15[%c0_22, %c0_23, %c0_24] : memref<2x1x96xf32, #tpu.memory_space<vmem>>, vector<1x1x96xf32>
    %45 = vector.shape_cast %44 : vector<1x1x96xf32> to vector<1x96xf32>
    %cst_25 = arith.constant dense<0.000000e+00> : vector<8x96xf32>
    %46 = tpu.matmul %41, %43, %cst_25 {dimension_numbers = #tpu.dot_dimension_numbers<[1], [0], [0], [1], [0, 0, 1, 1], [], []>} : vector<8x32xf32>, vector<32x96xf32>, vector<8x96xf32> -> vector<8x96xf32>
    %47 = vector.broadcast %45 : vector<1x96xf32> to vector<8x96xf32>
    %48 = arith.addf %46, %47 : vector<8x96xf32>
    %c0_26 = arith.constant 0 : index
    %c0_27 = arith.constant 0 : index
    %c0_28 = arith.constant 0 : index
    %49 = vector.load %arg14[%c0_26, %c0_27, %c0_28] : memref<2x32x32xf32, #tpu.memory_space<vmem>>, vector<1x32x32xf32>
    %50 = vector.shape_cast %49 : vector<1x32x32xf32> to vector<32x32xf32>
    %51 = vector.extract_strided_slice %48 {offsets = [0, 0], sizes = [8, 16], strides = [1, 1]} : vector<8x96xf32> to vector<8x16xf32>
    %52 = vector.extract_strided_slice %48 {offsets = [0, 32], sizes = [8, 16], strides = [1, 1]} : vector<8x96xf32> to vector<8x16xf32>
    %53 = vector.extract_strided_slice %48 {offsets = [0, 64], sizes = [8, 16], strides = [1, 1]} : vector<8x96xf32> to vector<8x16xf32>
    %cst_29 = arith.constant dense<0.000000e+00> : vector<8x8xf32>
    %54 = tpu.matmul %51, %52, %cst_29 {dimension_numbers = #tpu.dot_dimension_numbers<[1], [1], [0], [0], [0, 0, 1, 0], [], []>} : vector<8x16xf32>, vector<8x16xf32>, vector<8x8xf32> -> vector<8x8xf32>
    %cst_30 = arith.constant 2.500000e-01 : f32
    %55 = vector.broadcast %cst_30 : f32 to vector<8x8xf32>
    %56 = arith.mulf %54, %55 : vector<8x8xf32>
    %57 = arith.addf %56, %15 : vector<8x8xf32>
    %cst_31 = arith.constant dense<0xFF800000> : vector<8xf32>
    %58 = vector.multi_reduction <maximumf>, %57, %cst_31 [1] : vector<8x8xf32> to vector<8xf32>
    %59 = vector.shape_cast %58 : vector<8xf32> to vector<8x1xf32>
    %60 = vector.broadcast %59 : vector<8x1xf32> to vector<8x8xf32>
    %61 = arith.subf %57, %60 : vector<8x8xf32>
    %62 = math.exp %61 : vector<8x8xf32>
    %cst_32 = arith.constant dense<0.000000e+00> : vector<8xf32>
    %63 = vector.multi_reduction <add>, %62, %cst_32 [1] : vector<8x8xf32> to vector<8xf32>
    %64 = vector.shape_cast %63 : vector<8xf32> to vector<8x1xf32>
    %65 = tpu.reciprocal %64 {approx = true} : vector<8x1xf32> -> vector<8x1xf32>
    %66 = vector.broadcast %65 : vector<8x1xf32> to vector<8x8xf32>
    %67 = arith.mulf %62, %66 : vector<8x8xf32>
    %cst_33 = arith.constant dense<0.000000e+00> : vector<8x16xf32>
    %68 = tpu.matmul %67, %53, %cst_33 {dimension_numbers = #tpu.dot_dimension_numbers<[1], [0], [0], [1], [0, 0, 1, 1], [], []>} : vector<8x8xf32>, vector<8x16xf32>, vector<8x16xf32> -> vector<8x16xf32>
    %69 = vector.extract_strided_slice %50 {offsets = [0, 0], sizes = [16, 32], strides = [1, 1]} : vector<32x32xf32> to vector<16x32xf32>
    %cst_34 = arith.constant dense<0.000000e+00> : vector<8x32xf32>
    %70 = tpu.matmul %68, %69, %cst_34 {dimension_numbers = #tpu.dot_dimension_numbers<[1], [0], [0], [1], [0, 0, 1, 1], [], []>} : vector<8x16xf32>, vector<16x32xf32>, vector<8x32xf32> -> vector<8x32xf32>
    %71 = vector.extract_strided_slice %48 {offsets = [0, 16], sizes = [8, 16], strides = [1, 1]} : vector<8x96xf32> to vector<8x16xf32>
    %72 = vector.extract_strided_slice %48 {offsets = [0, 48], sizes = [8, 16], strides = [1, 1]} : vector<8x96xf32> to vector<8x16xf32>
    %73 = vector.extract_strided_slice %48 {offsets = [0, 80], sizes = [8, 16], strides = [1, 1]} : vector<8x96xf32> to vector<8x16xf32>
    %cst_35 = arith.constant dense<0.000000e+00> : vector<8x8xf32>
    %74 = tpu.matmul %71, %72, %cst_35 {dimension_numbers = #tpu.dot_dimension_numbers<[1], [1], [0], [0], [0, 0, 1, 0], [], []>} : vector<8x16xf32>, vector<8x16xf32>, vector<8x8xf32> -> vector<8x8xf32>
    %cst_36 = arith.constant 2.500000e-01 : f32
    %75 = vector.broadcast %cst_36 : f32 to vector<8x8xf32>
    %76 = arith.mulf %74, %75 : vector<8x8xf32>
    %77 = arith.addf %76, %15 : vector<8x8xf32>
    %cst_37 = arith.constant dense<0xFF800000> : vector<8xf32>
    %78 = vector.multi_reduction <maximumf>, %77, %cst_37 [1] : vector<8x8xf32> to vector<8xf32>
    %79 = vector.shape_cast %78 : vector<8xf32> to vector<8x1xf32>
    %80 = vector.broadcast %79 : vector<8x1xf32> to vector<8x8xf32>
    %81 = arith.subf %77, %80 : vector<8x8xf32>
    %82 = math.exp %81 : vector<8x8xf32>
    %cst_38 = arith.constant dense<0.000000e+00> : vector<8xf32>
    %83 = vector.multi_reduction <add>, %82, %cst_38 [1] : vector<8x8xf32> to vector<8xf32>
    %84 = vector.shape_cast %83 : vector<8xf32> to vector<8x1xf32>
    %85 = tpu.reciprocal %84 {approx = true} : vector<8x1xf32> -> vector<8x1xf32>
    %86 = vector.broadcast %85 : vector<8x1xf32> to vector<8x8xf32>
    %87 = arith.mulf %82, %86 : vector<8x8xf32>
    %cst_39 = arith.constant dense<0.000000e+00> : vector<8x16xf32>
    %88 = tpu.matmul %87, %73, %cst_39 {dimension_numbers = #tpu.dot_dimension_numbers<[1], [0], [0], [1], [0, 0, 1, 1], [], []>} : vector<8x8xf32>, vector<8x16xf32>, vector<8x16xf32> -> vector<8x16xf32>
    %89 = vector.extract_strided_slice %50 {offsets = [16, 0], sizes = [16, 32], strides = [1, 1]} : vector<32x32xf32> to vector<16x32xf32>
    %cst_40 = arith.constant dense<0.000000e+00> : vector<8x32xf32>
    %90 = tpu.matmul %88, %89, %cst_40 {dimension_numbers = #tpu.dot_dimension_numbers<[1], [0], [0], [1], [0, 0, 1, 1], [], []>} : vector<8x16xf32>, vector<16x32xf32>, vector<8x32xf32> -> vector<8x32xf32>
    %91 = arith.addf %70, %90 : vector<8x32xf32>
    %c0_41 = arith.constant 0 : index
    %c0_42 = arith.constant 0 : index
    %c0_43 = arith.constant 0 : index
    %92 = vector.load %arg13[%c0_41, %c0_42, %c0_43] : memref<2x1x32xf32, #tpu.memory_space<vmem>>, vector<1x1x32xf32>
    %93 = vector.shape_cast %92 : vector<1x1x32xf32> to vector<1x32xf32>
    %94 = vector.broadcast %93 : vector<1x32xf32> to vector<8x32xf32>
    %95 = arith.addf %91, %94 : vector<8x32xf32>
    %96 = arith.addf %1, %95 : vector<8x32xf32>
    %c0_44 = arith.constant 0 : index
    %c0_45 = arith.constant 0 : index
    %c0_46 = arith.constant 0 : index
    %97 = vector.load %arg12[%c0_44, %c0_45, %c0_46] : memref<2x1x32xf32, #tpu.memory_space<vmem>>, vector<1x1x32xf32>
    %98 = vector.shape_cast %97 : vector<1x1x32xf32> to vector<1x32xf32>
    %c0_47 = arith.constant 0 : index
    %c0_48 = arith.constant 0 : index
    %c0_49 = arith.constant 0 : index
    %99 = vector.load %arg11[%c0_47, %c0_48, %c0_49] : memref<2x1x32xf32, #tpu.memory_space<vmem>>, vector<1x1x32xf32>
    %100 = vector.shape_cast %99 : vector<1x1x32xf32> to vector<1x32xf32>
    %cst_50 = arith.constant dense<0.000000e+00> : vector<8xf32>
    %101 = vector.multi_reduction <add>, %96, %cst_50 [1] : vector<8x32xf32> to vector<8xf32>
    %102 = vector.shape_cast %101 : vector<8xf32> to vector<8x1xf32>
    %cst_51 = arith.constant 3.200000e+01 : f32
    %103 = vector.broadcast %cst_51 : f32 to vector<8x1xf32>
    %104 = arith.divf %102, %103 : vector<8x1xf32>
    %105 = vector.broadcast %104 : vector<8x1xf32> to vector<8x32xf32>
    %106 = arith.subf %96, %105 : vector<8x32xf32>
    %107 = arith.mulf %106, %106 : vector<8x32xf32>
    %cst_52 = arith.constant dense<0.000000e+00> : vector<8xf32>
    %108 = vector.multi_reduction <add>, %107, %cst_52 [1] : vector<8x32xf32> to vector<8xf32>
    %109 = vector.shape_cast %108 : vector<8xf32> to vector<8x1xf32>
    %cst_53 = arith.constant 3.200000e+01 : f32
    %110 = vector.broadcast %cst_53 : f32 to vector<8x1xf32>
    %111 = arith.divf %109, %110 : vector<8x1xf32>
    %112 = vector.broadcast %104 : vector<8x1xf32> to vector<8x32xf32>
    %113 = arith.subf %96, %112 : vector<8x32xf32>
    %cst_54 = arith.constant 9.99999974E-6 : f32
    %114 = vector.broadcast %cst_54 : f32 to vector<8x1xf32>
    %115 = arith.addf %111, %114 : vector<8x1xf32>
    %116 = math.rsqrt %115 : vector<8x1xf32>
    %117 = vector.broadcast %116 : vector<8x1xf32> to vector<8x32xf32>
    %118 = arith.mulf %113, %117 : vector<8x32xf32>
    %119 = vector.broadcast %98 : vector<1x32xf32> to vector<8x32xf32>
    %120 = arith.mulf %118, %119 : vector<8x32xf32>
    %121 = vector.broadcast %100 : vector<1x32xf32> to vector<8x32xf32>
    %122 = arith.addf %120, %121 : vector<8x32xf32>
    %c0_55 = arith.constant 0 : index
    %c0_56 = arith.constant 0 : index
    %c0_57 = arith.constant 0 : index
    %123 = vector.load %arg6[%c0_55, %c0_56, %c0_57] : memref<2x32x64xf32, #tpu.memory_space<vmem>>, vector<1x32x64xf32>
    %124 = vector.shape_cast %123 : vector<1x32x64xf32> to vector<32x64xf32>
    %c0_58 = arith.constant 0 : index
    %c0_59 = arith.constant 0 : index
    %c0_60 = arith.constant 0 : index
    %125 = vector.load %arg5[%c0_58, %c0_59, %c0_60] : memref<2x1x64xf32, #tpu.memory_space<vmem>>, vector<1x1x64xf32>
    %126 = vector.shape_cast %125 : vector<1x1x64xf32> to vector<1x64xf32>
    %cst_61 = arith.constant dense<0.000000e+00> : vector<8x64xf32>
    %127 = tpu.matmul %122, %124, %cst_61 {dimension_numbers = #tpu.dot_dimension_numbers<[1], [0], [0], [1], [0, 0, 1, 1], [], []>} : vector<8x32xf32>, vector<32x64xf32>, vector<8x64xf32> -> vector<8x64xf32>
    %128 = vector.broadcast %126 : vector<1x64xf32> to vector<8x64xf32>
    %129 = arith.addf %127, %128 : vector<8x64xf32>
    %cst_62 = arith.constant 1.702000e+00 : f32
    %130 = vector.broadcast %cst_62 : f32 to vector<8x64xf32>
    %131 = arith.mulf %130, %129 : vector<8x64xf32>
    %132 = arith.negf %131 : vector<8x64xf32>
    %133 = math.exp %132 : vector<8x64xf32>
    %cst_63 = arith.constant 1.000000e+00 : f32
    %134 = vector.broadcast %cst_63 : f32 to vector<8x64xf32>
    %135 = arith.addf %134, %133 : vector<8x64xf32>
    %136 = arith.divf %134, %135 : vector<8x64xf32>
    %137 = arith.mulf %129, %136 : vector<8x64xf32>
    %c0_64 = arith.constant 0 : index
    %c0_65 = arith.constant 0 : index
    %c0_66 = arith.constant 0 : index
    %138 = vector.load %arg8[%c0_64, %c0_65, %c0_66] : memref<2x64x32xf32, #tpu.memory_space<vmem>>, vector<1x64x32xf32>
    %139 = vector.shape_cast %138 : vector<1x64x32xf32> to vector<64x32xf32>
    %c0_67 = arith.constant 0 : index
    %c0_68 = arith.constant 0 : index
    %c0_69 = arith.constant 0 : index
    %140 = vector.load %arg7[%c0_67, %c0_68, %c0_69] : memref<2x1x32xf32, #tpu.memory_space<vmem>>, vector<1x1x32xf32>
    %141 = vector.shape_cast %140 : vector<1x1x32xf32> to vector<1x32xf32>
    %cst_70 = arith.constant dense<0.000000e+00> : vector<8x32xf32>
    %142 = tpu.matmul %137, %139, %cst_70 {dimension_numbers = #tpu.dot_dimension_numbers<[1], [0], [0], [1], [0, 0, 1, 1], [], []>} : vector<8x64xf32>, vector<64x32xf32>, vector<8x32xf32> -> vector<8x32xf32>
    %143 = vector.broadcast %141 : vector<1x32xf32> to vector<8x32xf32>
    %144 = arith.addf %142, %143 : vector<8x32xf32>
    %145 = arith.addf %96, %144 : vector<8x32xf32>
    %c1 = arith.constant 1 : index
    %c0_71 = arith.constant 0 : index
    %c0_72 = arith.constant 0 : index
    %146 = vector.load %arg10[%c1, %c0_71, %c0_72] : memref<2x1x32xf32, #tpu.memory_space<vmem>>, vector<1x1x32xf32>
    %147 = vector.shape_cast %146 : vector<1x1x32xf32> to vector<1x32xf32>
    %c1_73 = arith.constant 1 : index
    %c0_74 = arith.constant 0 : index
    %c0_75 = arith.constant 0 : index
    %148 = vector.load %arg9[%c1_73, %c0_74, %c0_75] : memref<2x1x32xf32, #tpu.memory_space<vmem>>, vector<1x1x32xf32>
    %149 = vector.shape_cast %148 : vector<1x1x32xf32> to vector<1x32xf32>
    %cst_76 = arith.constant dense<0.000000e+00> : vector<8xf32>
    %150 = vector.multi_reduction <add>, %145, %cst_76 [1] : vector<8x32xf32> to vector<8xf32>
    %151 = vector.shape_cast %150 : vector<8xf32> to vector<8x1xf32>
    %cst_77 = arith.constant 3.200000e+01 : f32
    %152 = vector.broadcast %cst_77 : f32 to vector<8x1xf32>
    %153 = arith.divf %151, %152 : vector<8x1xf32>
    %154 = vector.broadcast %153 : vector<8x1xf32> to vector<8x32xf32>
    %155 = arith.subf %145, %154 : vector<8x32xf32>
    %156 = arith.mulf %155, %155 : vector<8x32xf32>
    %cst_78 = arith.constant dense<0.000000e+00> : vector<8xf32>
    %157 = vector.multi_reduction <add>, %156, %cst_78 [1] : vector<8x32xf32> to vector<8xf32>
    %158 = vector.shape_cast %157 : vector<8xf32> to vector<8x1xf32>
    %cst_79 = arith.constant 3.200000e+01 : f32
    %159 = vector.broadcast %cst_79 : f32 to vector<8x1xf32>
    %160 = arith.divf %158, %159 : vector<8x1xf32>
    %161 = vector.broadcast %153 : vector<8x1xf32> to vector<8x32xf32>
    %162 = arith.subf %145, %161 : vector<8x32xf32>
    %cst_80 = arith.constant 9.99999974E-6 : f32
    %163 = vector.broadcast %cst_80 : f32 to vector<8x1xf32>
    %164 = arith.addf %160, %163 : vector<8x1xf32>
    %165 = math.rsqrt %164 : vector<8x1xf32>
    %166 = vector.broadcast %165 : vector<8x1xf32> to vector<8x32xf32>
    %167 = arith.mulf %162, %166 : vector<8x32xf32>
    %168 = vector.broadcast %147 : vector<1x32xf32> to vector<8x32xf32>
    %169 = arith.mulf %167, %168 : vector<8x32xf32>
    %170 = vector.broadcast %149 : vector<1x32xf32> to vector<8x32xf32>
    %171 = arith.addf %169, %170 : vector<8x32xf32>
    %c1_81 = arith.constant 1 : index
    %c0_82 = arith.constant 0 : index
    %c0_83 = arith.constant 0 : index
    %172 = vector.load %arg16[%c1_81, %c0_82, %c0_83] : memref<2x32x96xf32, #tpu.memory_space<vmem>>, vector<1x32x96xf32>
    %173 = vector.shape_cast %172 : vector<1x32x96xf32> to vector<32x96xf32>
    %c1_84 = arith.constant 1 : index
    %c0_85 = arith.constant 0 : index
    %c0_86 = arith.constant 0 : index
    %174 = vector.load %arg15[%c1_84, %c0_85, %c0_86] : memref<2x1x96xf32, #tpu.memory_space<vmem>>, vector<1x1x96xf32>
    %175 = vector.shape_cast %174 : vector<1x1x96xf32> to vector<1x96xf32>
    %cst_87 = arith.constant dense<0.000000e+00> : vector<8x96xf32>
    %176 = tpu.matmul %171, %173, %cst_87 {dimension_numbers = #tpu.dot_dimension_numbers<[1], [0], [0], [1], [0, 0, 1, 1], [], []>} : vector<8x32xf32>, vector<32x96xf32>, vector<8x96xf32> -> vector<8x96xf32>
    %177 = vector.broadcast %175 : vector<1x96xf32> to vector<8x96xf32>
    %178 = arith.addf %176, %177 : vector<8x96xf32>
    %c1_88 = arith.constant 1 : index
    %c0_89 = arith.constant 0 : index
    %c0_90 = arith.constant 0 : index
    %179 = vector.load %arg14[%c1_88, %c0_89, %c0_90] : memref<2x32x32xf32, #tpu.memory_space<vmem>>, vector<1x32x32xf32>
    %180 = vector.shape_cast %179 : vector<1x32x32xf32> to vector<32x32xf32>
    %181 = vector.extract_strided_slice %178 {offsets = [0, 0], sizes = [8, 16], strides = [1, 1]} : vector<8x96xf32> to vector<8x16xf32>
    %182 = vector.extract_strided_slice %178 {offsets = [0, 32], sizes = [8, 16], strides = [1, 1]} : vector<8x96xf32> to vector<8x16xf32>
    %183 = vector.extract_strided_slice %178 {offsets = [0, 64], sizes = [8, 16], strides = [1, 1]} : vector<8x96xf32> to vector<8x16xf32>
    %cst_91 = arith.constant dense<0.000000e+00> : vector<8x8xf32>
    %184 = tpu.matmul %181, %182, %cst_91 {dimension_numbers = #tpu.dot_dimension_numbers<[1], [1], [0], [0], [0, 0, 1, 0], [], []>} : vector<8x16xf32>, vector<8x16xf32>, vector<8x8xf32> -> vector<8x8xf32>
    %cst_92 = arith.constant 2.500000e-01 : f32
    %185 = vector.broadcast %cst_92 : f32 to vector<8x8xf32>
    %186 = arith.mulf %184, %185 : vector<8x8xf32>
    %187 = arith.addf %186, %15 : vector<8x8xf32>
    %cst_93 = arith.constant dense<0xFF800000> : vector<8xf32>
    %188 = vector.multi_reduction <maximumf>, %187, %cst_93 [1] : vector<8x8xf32> to vector<8xf32>
    %189 = vector.shape_cast %188 : vector<8xf32> to vector<8x1xf32>
    %190 = vector.broadcast %189 : vector<8x1xf32> to vector<8x8xf32>
    %191 = arith.subf %187, %190 : vector<8x8xf32>
    %192 = math.exp %191 : vector<8x8xf32>
    %cst_94 = arith.constant dense<0.000000e+00> : vector<8xf32>
    %193 = vector.multi_reduction <add>, %192, %cst_94 [1] : vector<8x8xf32> to vector<8xf32>
    %194 = vector.shape_cast %193 : vector<8xf32> to vector<8x1xf32>
    %195 = tpu.reciprocal %194 {approx = true} : vector<8x1xf32> -> vector<8x1xf32>
    %196 = vector.broadcast %195 : vector<8x1xf32> to vector<8x8xf32>
    %197 = arith.mulf %192, %196 : vector<8x8xf32>
    %cst_95 = arith.constant dense<0.000000e+00> : vector<8x16xf32>
    %198 = tpu.matmul %197, %183, %cst_95 {dimension_numbers = #tpu.dot_dimension_numbers<[1], [0], [0], [1], [0, 0, 1, 1], [], []>} : vector<8x8xf32>, vector<8x16xf32>, vector<8x16xf32> -> vector<8x16xf32>
    %199 = vector.extract_strided_slice %180 {offsets = [0, 0], sizes = [16, 32], strides = [1, 1]} : vector<32x32xf32> to vector<16x32xf32>
    %cst_96 = arith.constant dense<0.000000e+00> : vector<8x32xf32>
    %200 = tpu.matmul %198, %199, %cst_96 {dimension_numbers = #tpu.dot_dimension_numbers<[1], [0], [0], [1], [0, 0, 1, 1], [], []>} : vector<8x16xf32>, vector<16x32xf32>, vector<8x32xf32> -> vector<8x32xf32>
    %201 = vector.extract_strided_slice %178 {offsets = [0, 16], sizes = [8, 16], strides = [1, 1]} : vector<8x96xf32> to vector<8x16xf32>
    %202 = vector.extract_strided_slice %178 {offsets = [0, 48], sizes = [8, 16], strides = [1, 1]} : vector<8x96xf32> to vector<8x16xf32>
    %203 = vector.extract_strided_slice %178 {offsets = [0, 80], sizes = [8, 16], strides = [1, 1]} : vector<8x96xf32> to vector<8x16xf32>
    %cst_97 = arith.constant dense<0.000000e+00> : vector<8x8xf32>
    %204 = tpu.matmul %201, %202, %cst_97 {dimension_numbers = #tpu.dot_dimension_numbers<[1], [1], [0], [0], [0, 0, 1, 0], [], []>} : vector<8x16xf32>, vector<8x16xf32>, vector<8x8xf32> -> vector<8x8xf32>
    %cst_98 = arith.constant 2.500000e-01 : f32
    %205 = vector.broadcast %cst_98 : f32 to vector<8x8xf32>
    %206 = arith.mulf %204, %205 : vector<8x8xf32>
    %207 = arith.addf %206, %15 : vector<8x8xf32>
    %cst_99 = arith.constant dense<0xFF800000> : vector<8xf32>
    %208 = vector.multi_reduction <maximumf>, %207, %cst_99 [1] : vector<8x8xf32> to vector<8xf32>
    %209 = vector.shape_cast %208 : vector<8xf32> to vector<8x1xf32>
    %210 = vector.broadcast %209 : vector<8x1xf32> to vector<8x8xf32>
    %211 = arith.subf %207, %210 : vector<8x8xf32>
    %212 = math.exp %211 : vector<8x8xf32>
    %cst_100 = arith.constant dense<0.000000e+00> : vector<8xf32>
    %213 = vector.multi_reduction <add>, %212, %cst_100 [1] : vector<8x8xf32> to vector<8xf32>
    %214 = vector.shape_cast %213 : vector<8xf32> to vector<8x1xf32>
    %215 = tpu.reciprocal %214 {approx = true} : vector<8x1xf32> -> vector<8x1xf32>
    %216 = vector.broadcast %215 : vector<8x1xf32> to vector<8x8xf32>
    %217 = arith.mulf %212, %216 : vector<8x8xf32>
    %cst_101 = arith.constant dense<0.000000e+00> : vector<8x16xf32>
    %218 = tpu.matmul %217, %203, %cst_101 {dimension_numbers = #tpu.dot_dimension_numbers<[1], [0], [0], [1], [0, 0, 1, 1], [], []>} : vector<8x8xf32>, vector<8x16xf32>, vector<8x16xf32> -> vector<8x16xf32>
    %219 = vector.extract_strided_slice %180 {offsets = [16, 0], sizes = [16, 32], strides = [1, 1]} : vector<32x32xf32> to vector<16x32xf32>
    %cst_102 = arith.constant dense<0.000000e+00> : vector<8x32xf32>
    %220 = tpu.matmul %218, %219, %cst_102 {dimension_numbers = #tpu.dot_dimension_numbers<[1], [0], [0], [1], [0, 0, 1, 1], [], []>} : vector<8x16xf32>, vector<16x32xf32>, vector<8x32xf32> -> vector<8x32xf32>
    %221 = arith.addf %200, %220 : vector<8x32xf32>
    %c1_103 = arith.constant 1 : index
    %c0_104 = arith.constant 0 : index
    %c0_105 = arith.constant 0 : index
    %222 = vector.load %arg13[%c1_103, %c0_104, %c0_105] : memref<2x1x32xf32, #tpu.memory_space<vmem>>, vector<1x1x32xf32>
    %223 = vector.shape_cast %222 : vector<1x1x32xf32> to vector<1x32xf32>
    %224 = vector.broadcast %223 : vector<1x32xf32> to vector<8x32xf32>
    %225 = arith.addf %221, %224 : vector<8x32xf32>
    %226 = arith.addf %145, %225 : vector<8x32xf32>
    %c1_106 = arith.constant 1 : index
    %c0_107 = arith.constant 0 : index
    %c0_108 = arith.constant 0 : index
    %227 = vector.load %arg12[%c1_106, %c0_107, %c0_108] : memref<2x1x32xf32, #tpu.memory_space<vmem>>, vector<1x1x32xf32>
    %228 = vector.shape_cast %227 : vector<1x1x32xf32> to vector<1x32xf32>
    %c1_109 = arith.constant 1 : index
    %c0_110 = arith.constant 0 : index
    %c0_111 = arith.constant 0 : index
    %229 = vector.load %arg11[%c1_109, %c0_110, %c0_111] : memref<2x1x32xf32, #tpu.memory_space<vmem>>, vector<1x1x32xf32>
    %230 = vector.shape_cast %229 : vector<1x1x32xf32> to vector<1x32xf32>
    %cst_112 = arith.constant dense<0.000000e+00> : vector<8xf32>
    %231 = vector.multi_reduction <add>, %226, %cst_112 [1] : vector<8x32xf32> to vector<8xf32>
    %232 = vector.shape_cast %231 : vector<8xf32> to vector<8x1xf32>
    %cst_113 = arith.constant 3.200000e+01 : f32
    %233 = vector.broadcast %cst_113 : f32 to vector<8x1xf32>
    %234 = arith.divf %232, %233 : vector<8x1xf32>
    %235 = vector.broadcast %234 : vector<8x1xf32> to vector<8x32xf32>
    %236 = arith.subf %226, %235 : vector<8x32xf32>
    %237 = arith.mulf %236, %236 : vector<8x32xf32>
    %cst_114 = arith.constant dense<0.000000e+00> : vector<8xf32>
    %238 = vector.multi_reduction <add>, %237, %cst_114 [1] : vector<8x32xf32> to vector<8xf32>
    %239 = vector.shape_cast %238 : vector<8xf32> to vector<8x1xf32>
    %cst_115 = arith.constant 3.200000e+01 : f32
    %240 = vector.broadcast %cst_115 : f32 to vector<8x1xf32>
    %241 = arith.divf %239, %240 : vector<8x1xf32>
    %242 = vector.broadcast %234 : vector<8x1xf32> to vector<8x32xf32>
    %243 = arith.subf %226, %242 : vector<8x32xf32>
    %cst_116 = arith.constant 9.99999974E-6 : f32
    %244 = vector.broadcast %cst_116 : f32 to vector<8x1xf32>
    %245 = arith.addf %241, %244 : vector<8x1xf32>
    %246 = math.rsqrt %245 : vector<8x1xf32>
    %247 = vector.broadcast %246 : vector<8x1xf32> to vector<8x32xf32>
    %248 = arith.mulf %243, %247 : vector<8x32xf32>
    %249 = vector.broadcast %228 : vector<1x32xf32> to vector<8x32xf32>
    %250 = arith.mulf %248, %249 : vector<8x32xf32>
    %251 = vector.broadcast %230 : vector<1x32xf32> to vector<8x32xf32>
    %252 = arith.addf %250, %251 : vector<8x32xf32>
    %c1_117 = arith.constant 1 : index
    %c0_118 = arith.constant 0 : index
    %c0_119 = arith.constant 0 : index
    %253 = vector.load %arg6[%c1_117, %c0_118, %c0_119] : memref<2x32x64xf32, #tpu.memory_space<vmem>>, vector<1x32x64xf32>
    %254 = vector.shape_cast %253 : vector<1x32x64xf32> to vector<32x64xf32>
    %c1_120 = arith.constant 1 : index
    %c0_121 = arith.constant 0 : index
    %c0_122 = arith.constant 0 : index
    %255 = vector.load %arg5[%c1_120, %c0_121, %c0_122] : memref<2x1x64xf32, #tpu.memory_space<vmem>>, vector<1x1x64xf32>
    %256 = vector.shape_cast %255 : vector<1x1x64xf32> to vector<1x64xf32>
    %cst_123 = arith.constant dense<0.000000e+00> : vector<8x64xf32>
    %257 = tpu.matmul %252, %254, %cst_123 {dimension_numbers = #tpu.dot_dimension_numbers<[1], [0], [0], [1], [0, 0, 1, 1], [], []>} : vector<8x32xf32>, vector<32x64xf32>, vector<8x64xf32> -> vector<8x64xf32>
    %258 = vector.broadcast %256 : vector<1x64xf32> to vector<8x64xf32>
    %259 = arith.addf %257, %258 : vector<8x64xf32>
    %cst_124 = arith.constant 1.702000e+00 : f32
    %260 = vector.broadcast %cst_124 : f32 to vector<8x64xf32>
    %261 = arith.mulf %260, %259 : vector<8x64xf32>
    %262 = arith.negf %261 : vector<8x64xf32>
    %263 = math.exp %262 : vector<8x64xf32>
    %cst_125 = arith.constant 1.000000e+00 : f32
    %264 = vector.broadcast %cst_125 : f32 to vector<8x64xf32>
    %265 = arith.addf %264, %263 : vector<8x64xf32>
    %266 = arith.divf %264, %265 : vector<8x64xf32>
    %267 = arith.mulf %259, %266 : vector<8x64xf32>
    %c1_126 = arith.constant 1 : index
    %c0_127 = arith.constant 0 : index
    %c0_128 = arith.constant 0 : index
    %268 = vector.load %arg8[%c1_126, %c0_127, %c0_128] : memref<2x64x32xf32, #tpu.memory_space<vmem>>, vector<1x64x32xf32>
    %269 = vector.shape_cast %268 : vector<1x64x32xf32> to vector<64x32xf32>
    %c1_129 = arith.constant 1 : index
    %c0_130 = arith.constant 0 : index
    %c0_131 = arith.constant 0 : index
    %270 = vector.load %arg7[%c1_129, %c0_130, %c0_131] : memref<2x1x32xf32, #tpu.memory_space<vmem>>, vector<1x1x32xf32>
    %271 = vector.shape_cast %270 : vector<1x1x32xf32> to vector<1x32xf32>
    %cst_132 = arith.constant dense<0.000000e+00> : vector<8x32xf32>
    %272 = tpu.matmul %267, %269, %cst_132 {dimension_numbers = #tpu.dot_dimension_numbers<[1], [0], [0], [1], [0, 0, 1, 1], [], []>} : vector<8x64xf32>, vector<64x32xf32>, vector<8x32xf32> -> vector<8x32xf32>
    %273 = vector.broadcast %271 : vector<1x32xf32> to vector<8x32xf32>
    %274 = arith.addf %272, %273 : vector<8x32xf32>
    %275 = arith.addf %226, %274 : vector<8x32xf32>
    %c0_133 = arith.constant 0 : index
    %c0_134 = arith.constant 0 : index
    %276 = vector.load %arg4[%c0_133, %c0_134] : memref<1x32xf32, #tpu.memory_space<vmem>>, vector<1x32xf32>
    %c0_135 = arith.constant 0 : index
    %c0_136 = arith.constant 0 : index
    %277 = vector.load %arg3[%c0_135, %c0_136] : memref<1x32xf32, #tpu.memory_space<vmem>>, vector<1x32xf32>
    %cst_137 = arith.constant dense<0.000000e+00> : vector<8xf32>
    %278 = vector.multi_reduction <add>, %275, %cst_137 [1] : vector<8x32xf32> to vector<8xf32>
    %279 = vector.shape_cast %278 : vector<8xf32> to vector<8x1xf32>
    %cst_138 = arith.constant 3.200000e+01 : f32
    %280 = vector.broadcast %cst_138 : f32 to vector<8x1xf32>
    %281 = arith.divf %279, %280 : vector<8x1xf32>
    %282 = vector.broadcast %281 : vector<8x1xf32> to vector<8x32xf32>
    %283 = arith.subf %275, %282 : vector<8x32xf32>
    %284 = arith.mulf %283, %283 : vector<8x32xf32>
    %cst_139 = arith.constant dense<0.000000e+00> : vector<8xf32>
    %285 = vector.multi_reduction <add>, %284, %cst_139 [1] : vector<8x32xf32> to vector<8xf32>
    %286 = vector.shape_cast %285 : vector<8xf32> to vector<8x1xf32>
    %cst_140 = arith.constant 3.200000e+01 : f32
    %287 = vector.broadcast %cst_140 : f32 to vector<8x1xf32>
    %288 = arith.divf %286, %287 : vector<8x1xf32>
    %289 = vector.broadcast %281 : vector<8x1xf32> to vector<8x32xf32>
    %290 = arith.subf %275, %289 : vector<8x32xf32>
    %cst_141 = arith.constant 9.99999974E-6 : f32
    %291 = vector.broadcast %cst_141 : f32 to vector<8x1xf32>
    %292 = arith.addf %288, %291 : vector<8x1xf32>
    %293 = math.rsqrt %292 : vector<8x1xf32>
    %294 = vector.broadcast %293 : vector<8x1xf32> to vector<8x32xf32>
    %295 = arith.mulf %290, %294 : vector<8x32xf32>
    %296 = vector.broadcast %276 : vector<1x32xf32> to vector<8x32xf32>
    %297 = arith.mulf %295, %296 : vector<8x32xf32>
    %298 = vector.broadcast %277 : vector<1x32xf32> to vector<8x32xf32>
    %299 = arith.addf %297, %298 : vector<8x32xf32>
    %c0_142 = arith.constant 0 : index
    %c0_143 = arith.constant 0 : index
    %300 = vector.load %arg18[%c0_142, %c0_143] : memref<32x64xf32, #tpu.memory_space<vmem>>, vector<32x64xf32>
    %c0_144 = arith.constant 0 : index
    %c0_145 = arith.constant 0 : index
    %301 = vector.load %arg17[%c0_144, %c0_145] : memref<1x64xf32, #tpu.memory_space<vmem>>, vector<1x64xf32>
    %cst_146 = arith.constant dense<0.000000e+00> : vector<8x64xf32>
    %302 = tpu.matmul %299, %300, %cst_146 {dimension_numbers = #tpu.dot_dimension_numbers<[1], [0], [0], [1], [0, 0, 1, 1], [], []>} : vector<8x32xf32>, vector<32x64xf32>, vector<8x64xf32> -> vector<8x64xf32>
    %303 = vector.broadcast %301 : vector<1x64xf32> to vector<8x64xf32>
    %304 = arith.addf %302, %303 : vector<8x64xf32>
    %c0_147 = arith.constant 0 : index
    %c0_148 = arith.constant 0 : index
    %c0_149 = arith.constant 0 : index
    %305 = vector.load %arg19[%c0_147, %c0_148, %c0_149] : memref<1x8x64xf32, #tpu.memory_space<vmem>>, vector<1x8x64xf32>
    %306 = vector.shape_cast %305 : vector<1x8x64xf32> to vector<8x64xf32>
    %307 = vector.shape_cast %304 : vector<8x64xf32> to vector<1x8x64xf32>
    tpu.vector_store %arg19[%c0_147, %c0_148, %c0_149], %307 {strides = array<i32>} : memref<1x8x64xf32, #tpu.memory_space<vmem>>, vector<1x8x64xf32>,
    return
  }
  func.func @transform_0(%arg0: i32) -> (i32, i32, i32) {
    %c0_i32 = arith.constant 0 : i32
    %c0_i32_0 = arith.constant 0 : i32
    %c0_i32_1 = arith.constant 0 : i32
    return %arg0, %c0_i32, %c0_i32_0 : i32, i32, i32
  }
  func.func @transform_1(%arg0: i32) -> (i32, i32, i32) {
    %c0_i32 = arith.constant 0 : i32
    %c0_i32_0 = arith.constant 0 : i32
    %c0_i32_1 = arith.constant 0 : i32
    return %arg0, %c0_i32, %c0_i32_0 : i32, i32, i32
  }
  func.func @transform_2(%arg0: i32) -> (i32, i32) {
    %c0_i32 = arith.constant 0 : i32
    %c0_i32_0 = arith.constant 0 : i32
    %c0_i32_1 = arith.constant 0 : i32
    return %c0_i32, %c0_i32_0 : i32, i32
  }
  func.func @transform_3(%arg0: i32) -> (i32, i32) {
    %c0_i32 = arith.constant 0 : i32
    %c0_i32_0 = arith.constant 0 : i32
    %c0_i32_1 = arith.constant 0 : i32
    return %c0_i32, %c0_i32_0 : i32, i32
  }
  func.func @transform_4(%arg0: i32) -> (i32, i32, i32) {
    %c0_i32 = arith.constant 0 : i32
    %c0_i32_0 = arith.constant 0 : i32
    %c0_i32_1 = arith.constant 0 : i32
    %c0_i32_2 = arith.constant 0 : i32
    return %c0_i32, %c0_i32_0, %c0_i32_1 : i32, i32, i32
  }
  func.func @transform_5(%arg0: i32) -> (i32, i32, i32) {
    %c0_i32 = arith.constant 0 : i32
    %c0_i32_0 = arith.constant 0 : i32
    %c0_i32_1 = arith.constant 0 : i32
    %c0_i32_2 = arith.constant 0 : i32
    return %c0_i32, %c0_i32_0, %c0_i32_1 : i32, i32, i32
  }
  func.func @transform_6(%arg0: i32) -> (i32, i32, i32) {
    %c0_i32 = arith.constant 0 : i32
    %c0_i32_0 = arith.constant 0 : i32
    %c0_i32_1 = arith.constant 0 : i32
    %c0_i32_2 = arith.constant 0 : i32
    return %c0_i32, %c0_i32_0, %c0_i32_1 : i32, i32, i32
  }
  func.func @transform_7(%arg0: i32) -> (i32, i32, i32) {
    %c0_i32 = arith.constant 0 : i32
    %c0_i32_0 = arith.constant 0 : i32
    %c0_i32_1 = arith.constant 0 : i32
    %c0_i32_2 = arith.constant 0 : i32
    return %c0_i32, %c0_i32_0, %c0_i32_1 : i32, i32, i32
  }
  func.func @transform_8(%arg0: i32) -> (i32, i32, i32) {
    %c0_i32 = arith.constant 0 : i32
    %c0_i32_0 = arith.constant 0 : i32
    %c0_i32_1 = arith.constant 0 : i32
    %c0_i32_2 = arith.constant 0 : i32
    return %c0_i32, %c0_i32_0, %c0_i32_1 : i32, i32, i32
  }
  func.func @transform_9(%arg0: i32) -> (i32, i32, i32) {
    %c0_i32 = arith.constant 0 : i32
    %c0_i32_0 = arith.constant 0 : i32
    %c0_i32_1 = arith.constant 0 : i32
    %c0_i32_2 = arith.constant 0 : i32
    return %c0_i32, %c0_i32_0, %c0_i32_1 : i32, i32, i32
  }
  func.func @transform_10(%arg0: i32) -> (i32, i32, i32) {
    %c0_i32 = arith.constant 0 : i32
    %c0_i32_0 = arith.constant 0 : i32
    %c0_i32_1 = arith.constant 0 : i32
    %c0_i32_2 = arith.constant 0 : i32
    return %c0_i32, %c0_i32_0, %c0_i32_1 : i32, i32, i32
  }
  func.func @transform_11(%arg0: i32) -> (i32, i32, i32) {
    %c0_i32 = arith.constant 0 : i32
    %c0_i32_0 = arith.constant 0 : i32
    %c0_i32_1 = arith.constant 0 : i32
    %c0_i32_2 = arith.constant 0 : i32
    return %c0_i32, %c0_i32_0, %c0_i32_1 : i32, i32, i32
  }
  func.func @transform_12(%arg0: i32) -> (i32, i32, i32) {
    %c0_i32 = arith.constant 0 : i32
    %c0_i32_0 = arith.constant 0 : i32
    %c0_i32_1 = arith.constant 0 : i32
    %c0_i32_2 = arith.constant 0 : i32
    return %c0_i32, %c0_i32_0, %c0_i32_1 : i32, i32, i32
  }
  func.func @transform_13(%arg0: i32) -> (i32, i32, i32) {
    %c0_i32 = arith.constant 0 : i32
    %c0_i32_0 = arith.constant 0 : i32
    %c0_i32_1 = arith.constant 0 : i32
    %c0_i32_2 = arith.constant 0 : i32
    return %c0_i32, %c0_i32_0, %c0_i32_1 : i32, i32, i32
  }
  func.func @transform_14(%arg0: i32) -> (i32, i32, i32) {
    %c0_i32 = arith.constant 0 : i32
    %c0_i32_0 = arith.constant 0 : i32
    %c0_i32_1 = arith.constant 0 : i32
    %c0_i32_2 = arith.constant 0 : i32
    return %c0_i32, %c0_i32_0, %c0_i32_1 : i32, i32, i32
  }
  func.func @transform_15(%arg0: i32) -> (i32, i32, i32) {
    %c0_i32 = arith.constant 0 : i32
    %c0_i32_0 = arith.constant 0 : i32
    %c0_i32_1 = arith.constant 0 : i32
    %c0_i32_2 = arith.constant 0 : i32
    return %c0_i32, %c0_i32_0, %c0_i32_1 : i32, i32, i32
  }
  func.func @transform_16(%arg0: i32) -> (i32, i32) {
    %c0_i32 = arith.constant 0 : i32
    %c0_i32_0 = arith.constant 0 : i32
    %c0_i32_1 = arith.constant 0 : i32
    return %c0_i32, %c0_i32_0 : i32, i32
  }
  func.func @transform_17(%arg0: i32) -> (i32, i32) {
    %c0_i32 = arith.constant 0 : i32
    %c0_i32_0 = arith.constant 0 : i32
    %c0_i32_1 = arith.constant 0 : i32
    return %c0_i32, %c0_i32_0 : i32, i32
  }
  func.func @transform_18(%arg0: i32) -> (i32, i32, i32) {
    %c0_i32 = arith.constant 0 : i32
    %c0_i32_0 = arith.constant 0 : i32
    %c0_i32_1 = arith.constant 0 : i32
    return %arg0, %c0_i32, %c0_i32_0 : i32, i32, i32
  }
}

module attributes {stable_mosaic.version = 11 : i64} {
  func.func @body(%arg0: i32, %arg1: memref<1x13x64xf32, #tpu.memory_space<vmem>>, %arg2: memref<1x1x13xf32, #tpu.memory_space<vmem>>, %arg3: memref<1x128xf32, #tpu.memory_space<vmem>>, %arg4: memref<32x128xf32, #tpu.memory_space<vmem>>, %arg5: memref<1x32xf32, #tpu.memory_space<vmem>>, %arg6: memref<1x32xf32, #tpu.memory_space<vmem>>, %arg7: memref<1x32xf32, #tpu.memory_space<vmem>>, %arg8: memref<64x32xf32, #tpu.memory_space<vmem>>, %arg9: memref<2x1x128xf32, #tpu.memory_space<vmem>>, %arg10: memref<2x64x128xf32, #tpu.memory_space<vmem>>, %arg11: memref<2x1x64xf32, #tpu.memory_space<vmem>>, %arg12: memref<2x128x64xf32, #tpu.memory_space<vmem>>, %arg13: memref<2x1x64xf32, #tpu.memory_space<vmem>>, %arg14: memref<2x1x64xf32, #tpu.memory_space<vmem>>, %arg15: memref<2x1x64xf32, #tpu.memory_space<vmem>>, %arg16: memref<2x1x64xf32, #tpu.memory_space<vmem>>, %arg17: memref<2x1x64xf32, #tpu.memory_space<vmem>>, %arg18: memref<2x64x64xf32, #tpu.memory_space<vmem>>, %arg19: memref<2x1x192xf32, #tpu.memory_space<vmem>>, %arg20: memref<2x64x192xf32, #tpu.memory_space<vmem>>, %arg21: memref<1x64xf32, #tpu.memory_space<vmem>>, %arg22: memref<1x64xf32, #tpu.memory_space<vmem>>, %arg23: memref<1x1x128xf32, #tpu.memory_space<vmem>>) attributes {dimension_semantics = [#tpu.dimension_semantics<parallel>], iteration_bounds = array<i64: 2>, scalar_prefetch = 0 : i64, scratch_operands = 0 : i64, tpu.core_type = #tpu.core_type<tc>, window_params = [{transform_indices = @transform_0, window_bounds = array<i64: 1, 13, 64>}, {transform_indices = @transform_1, window_bounds = array<i64: 1, 1, 13>}, {pipeline_mode = #tpu.pipeline_mode<synchronous>, transform_indices = @transform_2, window_bounds = array<i64: 1, 128>}, {pipeline_mode = #tpu.pipeline_mode<synchronous>, transform_indices = @transform_3, window_bounds = array<i64: 32, 128>}, {pipeline_mode = #tpu.pipeline_mode<synchronous>, transform_indices = @transform_4, window_bounds = array<i64: 1, 32>}, {pipeline_mode = #tpu.pipeline_mode<synchronous>, transform_indices = @transform_5, window_bounds = array<i64: 1, 32>}, {pipeline_mode = #tpu.pipeline_mode<synchronous>, transform_indices = @transform_6, window_bounds = array<i64: 1, 32>}, {pipeline_mode = #tpu.pipeline_mode<synchronous>, transform_indices = @transform_7, window_bounds = array<i64: 64, 32>}, {pipeline_mode = #tpu.pipeline_mode<synchronous>, transform_indices = @transform_8, window_bounds = array<i64: 2, 1, 128>}, {pipeline_mode = #tpu.pipeline_mode<synchronous>, transform_indices = @transform_9, window_bounds = array<i64: 2, 64, 128>}, {pipeline_mode = #tpu.pipeline_mode<synchronous>, transform_indices = @transform_10, window_bounds = array<i64: 2, 1, 64>}, {pipeline_mode = #tpu.pipeline_mode<synchronous>, transform_indices = @transform_11, window_bounds = array<i64: 2, 128, 64>}, {pipeline_mode = #tpu.pipeline_mode<synchronous>, transform_indices = @transform_12, window_bounds = array<i64: 2, 1, 64>}, {pipeline_mode = #tpu.pipeline_mode<synchronous>, transform_indices = @transform_13, window_bounds = array<i64: 2, 1, 64>}, {pipeline_mode = #tpu.pipeline_mode<synchronous>, transform_indices = @transform_14, window_bounds = array<i64: 2, 1, 64>}, {pipeline_mode = #tpu.pipeline_mode<synchronous>, transform_indices = @transform_15, window_bounds = array<i64: 2, 1, 64>}, {pipeline_mode = #tpu.pipeline_mode<synchronous>, transform_indices = @transform_16, window_bounds = array<i64: 2, 1, 64>}, {pipeline_mode = #tpu.pipeline_mode<synchronous>, transform_indices = @transform_17, window_bounds = array<i64: 2, 64, 64>}, {pipeline_mode = #tpu.pipeline_mode<synchronous>, transform_indices = @transform_18, window_bounds = array<i64: 2, 1, 192>}, {pipeline_mode = #tpu.pipeline_mode<synchronous>, transform_indices = @transform_19, window_bounds = array<i64: 2, 64, 192>}, {pipeline_mode = #tpu.pipeline_mode<synchronous>, transform_indices = @transform_20, window_bounds = array<i64: 1, 64>}, {pipeline_mode = #tpu.pipeline_mode<synchronous>, transform_indices = @transform_21, window_bounds = array<i64: 1, 64>}, {transform_indices = @transform_22, window_bounds = array<i64: 1, 1, 128>}]} {
    %c0 = arith.constant 0 : index
    %c0_0 = arith.constant 0 : index
    %c0_1 = arith.constant 0 : index
    %0 = vector.load %arg1[%c0, %c0_0, %c0_1] : memref<1x13x64xf32, #tpu.memory_space<vmem>>, vector<1x13x64xf32>
    %1 = vector.shape_cast %0 : vector<1x13x64xf32> to vector<13x64xf32>
    %c0_2 = arith.constant 0 : index
    %c0_3 = arith.constant 0 : index
    %c0_4 = arith.constant 0 : index
    %2 = vector.load %arg2[%c0_2, %c0_3, %c0_4] : memref<1x1x13xf32, #tpu.memory_space<vmem>>, vector<1x1x13xf32>
    %3 = vector.shape_cast %2 : vector<1x1x13xf32> to vector<1x13xf32>
    %4 = tpu.iota {dimensions = array<i32: 0>} : vector<13x13xi32>
    %5 = tpu.iota {dimensions = array<i32: 1>} : vector<13x13xi32>
    %6 = arith.cmpi sge, %4, %5 : vector<13x13xi32>
    %cst = arith.constant 0.000000e+00 : f32
    %cst_5 = arith.constant -1.000000e+09 : f32
    %7 = vector.broadcast %cst : f32 to vector<13x13xf32>
    %8 = vector.broadcast %cst_5 : f32 to vector<13x13xf32>
    %9 = arith.select %6, %7, %8 : vector<13x13xi1>, vector<13x13xf32>
    %cst_6 = arith.constant 1.000000e+00 : f32
    %10 = vector.broadcast %cst_6 : f32 to vector<1x13xf32>
    %11 = arith.subf %10, %3 : vector<1x13xf32>
    %cst_7 = arith.constant -1.000000e+09 : f32
    %12 = vector.broadcast %cst_7 : f32 to vector<1x13xf32>
    %13 = arith.mulf %11, %12 : vector<1x13xf32>
    %14 = vector.broadcast %13 : vector<1x13xf32> to vector<13x13xf32>
    %15 = arith.addf %9, %14 : vector<13x13xf32>
    %c0_8 = arith.constant 0 : index
    %c0_9 = arith.constant 0 : index
    %c0_10 = arith.constant 0 : index
    %16 = vector.load %arg14[%c0_8, %c0_9, %c0_10] : memref<2x1x64xf32, #tpu.memory_space<vmem>>, vector<1x1x64xf32>
    %17 = vector.shape_cast %16 : vector<1x1x64xf32> to vector<1x64xf32>
    %c0_11 = arith.constant 0 : index
    %c0_12 = arith.constant 0 : index
    %c0_13 = arith.constant 0 : index
    %18 = vector.load %arg13[%c0_11, %c0_12, %c0_13] : memref<2x1x64xf32, #tpu.memory_space<vmem>>, vector<1x1x64xf32>
    %19 = vector.shape_cast %18 : vector<1x1x64xf32> to vector<1x64xf32>
    %cst_14 = arith.constant dense<0.000000e+00> : vector<13xf32>
    %20 = vector.multi_reduction <add>, %1, %cst_14 [1] : vector<13x64xf32> to vector<13xf32>
    %21 = vector.shape_cast %20 : vector<13xf32> to vector<13x1xf32>
    %cst_15 = arith.constant 6.400000e+01 : f32
    %22 = vector.broadcast %cst_15 : f32 to vector<13x1xf32>
    %23 = arith.divf %21, %22 : vector<13x1xf32>
    %24 = vector.broadcast %23 : vector<13x1xf32> to vector<13x64xf32>
    %25 = arith.subf %1, %24 : vector<13x64xf32>
    %26 = arith.mulf %25, %25 : vector<13x64xf32>
    %cst_16 = arith.constant dense<0.000000e+00> : vector<13xf32>
    %27 = vector.multi_reduction <add>, %26, %cst_16 [1] : vector<13x64xf32> to vector<13xf32>
    %28 = vector.shape_cast %27 : vector<13xf32> to vector<13x1xf32>
    %cst_17 = arith.constant 6.400000e+01 : f32
    %29 = vector.broadcast %cst_17 : f32 to vector<13x1xf32>
    %30 = arith.divf %28, %29 : vector<13x1xf32>
    %31 = vector.broadcast %23 : vector<13x1xf32> to vector<13x64xf32>
    %32 = arith.subf %1, %31 : vector<13x64xf32>
    %cst_18 = arith.constant 9.99999974E-6 : f32
    %33 = vector.broadcast %cst_18 : f32 to vector<13x1xf32>
    %34 = arith.addf %30, %33 : vector<13x1xf32>
    %35 = math.rsqrt %34 : vector<13x1xf32>
    %36 = vector.broadcast %35 : vector<13x1xf32> to vector<13x64xf32>
    %37 = arith.mulf %32, %36 : vector<13x64xf32>
    %38 = vector.broadcast %17 : vector<1x64xf32> to vector<13x64xf32>
    %39 = arith.mulf %37, %38 : vector<13x64xf32>
    %40 = vector.broadcast %19 : vector<1x64xf32> to vector<13x64xf32>
    %41 = arith.addf %39, %40 : vector<13x64xf32>
    %c0_19 = arith.constant 0 : index
    %c0_20 = arith.constant 0 : index
    %c0_21 = arith.constant 0 : index
    %42 = vector.load %arg20[%c0_19, %c0_20, %c0_21] : memref<2x64x192xf32, #tpu.memory_space<vmem>>, vector<1x64x192xf32>
    %43 = vector.shape_cast %42 : vector<1x64x192xf32> to vector<64x192xf32>
    %c0_22 = arith.constant 0 : index
    %c0_23 = arith.constant 0 : index
    %c0_24 = arith.constant 0 : index
    %44 = vector.load %arg19[%c0_22, %c0_23, %c0_24] : memref<2x1x192xf32, #tpu.memory_space<vmem>>, vector<1x1x192xf32>
    %45 = vector.shape_cast %44 : vector<1x1x192xf32> to vector<1x192xf32>
    %cst_25 = arith.constant dense<0.000000e+00> : vector<13x192xf32>
    %46 = tpu.matmul %41, %43, %cst_25 {dimension_numbers = #tpu.dot_dimension_numbers<[1], [0], [0], [1], [0, 0, 1, 1], [], []>} : vector<13x64xf32>, vector<64x192xf32>, vector<13x192xf32> -> vector<13x192xf32>
    %47 = vector.broadcast %45 : vector<1x192xf32> to vector<13x192xf32>
    %48 = arith.addf %46, %47 : vector<13x192xf32>
    %c0_26 = arith.constant 0 : index
    %c0_27 = arith.constant 0 : index
    %c0_28 = arith.constant 0 : index
    %49 = vector.load %arg18[%c0_26, %c0_27, %c0_28] : memref<2x64x64xf32, #tpu.memory_space<vmem>>, vector<1x64x64xf32>
    %50 = vector.shape_cast %49 : vector<1x64x64xf32> to vector<64x64xf32>
    %51 = vector.extract_strided_slice %48 {offsets = [0, 0], sizes = [13, 32], strides = [1, 1]} : vector<13x192xf32> to vector<13x32xf32>
    %52 = vector.extract_strided_slice %48 {offsets = [0, 64], sizes = [13, 32], strides = [1, 1]} : vector<13x192xf32> to vector<13x32xf32>
    %53 = vector.extract_strided_slice %48 {offsets = [0, 128], sizes = [13, 32], strides = [1, 1]} : vector<13x192xf32> to vector<13x32xf32>
    %cst_29 = arith.constant dense<0.000000e+00> : vector<13x13xf32>
    %54 = tpu.matmul %51, %52, %cst_29 {dimension_numbers = #tpu.dot_dimension_numbers<[1], [1], [0], [0], [0, 0, 1, 0], [], []>} : vector<13x32xf32>, vector<13x32xf32>, vector<13x13xf32> -> vector<13x13xf32>
    %cst_30 = arith.constant 0.176776692 : f32
    %55 = vector.broadcast %cst_30 : f32 to vector<13x13xf32>
    %56 = arith.mulf %54, %55 : vector<13x13xf32>
    %57 = arith.addf %56, %15 : vector<13x13xf32>
    %cst_31 = arith.constant dense<0xFF800000> : vector<13xf32>
    %58 = vector.multi_reduction <maximumf>, %57, %cst_31 [1] : vector<13x13xf32> to vector<13xf32>
    %59 = vector.shape_cast %58 : vector<13xf32> to vector<13x1xf32>
    %60 = vector.broadcast %59 : vector<13x1xf32> to vector<13x13xf32>
    %61 = arith.subf %57, %60 : vector<13x13xf32>
    %62 = math.exp %61 : vector<13x13xf32>
    %cst_32 = arith.constant dense<0.000000e+00> : vector<13xf32>
    %63 = vector.multi_reduction <add>, %62, %cst_32 [1] : vector<13x13xf32> to vector<13xf32>
    %64 = vector.shape_cast %63 : vector<13xf32> to vector<13x1xf32>
    %65 = tpu.reciprocal %64 {approx = true} : vector<13x1xf32> -> vector<13x1xf32>
    %66 = vector.broadcast %65 : vector<13x1xf32> to vector<13x13xf32>
    %67 = arith.mulf %62, %66 : vector<13x13xf32>
    %cst_33 = arith.constant dense<0.000000e+00> : vector<13x32xf32>
    %68 = tpu.matmul %67, %53, %cst_33 {dimension_numbers = #tpu.dot_dimension_numbers<[1], [0], [0], [1], [0, 0, 1, 1], [], []>} : vector<13x13xf32>, vector<13x32xf32>, vector<13x32xf32> -> vector<13x32xf32>
    %69 = vector.extract_strided_slice %50 {offsets = [0, 0], sizes = [32, 64], strides = [1, 1]} : vector<64x64xf32> to vector<32x64xf32>
    %cst_34 = arith.constant dense<0.000000e+00> : vector<13x64xf32>
    %70 = tpu.matmul %68, %69, %cst_34 {dimension_numbers = #tpu.dot_dimension_numbers<[1], [0], [0], [1], [0, 0, 1, 1], [], []>} : vector<13x32xf32>, vector<32x64xf32>, vector<13x64xf32> -> vector<13x64xf32>
    %71 = vector.extract_strided_slice %48 {offsets = [0, 32], sizes = [13, 32], strides = [1, 1]} : vector<13x192xf32> to vector<13x32xf32>
    %72 = vector.extract_strided_slice %48 {offsets = [0, 96], sizes = [13, 32], strides = [1, 1]} : vector<13x192xf32> to vector<13x32xf32>
    %73 = vector.extract_strided_slice %48 {offsets = [0, 160], sizes = [13, 32], strides = [1, 1]} : vector<13x192xf32> to vector<13x32xf32>
    %cst_35 = arith.constant dense<0.000000e+00> : vector<13x13xf32>
    %74 = tpu.matmul %71, %72, %cst_35 {dimension_numbers = #tpu.dot_dimension_numbers<[1], [1], [0], [0], [0, 0, 1, 0], [], []>} : vector<13x32xf32>, vector<13x32xf32>, vector<13x13xf32> -> vector<13x13xf32>
    %cst_36 = arith.constant 0.176776692 : f32
    %75 = vector.broadcast %cst_36 : f32 to vector<13x13xf32>
    %76 = arith.mulf %74, %75 : vector<13x13xf32>
    %77 = arith.addf %76, %15 : vector<13x13xf32>
    %cst_37 = arith.constant dense<0xFF800000> : vector<13xf32>
    %78 = vector.multi_reduction <maximumf>, %77, %cst_37 [1] : vector<13x13xf32> to vector<13xf32>
    %79 = vector.shape_cast %78 : vector<13xf32> to vector<13x1xf32>
    %80 = vector.broadcast %79 : vector<13x1xf32> to vector<13x13xf32>
    %81 = arith.subf %77, %80 : vector<13x13xf32>
    %82 = math.exp %81 : vector<13x13xf32>
    %cst_38 = arith.constant dense<0.000000e+00> : vector<13xf32>
    %83 = vector.multi_reduction <add>, %82, %cst_38 [1] : vector<13x13xf32> to vector<13xf32>
    %84 = vector.shape_cast %83 : vector<13xf32> to vector<13x1xf32>
    %85 = tpu.reciprocal %84 {approx = true} : vector<13x1xf32> -> vector<13x1xf32>
    %86 = vector.broadcast %85 : vector<13x1xf32> to vector<13x13xf32>
    %87 = arith.mulf %82, %86 : vector<13x13xf32>
    %cst_39 = arith.constant dense<0.000000e+00> : vector<13x32xf32>
    %88 = tpu.matmul %87, %73, %cst_39 {dimension_numbers = #tpu.dot_dimension_numbers<[1], [0], [0], [1], [0, 0, 1, 1], [], []>} : vector<13x13xf32>, vector<13x32xf32>, vector<13x32xf32> -> vector<13x32xf32>
    %89 = vector.extract_strided_slice %50 {offsets = [32, 0], sizes = [32, 64], strides = [1, 1]} : vector<64x64xf32> to vector<32x64xf32>
    %cst_40 = arith.constant dense<0.000000e+00> : vector<13x64xf32>
    %90 = tpu.matmul %88, %89, %cst_40 {dimension_numbers = #tpu.dot_dimension_numbers<[1], [0], [0], [1], [0, 0, 1, 1], [], []>} : vector<13x32xf32>, vector<32x64xf32>, vector<13x64xf32> -> vector<13x64xf32>
    %91 = arith.addf %70, %90 : vector<13x64xf32>
    %c0_41 = arith.constant 0 : index
    %c0_42 = arith.constant 0 : index
    %c0_43 = arith.constant 0 : index
    %92 = vector.load %arg17[%c0_41, %c0_42, %c0_43] : memref<2x1x64xf32, #tpu.memory_space<vmem>>, vector<1x1x64xf32>
    %93 = vector.shape_cast %92 : vector<1x1x64xf32> to vector<1x64xf32>
    %94 = vector.broadcast %93 : vector<1x64xf32> to vector<13x64xf32>
    %95 = arith.addf %91, %94 : vector<13x64xf32>
    %96 = arith.addf %1, %95 : vector<13x64xf32>
    %c0_44 = arith.constant 0 : index
    %c0_45 = arith.constant 0 : index
    %c0_46 = arith.constant 0 : index
    %97 = vector.load %arg16[%c0_44, %c0_45, %c0_46] : memref<2x1x64xf32, #tpu.memory_space<vmem>>, vector<1x1x64xf32>
    %98 = vector.shape_cast %97 : vector<1x1x64xf32> to vector<1x64xf32>
    %c0_47 = arith.constant 0 : index
    %c0_48 = arith.constant 0 : index
    %c0_49 = arith.constant 0 : index
    %99 = vector.load %arg15[%c0_47, %c0_48, %c0_49] : memref<2x1x64xf32, #tpu.memory_space<vmem>>, vector<1x1x64xf32>
    %100 = vector.shape_cast %99 : vector<1x1x64xf32> to vector<1x64xf32>
    %cst_50 = arith.constant dense<0.000000e+00> : vector<13xf32>
    %101 = vector.multi_reduction <add>, %96, %cst_50 [1] : vector<13x64xf32> to vector<13xf32>
    %102 = vector.shape_cast %101 : vector<13xf32> to vector<13x1xf32>
    %cst_51 = arith.constant 6.400000e+01 : f32
    %103 = vector.broadcast %cst_51 : f32 to vector<13x1xf32>
    %104 = arith.divf %102, %103 : vector<13x1xf32>
    %105 = vector.broadcast %104 : vector<13x1xf32> to vector<13x64xf32>
    %106 = arith.subf %96, %105 : vector<13x64xf32>
    %107 = arith.mulf %106, %106 : vector<13x64xf32>
    %cst_52 = arith.constant dense<0.000000e+00> : vector<13xf32>
    %108 = vector.multi_reduction <add>, %107, %cst_52 [1] : vector<13x64xf32> to vector<13xf32>
    %109 = vector.shape_cast %108 : vector<13xf32> to vector<13x1xf32>
    %cst_53 = arith.constant 6.400000e+01 : f32
    %110 = vector.broadcast %cst_53 : f32 to vector<13x1xf32>
    %111 = arith.divf %109, %110 : vector<13x1xf32>
    %112 = vector.broadcast %104 : vector<13x1xf32> to vector<13x64xf32>
    %113 = arith.subf %96, %112 : vector<13x64xf32>
    %cst_54 = arith.constant 9.99999974E-6 : f32
    %114 = vector.broadcast %cst_54 : f32 to vector<13x1xf32>
    %115 = arith.addf %111, %114 : vector<13x1xf32>
    %116 = math.rsqrt %115 : vector<13x1xf32>
    %117 = vector.broadcast %116 : vector<13x1xf32> to vector<13x64xf32>
    %118 = arith.mulf %113, %117 : vector<13x64xf32>
    %119 = vector.broadcast %98 : vector<1x64xf32> to vector<13x64xf32>
    %120 = arith.mulf %118, %119 : vector<13x64xf32>
    %121 = vector.broadcast %100 : vector<1x64xf32> to vector<13x64xf32>
    %122 = arith.addf %120, %121 : vector<13x64xf32>
    %c0_55 = arith.constant 0 : index
    %c0_56 = arith.constant 0 : index
    %c0_57 = arith.constant 0 : index
    %123 = vector.load %arg10[%c0_55, %c0_56, %c0_57] : memref<2x64x128xf32, #tpu.memory_space<vmem>>, vector<1x64x128xf32>
    %124 = vector.shape_cast %123 : vector<1x64x128xf32> to vector<64x128xf32>
    %c0_58 = arith.constant 0 : index
    %c0_59 = arith.constant 0 : index
    %c0_60 = arith.constant 0 : index
    %125 = vector.load %arg9[%c0_58, %c0_59, %c0_60] : memref<2x1x128xf32, #tpu.memory_space<vmem>>, vector<1x1x128xf32>
    %126 = vector.shape_cast %125 : vector<1x1x128xf32> to vector<1x128xf32>
    %cst_61 = arith.constant dense<0.000000e+00> : vector<13x128xf32>
    %127 = tpu.matmul %122, %124, %cst_61 {dimension_numbers = #tpu.dot_dimension_numbers<[1], [0], [0], [1], [0, 0, 1, 1], [], []>} : vector<13x64xf32>, vector<64x128xf32>, vector<13x128xf32> -> vector<13x128xf32>
    %128 = vector.broadcast %126 : vector<1x128xf32> to vector<13x128xf32>
    %129 = arith.addf %127, %128 : vector<13x128xf32>
    %cst_62 = arith.constant 5.000000e-01 : f32
    %130 = vector.broadcast %cst_62 : f32 to vector<13x128xf32>
    %131 = arith.mulf %130, %129 : vector<13x128xf32>
    %cst_63 = arith.constant 4.471500e-02 : f32
    %132 = vector.broadcast %cst_63 : f32 to vector<13x128xf32>
    %133 = arith.mulf %132, %129 : vector<13x128xf32>
    %134 = arith.mulf %133, %129 : vector<13x128xf32>
    %135 = arith.mulf %134, %129 : vector<13x128xf32>
    %136 = arith.addf %129, %135 : vector<13x128xf32>
    %cst_64 = arith.constant 0.797884583 : f32
    %137 = vector.broadcast %cst_64 : f32 to vector<13x128xf32>
    %138 = arith.mulf %137, %136 : vector<13x128xf32>
    %139 = math.tanh %138 : vector<13x128xf32>
    %cst_65 = arith.constant 1.000000e+00 : f32
    %140 = vector.broadcast %cst_65 : f32 to vector<13x128xf32>
    %141 = arith.addf %140, %139 : vector<13x128xf32>
    %142 = arith.mulf %131, %141 : vector<13x128xf32>
    %c0_66 = arith.constant 0 : index
    %c0_67 = arith.constant 0 : index
    %c0_68 = arith.constant 0 : index
    %143 = vector.load %arg12[%c0_66, %c0_67, %c0_68] : memref<2x128x64xf32, #tpu.memory_space<vmem>>, vector<1x128x64xf32>
    %144 = vector.shape_cast %143 : vector<1x128x64xf32> to vector<128x64xf32>
    %c0_69 = arith.constant 0 : index
    %c0_70 = arith.constant 0 : index
    %c0_71 = arith.constant 0 : index
    %145 = vector.load %arg11[%c0_69, %c0_70, %c0_71] : memref<2x1x64xf32, #tpu.memory_space<vmem>>, vector<1x1x64xf32>
    %146 = vector.shape_cast %145 : vector<1x1x64xf32> to vector<1x64xf32>
    %cst_72 = arith.constant dense<0.000000e+00> : vector<13x64xf32>
    %147 = tpu.matmul %142, %144, %cst_72 {dimension_numbers = #tpu.dot_dimension_numbers<[1], [0], [0], [1], [0, 0, 1, 1], [], []>} : vector<13x128xf32>, vector<128x64xf32>, vector<13x64xf32> -> vector<13x64xf32>
    %148 = vector.broadcast %146 : vector<1x64xf32> to vector<13x64xf32>
    %149 = arith.addf %147, %148 : vector<13x64xf32>
    %150 = arith.addf %96, %149 : vector<13x64xf32>
    %c1 = arith.constant 1 : index
    %c0_73 = arith.constant 0 : index
    %c0_74 = arith.constant 0 : index
    %151 = vector.load %arg14[%c1, %c0_73, %c0_74] : memref<2x1x64xf32, #tpu.memory_space<vmem>>, vector<1x1x64xf32>
    %152 = vector.shape_cast %151 : vector<1x1x64xf32> to vector<1x64xf32>
    %c1_75 = arith.constant 1 : index
    %c0_76 = arith.constant 0 : index
    %c0_77 = arith.constant 0 : index
    %153 = vector.load %arg13[%c1_75, %c0_76, %c0_77] : memref<2x1x64xf32, #tpu.memory_space<vmem>>, vector<1x1x64xf32>
    %154 = vector.shape_cast %153 : vector<1x1x64xf32> to vector<1x64xf32>
    %cst_78 = arith.constant dense<0.000000e+00> : vector<13xf32>
    %155 = vector.multi_reduction <add>, %150, %cst_78 [1] : vector<13x64xf32> to vector<13xf32>
    %156 = vector.shape_cast %155 : vector<13xf32> to vector<13x1xf32>
    %cst_79 = arith.constant 6.400000e+01 : f32
    %157 = vector.broadcast %cst_79 : f32 to vector<13x1xf32>
    %158 = arith.divf %156, %157 : vector<13x1xf32>
    %159 = vector.broadcast %158 : vector<13x1xf32> to vector<13x64xf32>
    %160 = arith.subf %150, %159 : vector<13x64xf32>
    %161 = arith.mulf %160, %160 : vector<13x64xf32>
    %cst_80 = arith.constant dense<0.000000e+00> : vector<13xf32>
    %162 = vector.multi_reduction <add>, %161, %cst_80 [1] : vector<13x64xf32> to vector<13xf32>
    %163 = vector.shape_cast %162 : vector<13xf32> to vector<13x1xf32>
    %cst_81 = arith.constant 6.400000e+01 : f32
    %164 = vector.broadcast %cst_81 : f32 to vector<13x1xf32>
    %165 = arith.divf %163, %164 : vector<13x1xf32>
    %166 = vector.broadcast %158 : vector<13x1xf32> to vector<13x64xf32>
    %167 = arith.subf %150, %166 : vector<13x64xf32>
    %cst_82 = arith.constant 9.99999974E-6 : f32
    %168 = vector.broadcast %cst_82 : f32 to vector<13x1xf32>
    %169 = arith.addf %165, %168 : vector<13x1xf32>
    %170 = math.rsqrt %169 : vector<13x1xf32>
    %171 = vector.broadcast %170 : vector<13x1xf32> to vector<13x64xf32>
    %172 = arith.mulf %167, %171 : vector<13x64xf32>
    %173 = vector.broadcast %152 : vector<1x64xf32> to vector<13x64xf32>
    %174 = arith.mulf %172, %173 : vector<13x64xf32>
    %175 = vector.broadcast %154 : vector<1x64xf32> to vector<13x64xf32>
    %176 = arith.addf %174, %175 : vector<13x64xf32>
    %c1_83 = arith.constant 1 : index
    %c0_84 = arith.constant 0 : index
    %c0_85 = arith.constant 0 : index
    %177 = vector.load %arg20[%c1_83, %c0_84, %c0_85] : memref<2x64x192xf32, #tpu.memory_space<vmem>>, vector<1x64x192xf32>
    %178 = vector.shape_cast %177 : vector<1x64x192xf32> to vector<64x192xf32>
    %c1_86 = arith.constant 1 : index
    %c0_87 = arith.constant 0 : index
    %c0_88 = arith.constant 0 : index
    %179 = vector.load %arg19[%c1_86, %c0_87, %c0_88] : memref<2x1x192xf32, #tpu.memory_space<vmem>>, vector<1x1x192xf32>
    %180 = vector.shape_cast %179 : vector<1x1x192xf32> to vector<1x192xf32>
    %cst_89 = arith.constant dense<0.000000e+00> : vector<13x192xf32>
    %181 = tpu.matmul %176, %178, %cst_89 {dimension_numbers = #tpu.dot_dimension_numbers<[1], [0], [0], [1], [0, 0, 1, 1], [], []>} : vector<13x64xf32>, vector<64x192xf32>, vector<13x192xf32> -> vector<13x192xf32>
    %182 = vector.broadcast %180 : vector<1x192xf32> to vector<13x192xf32>
    %183 = arith.addf %181, %182 : vector<13x192xf32>
    %c1_90 = arith.constant 1 : index
    %c0_91 = arith.constant 0 : index
    %c0_92 = arith.constant 0 : index
    %184 = vector.load %arg18[%c1_90, %c0_91, %c0_92] : memref<2x64x64xf32, #tpu.memory_space<vmem>>, vector<1x64x64xf32>
    %185 = vector.shape_cast %184 : vector<1x64x64xf32> to vector<64x64xf32>
    %186 = vector.extract_strided_slice %183 {offsets = [0, 0], sizes = [13, 32], strides = [1, 1]} : vector<13x192xf32> to vector<13x32xf32>
    %187 = vector.extract_strided_slice %183 {offsets = [0, 64], sizes = [13, 32], strides = [1, 1]} : vector<13x192xf32> to vector<13x32xf32>
    %188 = vector.extract_strided_slice %183 {offsets = [0, 128], sizes = [13, 32], strides = [1, 1]} : vector<13x192xf32> to vector<13x32xf32>
    %cst_93 = arith.constant dense<0.000000e+00> : vector<13x13xf32>
    %189 = tpu.matmul %186, %187, %cst_93 {dimension_numbers = #tpu.dot_dimension_numbers<[1], [1], [0], [0], [0, 0, 1, 0], [], []>} : vector<13x32xf32>, vector<13x32xf32>, vector<13x13xf32> -> vector<13x13xf32>
    %cst_94 = arith.constant 0.176776692 : f32
    %190 = vector.broadcast %cst_94 : f32 to vector<13x13xf32>
    %191 = arith.mulf %189, %190 : vector<13x13xf32>
    %192 = arith.addf %191, %15 : vector<13x13xf32>
    %cst_95 = arith.constant dense<0xFF800000> : vector<13xf32>
    %193 = vector.multi_reduction <maximumf>, %192, %cst_95 [1] : vector<13x13xf32> to vector<13xf32>
    %194 = vector.shape_cast %193 : vector<13xf32> to vector<13x1xf32>
    %195 = vector.broadcast %194 : vector<13x1xf32> to vector<13x13xf32>
    %196 = arith.subf %192, %195 : vector<13x13xf32>
    %197 = math.exp %196 : vector<13x13xf32>
    %cst_96 = arith.constant dense<0.000000e+00> : vector<13xf32>
    %198 = vector.multi_reduction <add>, %197, %cst_96 [1] : vector<13x13xf32> to vector<13xf32>
    %199 = vector.shape_cast %198 : vector<13xf32> to vector<13x1xf32>
    %200 = tpu.reciprocal %199 {approx = true} : vector<13x1xf32> -> vector<13x1xf32>
    %201 = vector.broadcast %200 : vector<13x1xf32> to vector<13x13xf32>
    %202 = arith.mulf %197, %201 : vector<13x13xf32>
    %cst_97 = arith.constant dense<0.000000e+00> : vector<13x32xf32>
    %203 = tpu.matmul %202, %188, %cst_97 {dimension_numbers = #tpu.dot_dimension_numbers<[1], [0], [0], [1], [0, 0, 1, 1], [], []>} : vector<13x13xf32>, vector<13x32xf32>, vector<13x32xf32> -> vector<13x32xf32>
    %204 = vector.extract_strided_slice %185 {offsets = [0, 0], sizes = [32, 64], strides = [1, 1]} : vector<64x64xf32> to vector<32x64xf32>
    %cst_98 = arith.constant dense<0.000000e+00> : vector<13x64xf32>
    %205 = tpu.matmul %203, %204, %cst_98 {dimension_numbers = #tpu.dot_dimension_numbers<[1], [0], [0], [1], [0, 0, 1, 1], [], []>} : vector<13x32xf32>, vector<32x64xf32>, vector<13x64xf32> -> vector<13x64xf32>
    %206 = vector.extract_strided_slice %183 {offsets = [0, 32], sizes = [13, 32], strides = [1, 1]} : vector<13x192xf32> to vector<13x32xf32>
    %207 = vector.extract_strided_slice %183 {offsets = [0, 96], sizes = [13, 32], strides = [1, 1]} : vector<13x192xf32> to vector<13x32xf32>
    %208 = vector.extract_strided_slice %183 {offsets = [0, 160], sizes = [13, 32], strides = [1, 1]} : vector<13x192xf32> to vector<13x32xf32>
    %cst_99 = arith.constant dense<0.000000e+00> : vector<13x13xf32>
    %209 = tpu.matmul %206, %207, %cst_99 {dimension_numbers = #tpu.dot_dimension_numbers<[1], [1], [0], [0], [0, 0, 1, 0], [], []>} : vector<13x32xf32>, vector<13x32xf32>, vector<13x13xf32> -> vector<13x13xf32>
    %cst_100 = arith.constant 0.176776692 : f32
    %210 = vector.broadcast %cst_100 : f32 to vector<13x13xf32>
    %211 = arith.mulf %209, %210 : vector<13x13xf32>
    %212 = arith.addf %211, %15 : vector<13x13xf32>
    %cst_101 = arith.constant dense<0xFF800000> : vector<13xf32>
    %213 = vector.multi_reduction <maximumf>, %212, %cst_101 [1] : vector<13x13xf32> to vector<13xf32>
    %214 = vector.shape_cast %213 : vector<13xf32> to vector<13x1xf32>
    %215 = vector.broadcast %214 : vector<13x1xf32> to vector<13x13xf32>
    %216 = arith.subf %212, %215 : vector<13x13xf32>
    %217 = math.exp %216 : vector<13x13xf32>
    %cst_102 = arith.constant dense<0.000000e+00> : vector<13xf32>
    %218 = vector.multi_reduction <add>, %217, %cst_102 [1] : vector<13x13xf32> to vector<13xf32>
    %219 = vector.shape_cast %218 : vector<13xf32> to vector<13x1xf32>
    %220 = tpu.reciprocal %219 {approx = true} : vector<13x1xf32> -> vector<13x1xf32>
    %221 = vector.broadcast %220 : vector<13x1xf32> to vector<13x13xf32>
    %222 = arith.mulf %217, %221 : vector<13x13xf32>
    %cst_103 = arith.constant dense<0.000000e+00> : vector<13x32xf32>
    %223 = tpu.matmul %222, %208, %cst_103 {dimension_numbers = #tpu.dot_dimension_numbers<[1], [0], [0], [1], [0, 0, 1, 1], [], []>} : vector<13x13xf32>, vector<13x32xf32>, vector<13x32xf32> -> vector<13x32xf32>
    %224 = vector.extract_strided_slice %185 {offsets = [32, 0], sizes = [32, 64], strides = [1, 1]} : vector<64x64xf32> to vector<32x64xf32>
    %cst_104 = arith.constant dense<0.000000e+00> : vector<13x64xf32>
    %225 = tpu.matmul %223, %224, %cst_104 {dimension_numbers = #tpu.dot_dimension_numbers<[1], [0], [0], [1], [0, 0, 1, 1], [], []>} : vector<13x32xf32>, vector<32x64xf32>, vector<13x64xf32> -> vector<13x64xf32>
    %226 = arith.addf %205, %225 : vector<13x64xf32>
    %c1_105 = arith.constant 1 : index
    %c0_106 = arith.constant 0 : index
    %c0_107 = arith.constant 0 : index
    %227 = vector.load %arg17[%c1_105, %c0_106, %c0_107] : memref<2x1x64xf32, #tpu.memory_space<vmem>>, vector<1x1x64xf32>
    %228 = vector.shape_cast %227 : vector<1x1x64xf32> to vector<1x64xf32>
    %229 = vector.broadcast %228 : vector<1x64xf32> to vector<13x64xf32>
    %230 = arith.addf %226, %229 : vector<13x64xf32>
    %231 = arith.addf %150, %230 : vector<13x64xf32>
    %c1_108 = arith.constant 1 : index
    %c0_109 = arith.constant 0 : index
    %c0_110 = arith.constant 0 : index
    %232 = vector.load %arg16[%c1_108, %c0_109, %c0_110] : memref<2x1x64xf32, #tpu.memory_space<vmem>>, vector<1x1x64xf32>
    %233 = vector.shape_cast %232 : vector<1x1x64xf32> to vector<1x64xf32>
    %c1_111 = arith.constant 1 : index
    %c0_112 = arith.constant 0 : index
    %c0_113 = arith.constant 0 : index
    %234 = vector.load %arg15[%c1_111, %c0_112, %c0_113] : memref<2x1x64xf32, #tpu.memory_space<vmem>>, vector<1x1x64xf32>
    %235 = vector.shape_cast %234 : vector<1x1x64xf32> to vector<1x64xf32>
    %cst_114 = arith.constant dense<0.000000e+00> : vector<13xf32>
    %236 = vector.multi_reduction <add>, %231, %cst_114 [1] : vector<13x64xf32> to vector<13xf32>
    %237 = vector.shape_cast %236 : vector<13xf32> to vector<13x1xf32>
    %cst_115 = arith.constant 6.400000e+01 : f32
    %238 = vector.broadcast %cst_115 : f32 to vector<13x1xf32>
    %239 = arith.divf %237, %238 : vector<13x1xf32>
    %240 = vector.broadcast %239 : vector<13x1xf32> to vector<13x64xf32>
    %241 = arith.subf %231, %240 : vector<13x64xf32>
    %242 = arith.mulf %241, %241 : vector<13x64xf32>
    %cst_116 = arith.constant dense<0.000000e+00> : vector<13xf32>
    %243 = vector.multi_reduction <add>, %242, %cst_116 [1] : vector<13x64xf32> to vector<13xf32>
    %244 = vector.shape_cast %243 : vector<13xf32> to vector<13x1xf32>
    %cst_117 = arith.constant 6.400000e+01 : f32
    %245 = vector.broadcast %cst_117 : f32 to vector<13x1xf32>
    %246 = arith.divf %244, %245 : vector<13x1xf32>
    %247 = vector.broadcast %239 : vector<13x1xf32> to vector<13x64xf32>
    %248 = arith.subf %231, %247 : vector<13x64xf32>
    %cst_118 = arith.constant 9.99999974E-6 : f32
    %249 = vector.broadcast %cst_118 : f32 to vector<13x1xf32>
    %250 = arith.addf %246, %249 : vector<13x1xf32>
    %251 = math.rsqrt %250 : vector<13x1xf32>
    %252 = vector.broadcast %251 : vector<13x1xf32> to vector<13x64xf32>
    %253 = arith.mulf %248, %252 : vector<13x64xf32>
    %254 = vector.broadcast %233 : vector<1x64xf32> to vector<13x64xf32>
    %255 = arith.mulf %253, %254 : vector<13x64xf32>
    %256 = vector.broadcast %235 : vector<1x64xf32> to vector<13x64xf32>
    %257 = arith.addf %255, %256 : vector<13x64xf32>
    %c1_119 = arith.constant 1 : index
    %c0_120 = arith.constant 0 : index
    %c0_121 = arith.constant 0 : index
    %258 = vector.load %arg10[%c1_119, %c0_120, %c0_121] : memref<2x64x128xf32, #tpu.memory_space<vmem>>, vector<1x64x128xf32>
    %259 = vector.shape_cast %258 : vector<1x64x128xf32> to vector<64x128xf32>
    %c1_122 = arith.constant 1 : index
    %c0_123 = arith.constant 0 : index
    %c0_124 = arith.constant 0 : index
    %260 = vector.load %arg9[%c1_122, %c0_123, %c0_124] : memref<2x1x128xf32, #tpu.memory_space<vmem>>, vector<1x1x128xf32>
    %261 = vector.shape_cast %260 : vector<1x1x128xf32> to vector<1x128xf32>
    %cst_125 = arith.constant dense<0.000000e+00> : vector<13x128xf32>
    %262 = tpu.matmul %257, %259, %cst_125 {dimension_numbers = #tpu.dot_dimension_numbers<[1], [0], [0], [1], [0, 0, 1, 1], [], []>} : vector<13x64xf32>, vector<64x128xf32>, vector<13x128xf32> -> vector<13x128xf32>
    %263 = vector.broadcast %261 : vector<1x128xf32> to vector<13x128xf32>
    %264 = arith.addf %262, %263 : vector<13x128xf32>
    %cst_126 = arith.constant 5.000000e-01 : f32
    %265 = vector.broadcast %cst_126 : f32 to vector<13x128xf32>
    %266 = arith.mulf %265, %264 : vector<13x128xf32>
    %cst_127 = arith.constant 4.471500e-02 : f32
    %267 = vector.broadcast %cst_127 : f32 to vector<13x128xf32>
    %268 = arith.mulf %267, %264 : vector<13x128xf32>
    %269 = arith.mulf %268, %264 : vector<13x128xf32>
    %270 = arith.mulf %269, %264 : vector<13x128xf32>
    %271 = arith.addf %264, %270 : vector<13x128xf32>
    %cst_128 = arith.constant 0.797884583 : f32
    %272 = vector.broadcast %cst_128 : f32 to vector<13x128xf32>
    %273 = arith.mulf %272, %271 : vector<13x128xf32>
    %274 = math.tanh %273 : vector<13x128xf32>
    %cst_129 = arith.constant 1.000000e+00 : f32
    %275 = vector.broadcast %cst_129 : f32 to vector<13x128xf32>
    %276 = arith.addf %275, %274 : vector<13x128xf32>
    %277 = arith.mulf %266, %276 : vector<13x128xf32>
    %c1_130 = arith.constant 1 : index
    %c0_131 = arith.constant 0 : index
    %c0_132 = arith.constant 0 : index
    %278 = vector.load %arg12[%c1_130, %c0_131, %c0_132] : memref<2x128x64xf32, #tpu.memory_space<vmem>>, vector<1x128x64xf32>
    %279 = vector.shape_cast %278 : vector<1x128x64xf32> to vector<128x64xf32>
    %c1_133 = arith.constant 1 : index
    %c0_134 = arith.constant 0 : index
    %c0_135 = arith.constant 0 : index
    %280 = vector.load %arg11[%c1_133, %c0_134, %c0_135] : memref<2x1x64xf32, #tpu.memory_space<vmem>>, vector<1x1x64xf32>
    %281 = vector.shape_cast %280 : vector<1x1x64xf32> to vector<1x64xf32>
    %cst_136 = arith.constant dense<0.000000e+00> : vector<13x64xf32>
    %282 = tpu.matmul %277, %279, %cst_136 {dimension_numbers = #tpu.dot_dimension_numbers<[1], [0], [0], [1], [0, 0, 1, 1], [], []>} : vector<13x128xf32>, vector<128x64xf32>, vector<13x64xf32> -> vector<13x64xf32>
    %283 = vector.broadcast %281 : vector<1x64xf32> to vector<13x64xf32>
    %284 = arith.addf %282, %283 : vector<13x64xf32>
    %285 = arith.addf %231, %284 : vector<13x64xf32>
    %c0_137 = arith.constant 0 : index
    %c0_138 = arith.constant 0 : index
    %286 = vector.load %arg22[%c0_137, %c0_138] : memref<1x64xf32, #tpu.memory_space<vmem>>, vector<1x64xf32>
    %c0_139 = arith.constant 0 : index
    %c0_140 = arith.constant 0 : index
    %287 = vector.load %arg21[%c0_139, %c0_140] : memref<1x64xf32, #tpu.memory_space<vmem>>, vector<1x64xf32>
    %cst_141 = arith.constant dense<0.000000e+00> : vector<13xf32>
    %288 = vector.multi_reduction <add>, %285, %cst_141 [1] : vector<13x64xf32> to vector<13xf32>
    %289 = vector.shape_cast %288 : vector<13xf32> to vector<13x1xf32>
    %cst_142 = arith.constant 6.400000e+01 : f32
    %290 = vector.broadcast %cst_142 : f32 to vector<13x1xf32>
    %291 = arith.divf %289, %290 : vector<13x1xf32>
    %292 = vector.broadcast %291 : vector<13x1xf32> to vector<13x64xf32>
    %293 = arith.subf %285, %292 : vector<13x64xf32>
    %294 = arith.mulf %293, %293 : vector<13x64xf32>
    %cst_143 = arith.constant dense<0.000000e+00> : vector<13xf32>
    %295 = vector.multi_reduction <add>, %294, %cst_143 [1] : vector<13x64xf32> to vector<13xf32>
    %296 = vector.shape_cast %295 : vector<13xf32> to vector<13x1xf32>
    %cst_144 = arith.constant 6.400000e+01 : f32
    %297 = vector.broadcast %cst_144 : f32 to vector<13x1xf32>
    %298 = arith.divf %296, %297 : vector<13x1xf32>
    %299 = vector.broadcast %291 : vector<13x1xf32> to vector<13x64xf32>
    %300 = arith.subf %285, %299 : vector<13x64xf32>
    %cst_145 = arith.constant 9.99999974E-6 : f32
    %301 = vector.broadcast %cst_145 : f32 to vector<13x1xf32>
    %302 = arith.addf %298, %301 : vector<13x1xf32>
    %303 = math.rsqrt %302 : vector<13x1xf32>
    %304 = vector.broadcast %303 : vector<13x1xf32> to vector<13x64xf32>
    %305 = arith.mulf %300, %304 : vector<13x64xf32>
    %306 = vector.broadcast %286 : vector<1x64xf32> to vector<13x64xf32>
    %307 = arith.mulf %305, %306 : vector<13x64xf32>
    %308 = vector.broadcast %287 : vector<1x64xf32> to vector<13x64xf32>
    %309 = arith.addf %307, %308 : vector<13x64xf32>
    %cst_146 = arith.constant dense<0.000000e+00> : vector<64xf32>
    %310 = vector.multi_reduction <add>, %309, %cst_146 [0] : vector<13x64xf32> to vector<64xf32>
    %311 = vector.shape_cast %310 : vector<64xf32> to vector<1x64xf32>
    %cst_147 = arith.constant 1.300000e+01 : f32
    %312 = vector.broadcast %cst_147 : f32 to vector<1x64xf32>
    %313 = arith.divf %311, %312 : vector<1x64xf32>
    %c0_148 = arith.constant 0 : index
    %c0_149 = arith.constant 0 : index
    %314 = vector.load %arg8[%c0_148, %c0_149] : memref<64x32xf32, #tpu.memory_space<vmem>>, vector<64x32xf32>
    %c0_150 = arith.constant 0 : index
    %c0_151 = arith.constant 0 : index
    %315 = vector.load %arg7[%c0_150, %c0_151] : memref<1x32xf32, #tpu.memory_space<vmem>>, vector<1x32xf32>
    %cst_152 = arith.constant dense<0.000000e+00> : vector<1x32xf32>
    %316 = tpu.matmul %313, %314, %cst_152 {dimension_numbers = #tpu.dot_dimension_numbers<[1], [0], [0], [1], [0, 0, 1, 1], [], []>} : vector<1x64xf32>, vector<64x32xf32>, vector<1x32xf32> -> vector<1x32xf32>
    %317 = arith.addf %316, %315 : vector<1x32xf32>
    %c0_153 = arith.constant 0 : index
    %c0_154 = arith.constant 0 : index
    %318 = vector.load %arg6[%c0_153, %c0_154] : memref<1x32xf32, #tpu.memory_space<vmem>>, vector<1x32xf32>
    %c0_155 = arith.constant 0 : index
    %c0_156 = arith.constant 0 : index
    %319 = vector.load %arg5[%c0_155, %c0_156] : memref<1x32xf32, #tpu.memory_space<vmem>>, vector<1x32xf32>
    %cst_157 = arith.constant dense<0.000000e+00> : vector<1xf32>
    %320 = vector.multi_reduction <add>, %317, %cst_157 [1] : vector<1x32xf32> to vector<1xf32>
    %321 = vector.shape_cast %320 : vector<1xf32> to vector<1x1xf32>
    %cst_158 = arith.constant 3.200000e+01 : f32
    %322 = vector.broadcast %cst_158 : f32 to vector<1x1xf32>
    %323 = arith.divf %321, %322 : vector<1x1xf32>
    %324 = vector.broadcast %323 : vector<1x1xf32> to vector<1x32xf32>
    %325 = arith.subf %317, %324 : vector<1x32xf32>
    %326 = arith.mulf %325, %325 : vector<1x32xf32>
    %cst_159 = arith.constant dense<0.000000e+00> : vector<1xf32>
    %327 = vector.multi_reduction <add>, %326, %cst_159 [1] : vector<1x32xf32> to vector<1xf32>
    %328 = vector.shape_cast %327 : vector<1xf32> to vector<1x1xf32>
    %cst_160 = arith.constant 3.200000e+01 : f32
    %329 = vector.broadcast %cst_160 : f32 to vector<1x1xf32>
    %330 = arith.divf %328, %329 : vector<1x1xf32>
    %331 = vector.broadcast %323 : vector<1x1xf32> to vector<1x32xf32>
    %332 = arith.subf %317, %331 : vector<1x32xf32>
    %cst_161 = arith.constant 9.99999974E-6 : f32
    %333 = vector.broadcast %cst_161 : f32 to vector<1x1xf32>
    %334 = arith.addf %330, %333 : vector<1x1xf32>
    %335 = math.rsqrt %334 : vector<1x1xf32>
    %336 = vector.broadcast %335 : vector<1x1xf32> to vector<1x32xf32>
    %337 = arith.mulf %332, %336 : vector<1x32xf32>
    %338 = arith.mulf %337, %318 : vector<1x32xf32>
    %339 = arith.addf %338, %319 : vector<1x32xf32>
    %c0_162 = arith.constant 0 : index
    %c0_163 = arith.constant 0 : index
    %340 = vector.load %arg4[%c0_162, %c0_163] : memref<32x128xf32, #tpu.memory_space<vmem>>, vector<32x128xf32>
    %c0_164 = arith.constant 0 : index
    %c0_165 = arith.constant 0 : index
    %341 = vector.load %arg3[%c0_164, %c0_165] : memref<1x128xf32, #tpu.memory_space<vmem>>, vector<1x128xf32>
    %cst_166 = arith.constant dense<0.000000e+00> : vector<1x128xf32>
    %342 = tpu.matmul %339, %340, %cst_166 {dimension_numbers = #tpu.dot_dimension_numbers<[1], [0], [0], [1], [0, 0, 1, 1], [], []>} : vector<1x32xf32>, vector<32x128xf32>, vector<1x128xf32> -> vector<1x128xf32>
    %343 = arith.addf %342, %341 : vector<1x128xf32>
    %c0_167 = arith.constant 0 : index
    %c0_168 = arith.constant 0 : index
    %c0_169 = arith.constant 0 : index
    %344 = vector.load %arg23[%c0_167, %c0_168, %c0_169] : memref<1x1x128xf32, #tpu.memory_space<vmem>>, vector<1x1x128xf32>
    %345 = vector.shape_cast %344 : vector<1x1x128xf32> to vector<1x128xf32>
    %346 = vector.shape_cast %343 : vector<1x128xf32> to vector<1x1x128xf32>
    tpu.vector_store %arg23[%c0_167, %c0_168, %c0_169], %346 {strides = array<i32>} : memref<1x1x128xf32, #tpu.memory_space<vmem>>, vector<1x1x128xf32>,
    return
  }
  func.func @transform_0(%arg0: i32) -> (i32, i32, i32) {
    %c0_i32 = arith.constant 0 : i32
    %c0_i32_0 = arith.constant 0 : i32
    %c0_i32_1 = arith.constant 0 : i32
    return %arg0, %c0_i32, %c0_i32_0 : i32, i32, i32
  }
  func.func @transform_1(%arg0: i32) -> (i32, i32, i32) {
    %c0_i32 = arith.constant 0 : i32
    %c0_i32_0 = arith.constant 0 : i32
    %c0_i32_1 = arith.constant 0 : i32
    return %arg0, %c0_i32, %c0_i32_0 : i32, i32, i32
  }
  func.func @transform_2(%arg0: i32) -> (i32, i32) {
    %c0_i32 = arith.constant 0 : i32
    %c0_i32_0 = arith.constant 0 : i32
    %c0_i32_1 = arith.constant 0 : i32
    return %c0_i32, %c0_i32_0 : i32, i32
  }
  func.func @transform_3(%arg0: i32) -> (i32, i32) {
    %c0_i32 = arith.constant 0 : i32
    %c0_i32_0 = arith.constant 0 : i32
    %c0_i32_1 = arith.constant 0 : i32
    return %c0_i32, %c0_i32_0 : i32, i32
  }
  func.func @transform_4(%arg0: i32) -> (i32, i32) {
    %c0_i32 = arith.constant 0 : i32
    %c0_i32_0 = arith.constant 0 : i32
    %c0_i32_1 = arith.constant 0 : i32
    return %c0_i32, %c0_i32_0 : i32, i32
  }
  func.func @transform_5(%arg0: i32) -> (i32, i32) {
    %c0_i32 = arith.constant 0 : i32
    %c0_i32_0 = arith.constant 0 : i32
    %c0_i32_1 = arith.constant 0 : i32
    return %c0_i32, %c0_i32_0 : i32, i32
  }
  func.func @transform_6(%arg0: i32) -> (i32, i32) {
    %c0_i32 = arith.constant 0 : i32
    %c0_i32_0 = arith.constant 0 : i32
    %c0_i32_1 = arith.constant 0 : i32
    return %c0_i32, %c0_i32_0 : i32, i32
  }
  func.func @transform_7(%arg0: i32) -> (i32, i32) {
    %c0_i32 = arith.constant 0 : i32
    %c0_i32_0 = arith.constant 0 : i32
    %c0_i32_1 = arith.constant 0 : i32
    return %c0_i32, %c0_i32_0 : i32, i32
  }
  func.func @transform_8(%arg0: i32) -> (i32, i32, i32) {
    %c0_i32 = arith.constant 0 : i32
    %c0_i32_0 = arith.constant 0 : i32
    %c0_i32_1 = arith.constant 0 : i32
    %c0_i32_2 = arith.constant 0 : i32
    return %c0_i32, %c0_i32_0, %c0_i32_1 : i32, i32, i32
  }
  func.func @transform_9(%arg0: i32) -> (i32, i32, i32) {
    %c0_i32 = arith.constant 0 : i32
    %c0_i32_0 = arith.constant 0 : i32
    %c0_i32_1 = arith.constant 0 : i32
    %c0_i32_2 = arith.constant 0 : i32
    return %c0_i32, %c0_i32_0, %c0_i32_1 : i32, i32, i32
  }
  func.func @transform_10(%arg0: i32) -> (i32, i32, i32) {
    %c0_i32 = arith.constant 0 : i32
    %c0_i32_0 = arith.constant 0 : i32
    %c0_i32_1 = arith.constant 0 : i32
    %c0_i32_2 = arith.constant 0 : i32
    return %c0_i32, %c0_i32_0, %c0_i32_1 : i32, i32, i32
  }
  func.func @transform_11(%arg0: i32) -> (i32, i32, i32) {
    %c0_i32 = arith.constant 0 : i32
    %c0_i32_0 = arith.constant 0 : i32
    %c0_i32_1 = arith.constant 0 : i32
    %c0_i32_2 = arith.constant 0 : i32
    return %c0_i32, %c0_i32_0, %c0_i32_1 : i32, i32, i32
  }
  func.func @transform_12(%arg0: i32) -> (i32, i32, i32) {
    %c0_i32 = arith.constant 0 : i32
    %c0_i32_0 = arith.constant 0 : i32
    %c0_i32_1 = arith.constant 0 : i32
    %c0_i32_2 = arith.constant 0 : i32
    return %c0_i32, %c0_i32_0, %c0_i32_1 : i32, i32, i32
  }
  func.func @transform_13(%arg0: i32) -> (i32, i32, i32) {
    %c0_i32 = arith.constant 0 : i32
    %c0_i32_0 = arith.constant 0 : i32
    %c0_i32_1 = arith.constant 0 : i32
    %c0_i32_2 = arith.constant 0 : i32
    return %c0_i32, %c0_i32_0, %c0_i32_1 : i32, i32, i32
  }
  func.func @transform_14(%arg0: i32) -> (i32, i32, i32) {
    %c0_i32 = arith.constant 0 : i32
    %c0_i32_0 = arith.constant 0 : i32
    %c0_i32_1 = arith.constant 0 : i32
    %c0_i32_2 = arith.constant 0 : i32
    return %c0_i32, %c0_i32_0, %c0_i32_1 : i32, i32, i32
  }
  func.func @transform_15(%arg0: i32) -> (i32, i32, i32) {
    %c0_i32 = arith.constant 0 : i32
    %c0_i32_0 = arith.constant 0 : i32
    %c0_i32_1 = arith.constant 0 : i32
    %c0_i32_2 = arith.constant 0 : i32
    return %c0_i32, %c0_i32_0, %c0_i32_1 : i32, i32, i32
  }
  func.func @transform_16(%arg0: i32) -> (i32, i32, i32) {
    %c0_i32 = arith.constant 0 : i32
    %c0_i32_0 = arith.constant 0 : i32
    %c0_i32_1 = arith.constant 0 : i32
    %c0_i32_2 = arith.constant 0 : i32
    return %c0_i32, %c0_i32_0, %c0_i32_1 : i32, i32, i32
  }
  func.func @transform_17(%arg0: i32) -> (i32, i32, i32) {
    %c0_i32 = arith.constant 0 : i32
    %c0_i32_0 = arith.constant 0 : i32
    %c0_i32_1 = arith.constant 0 : i32
    %c0_i32_2 = arith.constant 0 : i32
    return %c0_i32, %c0_i32_0, %c0_i32_1 : i32, i32, i32
  }
  func.func @transform_18(%arg0: i32) -> (i32, i32, i32) {
    %c0_i32 = arith.constant 0 : i32
    %c0_i32_0 = arith.constant 0 : i32
    %c0_i32_1 = arith.constant 0 : i32
    %c0_i32_2 = arith.constant 0 : i32
    return %c0_i32, %c0_i32_0, %c0_i32_1 : i32, i32, i32
  }
  func.func @transform_19(%arg0: i32) -> (i32, i32, i32) {
    %c0_i32 = arith.constant 0 : i32
    %c0_i32_0 = arith.constant 0 : i32
    %c0_i32_1 = arith.constant 0 : i32
    %c0_i32_2 = arith.constant 0 : i32
    return %c0_i32, %c0_i32_0, %c0_i32_1 : i32, i32, i32
  }
  func.func @transform_20(%arg0: i32) -> (i32, i32) {
    %c0_i32 = arith.constant 0 : i32
    %c0_i32_0 = arith.constant 0 : i32
    %c0_i32_1 = arith.constant 0 : i32
    return %c0_i32, %c0_i32_0 : i32, i32
  }
  func.func @transform_21(%arg0: i32) -> (i32, i32) {
    %c0_i32 = arith.constant 0 : i32
    %c0_i32_0 = arith.constant 0 : i32
    %c0_i32_1 = arith.constant 0 : i32
    return %c0_i32, %c0_i32_0 : i32, i32
  }
  func.func @transform_22(%arg0: i32) -> (i32, i32, i32) {
    %c0_i32 = arith.constant 0 : i32
    %c0_i32_0 = arith.constant 0 : i32
    %c0_i32_1 = arith.constant 0 : i32
    return %arg0, %c0_i32, %c0_i32_0 : i32, i32, i32
  }
}

</mosaic_0001>

<bundles_post_ra>
// kernel: clip_gpt2_classification.3
= control target key start
LH: loop header
LB: loop body
LE: loop exit
PB: predicated region body
PF: predicated region fallthrough
CT: control target
= control target key end

     0   :  { %s3562_s0 = inlined_call_operand.vmem [shape: f32[2,5,193], index: 0, kind: input, shape index: {}]   ;;  %s3563_s1 = inlined_call_operand.vmem [shape: f32[2,1,64], index: 1, kind: input, shape index: {}]   ;;  %s3564_s2 = inlined_call_operand.vmem [shape: f32[2,32,64], index: 2, kind: input, shape index: {}]   ;;  %s3565_s3 = inlined_call_operand.vmem [shape: f32[2,1,32], index: 3, kind: input, shape index: {}, may-alias: {3,5,7,9}]   ;;  %s3566_s4 = inlined_call_operand.vmem [shape: f32[2,64,32], index: 4, kind: input, shape index: {}]   ;;  %s3567_s5 = inlined_call_operand.vmem [shape: f32[2,1,32], index: 5, kind: input, shape index: {}, may-alias: {3,5,7,9}]   ;;  %s3568_s6 = inlined_call_operand.vmem [shape: f32[2,1,32], index: 6, kind: input, shape index: {}, may-alias: {6,8}]   ;;  %s3569_s7 = inlined_call_operand.vmem [shape: f32[2,1,32], index: 7, kind: input, shape index: {}, may-alias: {3,5,7,9}]   ;;  %s3570_s8 = inlined_call_operand.vmem [shape: f32[2,1,32], index: 8, kind: input, shape index: {}, may-alias: {6,8}]   ;;  %s3571_s9 = inlined_call_operand.vmem [shape: f32[2,1,32], index: 9, kind: input, shape index: {}, may-alias: {3,5,7,9}]   ;;  %s3572_s10 = inlined_call_operand.vmem [shape: f32[2,32,32], index: 10, kind: input, shape index: {}]   ;;  %s3573_s11 = inlined_call_operand.vmem [shape: f32[2,1,96], index: 11, kind: input, shape index: {}]   ;;  %s3574_s12 = inlined_call_operand.vmem [shape: f32[2,32,96], index: 12, kind: input, shape index: {}]   ;;  %s3575_s13 = inlined_call_operand.vmem [shape: f32[193,32], index: 13, kind: input, shape index: {}]   ;;  %s3576_s14 = inlined_call_operand.vmem [shape: f32[5,32], index: 14, kind: input, shape index: {}]   ;;  %s3577_s15 = inlined_call_operand.vmem [shape: f32[1,32], index: 15, kind: input, shape index: {}]   ;;  %s3578_s16 = inlined_call_operand.vmem [shape: f32[1,32], index: 16, kind: input, shape index: {}]   ;;  %s3579_s17 = inlined_call_operand.vmem [shape: f32[1,64], index: 17, kind: input, shape index: {}]   ;;  %s3580_s18 = inlined_call_operand.vmem [shape: f32[32,64], index: 18, kind: input, shape index: {}]   ;;  %s3581_s19 = inlined_call_operand.vmem [shape: f32[2,5,64], index: 19, kind: output, shape index: {}]  }
   0x1   :  { %3588 = sst [smem:[#allocation2_spill]] %s3562_s0  ;;  %s3114_s0 = smov 0  }
   0x2   :  { %3589 = sst [smem:[#allocation3_spill]] %s3563_s1 }
   0x3   :  { %3590 = sst [smem:[#allocation4_spill]] %s3564_s2 }
   0x4   :  { %3591 = sst [smem:[#allocation5_spill]] %s3565_s3 }
   0x5 LB: > { %s2525_s30 = sadd.s32 4294967295, %s3004_s0   ;;  %p2529_p0 = scmp.ge.s32.totalorder %s3004_s0, 1  ;;  %s3004_s0 = sphi %s3114_s0, %s29_s0  }
   0x6   : > { %p537_p1 = scmp.lt.s32.totalorder %s3004_s0, 3 }
   0x8   : > { %p538_p2 = pnand %p2529_p0, %p537_p1 }
   0x9   : > { %v603_v0 = vld [vmem:[%s3575_s13] sm:$0xff] (!%p538_p2)  ;;  %v604_v1 = vld [vmem:[%s3575_s13 + $0x8] sm:$0xff] (!%p538_p2)  ;;  %v605_v2 = vld [vmem:[%s3575_s13 + $0x10] sm:$0xff] (!%p538_p2)  ;;  %v3006_v3 = vmov (!%p538_p2), 0.0|0.0   ;;  %p592_p3 = scmp.lt.s32.totalorder (!%p538_p2), %s2525_s30, 1  ;;  %s3592_s1 = sld [smem:[#allocation2_spill]] (!%p538_p2) }
   0xa   : > { %541 = sbr.rel (%p538_p2) target bundleno = 6095 (0x17cf), region = 96  ;;  %2846 = vmatprep.subr.bf16.mxu0 (!%p538_p2), %v3006_v3  ;;  %v2847_v4 = vpack.c.bf16 (!%p538_p2), %v604_v1, %v603_v0  ;;  %v606_v5 = vld [vmem:[%s3575_s13 + $0x18] sm:$0xff] (!%p538_p2)  ;;  %2882 = vmatprep.subr.bf16.mxu1 (!%p538_p2), %v3006_v3  ;;  %v607_v7 = vld [vmem:[%s3575_s13 + $0x20] sm:$0xff] (!%p538_p2)  ;;  %v608_v8 = vld [vmem:[%s3575_s13 + $0x28] sm:$0xff] (!%p538_p2)  ;;  %vm629_vm0 = vcmask (!%p538_p2), 531456   ;;  %v3007_v38 = vmov (!%p538_p2), 0.0  }
   0xb   : > { %v2850_v6 = vpack.c.bf16 (!%p538_p2), %v606_v5, %v605_v2  ;;  %v2853_v9 = vpack.c.bf16 (!%p538_p2), %v608_v8, %v607_v7  ;;  %v609_v10 = vld [vmem:[%s3575_s13 + $0x30] sm:$0xff] (!%p538_p2)  ;;  %v610_v11 = vld [vmem:[%s3575_s13 + $0x38] sm:$0xff] (!%p538_p2)  ;;  %v611_v14 = vld [vmem:[%s3575_s13 + $0x40] sm:$0xff] (!%p538_p2)  ;;  %vm633_vm1 = vcmask (!%p538_p2), 1040384   ;;  %vm709_vm2 = vcmask (!%p538_p2), 258048   ;;  %s3010_s20 = smov (!%p538_p2), 80  }
   0xc   : > { %2848 = vmatpush1.bf16.msra.mxu0 (!%p538_p2), %v2847_v4  ;;  %v2856_v13 = vpack.c.bf16 (!%p538_p2), %v610_v11, %v609_v10  ;;  %v612_v15 = vld [vmem:[%s3575_s13 + $0x48] sm:$0xff] (!%p538_p2)  ;;  %v613_v17 = vld [vmem:[%s3575_s13 + $0x50] sm:$0xff] (!%p538_p2)  ;;  %v614_v18 = vld [vmem:[%s3575_s13 + $0x58] sm:$0xff] (!%p538_p2)  ;;  %vm3008_vm3 = vmmov (!%p538_p2), 0   ;;  %vm778_vm4 = vcmask (!%p538_p2), 261120   ;;  %vm859_vm5 = vcmask (!%p538_p2), 130048  }
   0xd   : > { %2849 = vmatprep.subr.bf16.mxu0 (!%p538_p2), %v3006_v3  ;;  %v2859_v16 = vpack.c.bf16 (!%p538_p2), %v612_v15, %v611_v14  ;;  %v2862_v19 = vpack.c.bf16 (!%p538_p2), %v614_v18, %v613_v17  ;;  %v615_v20 = vld [vmem:[%s3575_s13 + $0x60] sm:$0xff] (!%p538_p2)  ;;  %v616_v21 = vld [vmem:[%s3575_s13 + $0x68] sm:$0xff] (!%p538_p2)  ;;  %v617_v23 = vld [vmem:[%s3575_s13 + $0x70] sm:$0xff] (!%p538_p2)  ;;  %2693 = vmatprep.mubr.msk.f32.mxu1 (!%p538_p2), %vm3008_vm3, %v3007_v38  ;;  %vm935_vm6 = vcmask (!%p538_p2), 36864   ;;  %s3585_s21 = smov (!%p538_p2), 64   ;;  %vm953_vm7 = vcmask (!%p538_p2), 1044480  }
   0xe   : > { %v2865_v22 = vpack.c.bf16 (!%p538_p2), %v616_v21, %v615_v20  ;;  %v618_v24 = vld [vmem:[%s3575_s13 + $0x78] sm:$0xff] (!%p538_p2)  ;;  %v619_v26 = vld [vmem:[%s3575_s13 + $0x80] sm:$0xff] (!%p538_p2)  ;;  %v620_v27 = vld [vmem:[%s3575_s13 + $0x88] sm:$0xff] (!%p538_p2)  ;;  %vm949_vm8 = vcmask (!%p538_p2), 39936   ;;  %s3586_s2 = smov (!%p538_p2), 48   ;;  %s3593_s3 = sld [smem:[#allocation4_spill]] (!%p538_p2) }
   0xf   : > { %v2868_v25 = vpack.c.bf16 (!%p538_p2), %v618_v24, %v617_v23  ;;  %v2871_v28 = vpack.c.bf16 (!%p538_p2), %v620_v27, %v619_v26  ;;  %v621_v29 = vld [vmem:[%s3575_s13 + $0x90] sm:$0xff] (!%p538_p2)  ;;  %v622_v30 = vld [vmem:[%s3575_s13 + $0x98] sm:$0xff] (!%p538_p2)  ;;  %v623_v32 = vld [vmem:[%s3575_s13 + $0xa0] sm:$0xff] (!%p538_p2)  ;;  %s3594_s23 = sld [smem:[#allocation3_spill]] (!%p538_p2)  ;;  %vm1484_vm9 = vcmask (!%p538_p2), 523264   ;;  %s3596_s24 = smov (!%p538_p2), 112  }
  0x10   : > { %2851 = vmatpush1.bf16.msra.mxu0 (!%p538_p2), %v2850_v6  ;;  %v2874_v31 = vpack.c.bf16 (!%p538_p2), %v622_v30, %v621_v29  ;;  %v624_v33 = vld [vmem:[%s3575_s13 + $0xa8] sm:$0xff] (!%p538_p2)  ;;  %v625_v35 = vld [vmem:[%s3575_s13 + $0xb0] sm:$0xff] (!%p538_p2)  ;;  %v626_v36 = vld [vmem:[%s3575_s13 + $0xb8] sm:$0xff] (!%p538_p2)  ;;  %vm2470_vm10 = vcmask (!%p538_p2), 520192  }
  0x11   : > { %s3600_s30 = smov (!%p592_p3, %s2525_s30), 1  ;;  %2852 = vmatprep.subr.bf16.mxu0 %v3006_v3  ;;  %v2877_v34 = vpack.c.bf16 %v624_v33, %v623_v32  ;;  %v2880_v37 = vpack.c.bf16 %v626_v36, %v625_v35  ;;  %v627_v39 = vld [vmem:[%s3575_s13 + $0xc0] sm:$0x1]  ;;  %v768_v4 = vld [vmem:[%s3574_s12 + $0x8] sm:$0xff]  ;;  %v769_v5 = vld [vmem:[%s3574_s12 + $0x10] sm:$0xff] }
  0x12   : > { %s2613_s29 = sshll.u32 %s3600_s30, 4  ;;  %v628_v41 = vld [vmem:[%s3576_s14] sm:$0x1f]  ;;  %v770_v7 = vld [vmem:[%s3574_s12 + $0x18] sm:$0xff]  ;;  %s2532_s25 = sshll.u32 %s3600_s30, 3 }
  0x13   : > { %s3149_s22 = scalar_lea.vmem %s3592_s1, %s2613_s29  ;;  %v2535_v55 = vld [vmem:[%s3578_s16] ss:$0 sm:$0xff]  ;;  %v2886_v8 = vpack.c.bf16 %v770_v7, %v769_v5  ;;  %s3009_s29 = smov 96  }
  0x14   : > { %v602_v12 = vld [vmem:[%s3149_s22 + $0x8] sm:$0x1f]  ;;  %2854 = vmatpush1.bf16.msra.mxu0 %v2853_v9  ;;  %v601_v40 = vld [vmem:[%s3149_s22] sm:$0x1f]  ;;  %s3587_s1 = smov 112   ;;  %s3595_s22 = sld [smem:[#allocation5_spill]] }
  0x15   : > { %2534 = vmatprep.mubr.msk.f32.mxu0 %vm629_vm0, %v602_v12  ;;  %2855 = vmatprep.subr.bf16.mxu0 %v3006_v3  ;;  %v2536_v57 = vld [vmem:[%s3577_s15] ss:$0 sm:$0xff] }
  0x16   : > { %v767_v2 = vld [vmem:[%s3574_s12] sm:$0xff] }
  0x17   : > { %v2883_v6 = vpack.c.bf16 %v768_v4, %v767_v2  ;;  %v2538_v15 = vld [vmem:[%s3567_s5] ss:$0 sm:$0xff] }
  0x18   : > { %2857 = vmatpush1.bf16.msra.mxu0 %v2856_v13  ;;  %v2537_v13 = vld [vmem:[%s3568_s6] ss:$0 sm:$0xff] }
  0x19   : > { %2858 = vmatprep.subr.bf16.mxu0 %v3006_v3  ;;  %2884 = vmatpush3.bf16.msra.mxu1 %v2883_v6  ;;  %v2539_v18 = vld [vmem:[%s3573_s11] ss:$0 sm:$0xff] }
  0x1a   : > { %2885 = vmatprep.subr.bf16.mxu1 %v3006_v3  ;;  %v2551_v2 = vld [vmem:[%s3571_s9] ss:$0 sm:$0xff] }
  0x1c   : > { %2860 = vmatpush1.bf16.msra.mxu0 %v2859_v16 }
  0x1d   : > { %2861 = vmatprep.subr.bf16.mxu0 %v3006_v3  ;;  %2887 = vmatpush3.bf16.msra.mxu1 %v2886_v8 }
  0x1e   : > { %2696 = vmatprep.subr.mxu1 %v3007_v38 }
  0x20   : > { %2863 = vmatpush1.bf16.msra.mxu0 %v2862_v19 }
  0x21   : > { %2864 = vmatprep.subr.bf16.mxu0 %v3006_v3 }
  0x24   : > { %2866 = vmatpush1.bf16.msra.mxu0 %v2865_v22 }
  0x25   : > { %2867 = vmatprep.subr.bf16.mxu0 %v3006_v3 }
  0x28   : > { %2869 = vmatpush1.bf16.msra.mxu0 %v2868_v25 }
  0x29   : > { %2870 = vmatprep.subr.bf16.mxu0 %v3006_v3 }
  0x2c   : > { %2872 = vmatpush1.bf16.msra.mxu0 %v2871_v28 }
  0x2d   : > { %2873 = vmatprep.subr.bf16.mxu0 %v3006_v3 }
  0x30   : > { %2875 = vmatpush1.bf16.msra.mxu0 %v2874_v31 }
  0x31   : > { %2876 = vmatprep.subr.bf16.mxu0 %v3006_v3 }
  0x34   : > { %2878 = vmatpush1.bf16.msra.mxu0 %v2877_v34 }
  0x35   : > { %2879 = vmatprep.subr.bf16.mxu0 %v3006_v3 }
  0x38   : > { %2881 = vmatpush1.bf16.msra.mxu0 %v2880_v37 }
  0x39   : > { %685 = vmatprep.subr.mxu0 %v3007_v38 }
  0x3c   : > { %2533 = vmatpush1.msk.msra.mxu0 %vm633_vm1, %v627_v39 }
  0x3d   : > { %702 = vmatmul.mubr.f32.vlgmr.msra.gmra.mrb[0].mxu0 %v601_v40  ;;  %2912 = vmatprep.subr.bf16.mxu0 %v3006_v3 }
  0x3e   : > { %2768 = vmatprep.mubr.msk.f32.mxu0 %vm3008_vm3, %v3007_v38 }
 0x110   : > { %v703_v42 = vpop.f32.mrb[0].mxu0 }
 0x111   : > { %v704_v43 = vadd.f32 %v703_v42, %v628_v41  ;;  %v705_v44 = vpop.f32.mrb[1].mxu0 }
 0x113   : > { %v710_v45 = vsel %vm709_vm2, %v704_v43, 0.0 }
 0x114   : > { %711 = vadd.xlane.f32.xlu0 %v710_v45 }
 0x1a1   : > { %v712_v46 = vpop.xlane.xlu0 %711 }
 0x1a2   : > { %v714_v47 = vmul.f32 0.03125, %v712_v46 }
 0x1a4   : > { %v715_v48 = vsub.f32 %v704_v43, %v714_v47 }
 0x1a6   : > { %v716_v49 = vmul.f32 %v715_v48, %v715_v48 }
 0x1a8   : > { %v717_v50 = vsel %vm709_vm2, %v716_v49, 0.0 }
 0x1a9   : > { %718 = vadd.xlane.f32.xlu0 %v717_v50 }
 0x236   : > { %v719_v51 = vpop.xlane.xlu0 %718 }
 0x237   : > { %v720_v52 = vmul.f32 0.03125, %v719_v51 }
 0x239   : > { %v721_v53 = vadd.f32 1e-05, %v720_v52  ;;  %v854_v52 = vld [vmem:[%s3572_s10 + $0x10] sm:$0xff] }
 0x23b   : > { %2964 = vrsqrt.f32 %v721_v53  ;;  %v855_v53 = vld [vmem:[%s3572_s10 + $0x18] sm:$0xff] }
 0x245   : > { %v2965_v54 = vpop.eup %2964 }
 0x246   : > { %v723_v56 = vmul.f32 %v2965_v54, %v715_v48 }
 0x248   : > { %v730_v58 = vmul.f32 %v2535_v55, %v723_v56  ;;  %v2889_v55 = vpack.c.bf16 %v855_v53, %v854_v52 }
 0x24a   : > { %v3233_v59 = vadd.f32 %v2536_v57, %v730_v58  ;;  %v852_v57 = vld [vmem:[%s3572_s10] sm:$0xff]  ;;  %v853_v58 = vld [vmem:[%s3572_s10 + $0x8] sm:$0xff] }
 0x24c   : > { %v740_v60 = vsel %vm709_vm2, %v3233_v59, 0.0 }
 0x24d   : > { %741 = vadd.xlane.f32.xlu1 %v740_v60  ;;  %v2892_v60 = vpack.c.bf16 %v853_v58, %v852_v57 }
 0x2da   : > { %v742_v61 = vpop.xlane.xlu1 %741 }
 0x2db   : > { %v743_v62 = vmul.f32 0.03125, %v742_v61 }
 0x2dd   : > { %v744_v63 = vsub.f32 %v3233_v59, %v743_v62 }
 0x2df   : > { %v745_v0 = vmul.f32 %v744_v63, %v744_v63 }
 0x2e1   : > { %v746_v1 = vsel %vm709_vm2, %v745_v0, 0.0 }
 0x2e2   : > { %747 = vadd.xlane.f32.xlu1 %v746_v1 }
 0x36f   : > { %v748_v9 = vpop.xlane.xlu1 %747 }
 0x370   : > { %v749_v10 = vmul.f32 0.03125, %v748_v9 }
 0x372   : > { %v750_v11 = vadd.f32 1e-05, %v749_v10 }
 0x374   : > { %2966 = vrsqrt.f32 %v750_v11 }
 0x37e   : > { %v2967_v12 = vpop.eup %2966 }
 0x37f   : > { %v752_v14 = vmul.f32 %v2967_v12, %v744_v63 }
 0x381   : > { %v759_v16 = vmul.f32 %v2537_v13, %v752_v14  ;;  %v1377_v14 = vld [vmem:[%s3593_s3] sm:$0xff] }
 0x383   : > { %v766_v17 = vadd.f32 %v2538_v15, %v759_v16  ;;  %v1379_v16 = vld [vmem:[%s3593_s3 + $0x10] sm:$0xff] }
 0x385   : > { %2694 = vmatmul.mubr.msk.f32.vlgmr.msra.gmra.mrb[0].mxu1 %vm778_vm4, %v766_v17  ;;  %v1380_v17 = vld [vmem:[%s3593_s3 + $0x18] sm:$0xff] }
 0x386   : > { %2698 = vmatprep.mubr.msk.f32.mxu1 %vm3008_vm3, %v3007_v38 }
 0x458   : > { %v848_v19 = vpop.f32.mrb[0].mxu1 }
 0x459   : > { %v849_v20 = vadd.f32 %v2539_v18, %v848_v19  ;;  %v2695_v21 = vpop.f32.mrb[1].mxu1  ;;  %v2898_v18 = vpack.c.bf16 %v1380_v17, %v1379_v16 }
 0x45b   : > { %857 = vrot.lane.b32.xlu0 %v849_v20, %s3009_s29 }
 0x45f   : > { %1028 = vrot.lane.b32.xlu0 %v849_v20, %s3010_s20 }
 0x4cd   : > { %v858_v22 = vpop.permute.xlu0 %857 }
 0x4ce   : > { %2697 = vmatpush3.xpose.msk.msra.mxu1 %vm859_vm5, %v858_v22 }
 0x4cf   : > { %2701 = vmatprep.subr.mxu1 %v3007_v38 }
 0x4d1   : > { %2699 = vmatmul.mubr.msk.f32.vlgmr.msra.gmra.mrb[2].mxu1 %vm859_vm5, %v849_v20  ;;  %v1029_v36 = vpop.permute.xlu0 %1028 }
 0x4d2   : > { %2703 = vmatprep.mubr.msk.f32.mxu1 %vm3008_vm3, %v3007_v38 }
 0x5a4   : > { %v930_v23 = vpop.f32.mrb[2].mxu1 }
 0x5a5   : > { %v934_v24 = vmul.f32 0.25, %v930_v23  ;;  %v2700_v25 = vpop.f32.mrb[3].mxu1  ;;  %v2552_v23 = vld [vmem:[%s3570_s8] ss:$0 sm:$0xff] }
 0x5a6   : > { %v2553_v25 = vld [vmem:[%s3569_s7] ss:$0 sm:$0xff] }
 0x5a7   : > { %v936_v26 = vsel %vm935_vm6, %v934_v24, -inf }
 0x5a8   : > { %937 = vmax.xlane.f32.xlu1 %v936_v26 }
 0x5b9   : > { %947 = vrot.lane.b32.xlu1 %v849_v20, %s3585_s21 }
 0x635   : > { %v938_v27 = vpop.xlane.xlu1 %937 }
 0x636   : > { %v939_v28 = vsub.f32 %v934_v24, %v938_v27 }
 0x638   : > { %v940_v29 = vmul.f32 1.442695, %v939_v28  ;;  %v1469_v28 = vld [vmem:[%s3566_s4] sm:$0xff] }
 0x639   : > { %v948_v30 = vpop.permute.xlu1 %947 }
 0x63a   : > { %2968 = vpow2.f32 %v940_v29  ;;  %2702 = vmatpush3.msk.msra.mxu1 %vm953_vm7, %v948_v30  ;;  %v1470_v29 = vld [vmem:[%s3566_s4 + $0x8] sm:$0xff] }
 0x63b   : > { %2706 = vmatprep.subr.mxu1 %v3007_v38  ;;  %v2901_v30 = vpack.c.bf16 %v1470_v29, %v1469_v28 }
 0x644   : > { %v2969_v31 = vpop.eup %2968 }
 0x645   : > { %v942_v32 = vsel %vm935_vm6, %v2969_v31, 0.0 }
 0x646   : > { %943 = vadd.xlane.f32.xlu1 %v942_v32  ;;  %v1472_v32 = vld [vmem:[%s3566_s4 + $0x18] sm:$0xff] }
 0x657   : > { %1026 = vrot.lane.b32.xlu1 %v849_v20, %s3587_s1  ;;  %s600_s1 = scalar_lea.vmem %s3581_s19, %s2532_s25 }
 0x6d3   : > { %v944_v33 = vpop.xlane.xlu1 %943 }
 0x6d4   : > { %2970 = vrcp.f32 %v944_v33 }
 0x6d7   : > { %v1027_v37 = vpop.permute.xlu1 %1026 }
 0x6de   : > { %v2971_v34 = vpop.eup %2970 }
 0x6df   : > { %v946_v35 = vmul.f32 %v2971_v34, %v2969_v31  ;;  %v1471_v31 = vld [vmem:[%s3566_s4 + $0x10] sm:$0xff]  ;;  %v1473_v34 = vld [vmem:[%s3566_s4 + $0x20] sm:$0xff] }
 0x6e0   : > { %v2904_v33 = vpack.c.bf16 %v1472_v32, %v1471_v31 }
 0x6e1   : > { %2704 = vmatmul.mubr.msk.f32.vlgmr.msra.gmra.mrb[4].mxu1 %vm949_vm8, %v946_v35  ;;  %v1474_v35 = vld [vmem:[%s3566_s4 + $0x28] sm:$0xff] }
 0x6e2   : > { %2707 = vmatpush3.xpose.msk.msra.mxu1 %vm859_vm5, %v1029_v36  ;;  %2708 = vmatprep.mubr.msk.f32.mxu1 %vm3008_vm3, %v3007_v38  ;;  %v2907_v36 = vpack.c.bf16 %v1474_v35, %v1473_v34 }
 0x6e3   : > { %2711 = vmatprep.subr.mxu1 %v3007_v38 }
 0x6e5   : > { %2709 = vmatmul.mubr.msk.f32.vlgmr.msra.gmra.mrb[6].mxu1 %vm859_vm5, %v1027_v37  ;;  %v1475_v37 = vld [vmem:[%s3566_s4 + $0x30] sm:$0xff] }
 0x6e6   : > { %2713 = vmatprep.mubr.msk.f32.mxu1 %vm3008_vm3, %v3007_v38 }
 0x7b4   : > { %v1022_v39 = vpop.f32.mrb[4].mxu1 }
 0x7b5   : > { %v2705_v40 = vpop.f32.mrb[5].mxu1 }
 0x7b8   : > { %v1100_v41 = vpop.f32.mrb[6].mxu1 }
 0x7b9   : > { %v1104_v42 = vmul.f32 0.25, %v1100_v41  ;;  %v2710_v43 = vpop.f32.mrb[7].mxu1  ;;  %v2554_v41 = vld [vmem:[%s3594_s23] ss:$0 sm:$0xff] }
 0x7bb   : > { %v1105_v44 = vsel %vm935_vm6, %v1104_v42, -inf }
 0x7bc   : > { %1106 = vmax.xlane.f32.xlu0 %v1105_v44 }
 0x7d2   : > { %1116 = vrot.lane.b32.xlu0 %v849_v20, %s3586_s2 }
 0x849   : > { %v1107_v45 = vpop.xlane.xlu0 %1106 }
 0x84a   : > { %v1108_v46 = vsub.f32 %v1104_v42, %v1107_v45 }
 0x84c   : > { %v1109_v47 = vmul.f32 1.442695, %v1108_v46 }
 0x84d   : > { %v1117_v48 = vpop.permute.xlu0 %1116 }
 0x84e   : > { %2972 = vpow2.f32 %v1109_v47  ;;  %2712 = vmatpush3.msk.msra.mxu1 %vm953_vm7, %v1117_v48 }
 0x84f   : > { %2888 = vmatprep.subr.bf16.mxu1 %v3006_v3 }
 0x858   : > { %v2973_v49 = vpop.eup %2972 }
 0x859   : > { %v1111_v50 = vsel %vm935_vm6, %v2973_v49, 0.0 }
 0x85a   : > { %1112 = vadd.xlane.f32.xlu1 %v1111_v50 }
 0x8e7   : > { %v1113_v51 = vpop.xlane.xlu1 %1112 }
 0x8e8   : > { %2974 = vrcp.f32 %v1113_v51  ;;  %v2557_v51 = vld [vmem:[%s3595_s22] ss:$0 sm:$0xff] }
 0x8f2   : > { %v2975_v54 = vpop.eup %2974 }
 0x8f3   : > { %v1115_v56 = vmul.f32 %v2975_v54, %v2973_v49 }
 0x8f5   : > { %2714 = vmatmul.mubr.msk.f32.vlgmr.msra.gmra.mrb[8].mxu1 %vm949_vm8, %v1115_v56 }
 0x8f6   : > { %2890 = vmatpush3.bf16.msra.mxu1 %v2889_v55  ;;  %2720 = vmatprep.mubr.msk.f32.mxu1 %vm3008_vm3, %v3007_v38 }
 0x8f7   : > { %2891 = vmatprep.subr.bf16.mxu1 %v3006_v3 }
 0x9c8   : > { %v1189_v61 = vpop.f32.mrb[8].mxu1 }
 0x9c9   : > { %v2715_v62 = vpop.f32.mrb[9].mxu1  ;;  %2721 = vmatmul.mubr.msk.f32.vlgmr.msra.gmra.mrb[10].mxu1 %vm859_vm5, %v1189_v61 }
 0x9ca   : > { %2893 = vmatpush3.bf16.msra.mxu1 %v2892_v60  ;;  %2727 = vmatprep.mubr.msk.f32.mxu1 %vm3008_vm3, %v3007_v38 }
 0x9cb   : > { %2894 = vmatprep.subr.bf16.mxu1 %v3006_v3 }
 0x9cd   : > { %2728 = vmatmul.mubr.msk.f32.vlgmr.msra.gmra.mrb[12].mxu1 %vm859_vm5, %v1022_v39  ;;  %v1476_v39 = vld [vmem:[%s3566_s4 + $0x38] sm:$0xff] }
 0x9ce   : > { %2738 = vmatprep.mubr.msk.f32.mxu1 %vm3008_vm3, %v3007_v38  ;;  %v2910_v40 = vpack.c.bf16 %v1476_v39, %v1475_v37 }
 0xa9c   : > { %v1262_v63 = vpop.f32.mrb[10].mxu1 }
 0xa9d   : > { %v2722_v0 = vpop.f32.mrb[11].mxu1 }
 0xa9e   : > { %v2564_v0 = vld [vmem:[%s3574_s12 + $0x28] sm:$0xff] }
 0xaa0   : > { %v1335_v1 = vpop.f32.mrb[12].mxu1 }
 0xaa1   : > { %v1336_v4 = vadd.f32 %v1335_v1, %v1262_v63  ;;  %v2729_v5 = vpop.f32.mrb[13].mxu1  ;;  %v2563_v63 = vld [vmem:[%s3574_s12 + $0x20] sm:$0xff] }
 0xaa2   : > { %v2913_v1 = vpack.c.bf16 %v2564_v0, %v2563_v63  ;;  %v2585_v63 = vld [vmem:[%s3571_s9 + $0x1] ss:$0 sm:$0xff] }
 0xaa3   : > { %v1346_v6 = vadd.f32 %v2551_v2, %v1336_v4  ;;  %v2565_v2 = vld [vmem:[%s3574_s12 + $0x30] sm:$0xff]  ;;  %v2566_v4 = vld [vmem:[%s3574_s12 + $0x38] sm:$0xff] }
 0xaa4   : > { %2914 = vmatpush3.bf16.msra.mxu0 %v2913_v1  ;;  %v2916_v5 = vpack.c.bf16 %v2566_v4, %v2565_v2 }
 0xaa5   : > { %v3322_v7 = vadd.f32 %v1346_v6, %v3233_v59  ;;  %v1378_v59 = vld [vmem:[%s3593_s3 + $0x8] sm:$0xff]  ;;  %2915 = vmatprep.subr.bf16.mxu0 %v3006_v3 }
 0xaa6   : > { %v2895_v15 = vpack.c.bf16 %v1378_v59, %v1377_v14  ;;  %v2568_v59 = vld [vmem:[%s3573_s11 + $0x1] ss:$0 sm:$0xff] }
 0xaa7   : > { %v1350_v8 = vsel %vm709_vm2, %v3322_v7, 0.0 }
 0xaa8   : > { %1351 = vadd.xlane.f32.xlu1 %v1350_v8  ;;  %2896 = vmatpush3.bf16.msra.mxu1 %v2895_v15 }
 0xaa9   : > { %2897 = vmatprep.subr.bf16.mxu1 %v3006_v3  ;;  %2917 = vmatpush3.bf16.msra.mxu0 %v2916_v5 }
 0xaaa   : > { %2776 = vmatprep.subr.mxu0 %v3007_v38 }
 0xaac   : > { %2899 = vmatpush3.bf16.msra.mxu1 %v2898_v18 }
 0xaad   : > { %2900 = vmatprep.subr.bf16.mxu1 %v3006_v3 }
 0xb35   : > { %v1352_v9 = vpop.xlane.xlu1 %1351 }
 0xb36   : > { %v1353_v10 = vmul.f32 0.03125, %v1352_v9 }
 0xb38   : > { %v1354_v11 = vsub.f32 %v3322_v7, %v1353_v10  ;;  %v2561_v10 = vld [vmem:[%s3568_s6 + $0x1] ss:$0 sm:$0xff] }
 0xb3a   : > { %v1355_v12 = vmul.f32 %v1354_v11, %v1354_v11 }
 0xb3c   : > { %v1356_v13 = vsel %vm709_vm2, %v1355_v12, 0.0  ;;  %v2562_v12 = vld [vmem:[%s3567_s5 + $0x1] ss:$0 sm:$0xff] }
 0xb3d   : > { %1357 = vadd.xlane.f32.xlu1 %v1356_v13 }
 0xbca   : > { %v1358_v19 = vpop.xlane.xlu1 %1357 }
 0xbcb   : > { %v1359_v20 = vmul.f32 0.03125, %v1358_v19 }
 0xbcd   : > { %v1360_v21 = vadd.f32 1e-05, %v1359_v20 }
 0xbcf   : > { %2976 = vrsqrt.f32 %v1360_v21 }
 0xbd9   : > { %v2977_v22 = vpop.eup %2976 }
 0xbda   : > { %v1362_v24 = vmul.f32 %v2977_v22, %v1354_v11 }
 0xbdc   : > { %v1369_v26 = vmul.f32 %v2552_v23, %v1362_v24 }
 0xbde   : > { %v1376_v27 = vadd.f32 %v2553_v25, %v1369_v26 }
 0xbe0   : > { %2739 = vmatmul.mubr.msk.f32.vlgmr.msra.gmra.mrb[14].mxu1 %vm778_vm4, %v1376_v27 }
 0xbe1   : > { %2757 = vmatprep.mubr.msk.f32.mxu1 %vm3008_vm3, %v3007_v38  ;;  %2902 = vmatpush3.bf16.msra.mxu1 %v2901_v30 }
 0xbe2   : > { %2903 = vmatprep.subr.bf16.mxu1 %v3006_v3 }
 0xbe5   : > { %2905 = vmatpush3.bf16.msra.mxu1 %v2904_v33 }
 0xbe6   : > { %2906 = vmatprep.subr.bf16.mxu1 %v3006_v3 }
 0xbe9   : > { %2908 = vmatpush3.bf16.msra.mxu1 %v2907_v36 }
 0xbea   : > { %2909 = vmatprep.subr.bf16.mxu1 %v3006_v3 }
 0xbed   : > { %2911 = vmatpush3.bf16.msra.mxu1 %v2910_v40 }
 0xbee   : > { %2771 = vmatprep.subr.mxu1 %v3007_v38 }
 0xcb3   : > { %v1457_v42 = vpop.f32.mrb[14].mxu1 }
 0xcb4   : > { %v1458_v43 = vadd.f32 %v2554_v41, %v1457_v42  ;;  %v2740_v44 = vpop.f32.mrb[15].mxu1 }
 0xcb6   : > { %v2556_v45 = vmul.f32 -1.702, %v1458_v43 }
 0xcb8   : > { %v1463_v46 = vmul.f32 1.442695, %v2556_v45  ;;  %v2570_v45 = vld [vmem:[%s3572_s10 + $0x20] sm:$0xff] }
 0xcba   : > { %2978 = vpow2.f32 %v1463_v46  ;;  %v2571_v46 = vld [vmem:[%s3572_s10 + $0x28] sm:$0xff] }
 0xcc4   : > { %v2979_v47 = vpop.eup %2978 }
 0xcc5   : > { %v1465_v48 = vadd.f32 1.0, %v2979_v47 }
 0xcc7   : > { %2980 = vrcp.f32 %v1465_v48 }
 0xcd1   : > { %v2981_v49 = vpop.eup %2980 }
 0xcd2   : > { %v1468_v50 = vmul.f32 %v2981_v49, %v1458_v43  ;;  %v2922_v49 = vpack.c.bf16 %v2571_v46, %v2570_v45 }
 0xcd4   : > { %2758 = vmatmul.mubr.msk.f32.vlgmr.msra.gmra.mrb[16].mxu1 %vm1484_vm9, %v1468_v50 }
 0xcd5   : > { %2773 = vmatprep.mubr.msk.f32.mxu1 %vm3008_vm3, %v3007_v38 }
 0xda7   : > { %v1554_v52 = vpop.f32.mrb[16].mxu1 }
 0xda8   : > { %v1555_v53 = vadd.f32 %v2557_v51, %v1554_v52  ;;  %v2759_v54 = vpop.f32.mrb[17].mxu1  ;;  %v2572_v51 = vld [vmem:[%s3572_s10 + $0x30] sm:$0xff]  ;;  %v2573_v52 = vld [vmem:[%s3572_s10 + $0x38] sm:$0xff] }
 0xdaa   : > { %v3389_v55 = vadd.f32 %v1555_v53, %v3322_v7  ;;  %v2919_v53 = vpack.c.bf16 %v2573_v52, %v2572_v51  ;;  %v2607_v51 = vld [vmem:[%s3595_s22 + $0x1] ss:$0 sm:$0xff] }
 0xdac   : > { %v1563_v56 = vsel %vm709_vm2, %v3389_v55, 0.0 }
 0xdad   : > { %1564 = vadd.xlane.f32.xlu1 %v1563_v56 }
 0xe3a   : > { %v1565_v57 = vpop.xlane.xlu1 %1564 }
 0xe3b   : > { %v1566_v58 = vmul.f32 0.03125, %v1565_v57 }
 0xe3d   : > { %v1567_v60 = vsub.f32 %v3389_v55, %v1566_v58 }
 0xe3f   : > { %v1568_v61 = vmul.f32 %v1567_v60, %v1567_v60 }
 0xe41   : > { %v1569_v62 = vsel %vm709_vm2, %v1568_v61, 0.0 }
 0xe42   : > { %1570 = vadd.xlane.f32.xlu1 %v1569_v62 }
 0xecf   : > { %v1571_v6 = vpop.xlane.xlu1 %1570 }
 0xed0   : > { %v1572_v7 = vmul.f32 0.03125, %v1571_v6 }
 0xed2   : > { %v1573_v8 = vadd.f32 1e-05, %v1572_v7 }
 0xed4   : > { %2982 = vrsqrt.f32 %v1573_v8 }
 0xede   : > { %v2983_v9 = vpop.eup %2982 }
 0xedf   : > { %v1575_v11 = vmul.f32 %v2983_v9, %v1567_v60 }
 0xee1   : > { %v1582_v13 = vmul.f32 %v2561_v10, %v1575_v11  ;;  %v2590_v11 = vld [vmem:[%s3593_s3 + $0x20] sm:$0xff] }
 0xee3   : > { %v1589_v14 = vadd.f32 %v2562_v12, %v1582_v13  ;;  %v2592_v13 = vld [vmem:[%s3593_s3 + $0x30] sm:$0xff] }
 0xee5   : > { %2769 = vmatmul.mubr.msk.f32.vlgmr.msra.gmra.mrb[2].mxu0 %vm778_vm4, %v1589_v14  ;;  %v2593_v14 = vld [vmem:[%s3593_s3 + $0x38] sm:$0xff] }
 0xee6   : > { %2778 = vmatprep.mubr.msk.f32.mxu0 %vm3008_vm3, %v3007_v38 }
 0xfb8   : > { %v1672_v15 = vpop.f32.mrb[2].mxu0 }
 0xfb9   : > { %v1673_v16 = vadd.f32 %v2568_v59, %v1672_v15  ;;  %v2770_v17 = vpop.f32.mrb[3].mxu0  ;;  %v2928_v59 = vpack.c.bf16 %v2593_v14, %v2592_v13 }
 0xfbb   : > { %1849 = vrot.lane.b32.xlu1 %v1673_v16, %s3010_s20  ;;  %1682 = vrot.lane.b32.xlu0 %v1673_v16, %s3009_s29  ;;  %s3597_s29 = smov 48   ;;  %s3598_s20 = smov 64  }
 0xfbf   : > { %1847 = vrot.lane.b32.xlu0 %v1673_v16, %s3596_s24 }
0x102d   : > { %v1683_v18 = vpop.permute.xlu0 %1682  ;;  %v1850_v19 = vpop.permute.xlu1 %1849 }
0x102e   : > { %2772 = vmatpush3.xpose.msk.msra.mxu1 %vm859_vm5, %v1683_v18 }
0x102f   : > { %2781 = vmatprep.subr.mxu1 %v3007_v38 }
0x1031   : > { %2774 = vmatmul.mubr.msk.f32.vlgmr.msra.gmra.mrb[18].mxu1 %vm859_vm5, %v1673_v16  ;;  %v1848_v20 = vpop.permute.xlu0 %1847 }
0x1032   : > { %2782 = vmatpush3.xpose.msk.msra.mxu1 %vm859_vm5, %v1850_v19  ;;  %2783 = vmatprep.mubr.msk.f32.mxu1 %vm3008_vm3, %v3007_v38  ;;  %v2588_v19 = vld [vmem:[%s3570_s8 + $0x1] ss:$0 sm:$0xff] }
0x1033   : > { %2918 = vmatprep.subr.bf16.mxu1 %v3006_v3 }
0x1035   : > { %2784 = vmatmul.mubr.msk.f32.vlgmr.msra.gmra.mrb[20].mxu1 %vm859_vm5, %v1848_v20 }
0x1036   : > { %2795 = vmatprep.mubr.msk.f32.mxu1 %vm3008_vm3, %v3007_v38  ;;  %2920 = vmatpush3.bf16.msra.mxu1 %v2919_v53 }
0x1037   : > { %2924 = vmatprep.subr.bf16.mxu1 %v3006_v3 }
0x1104   : > { %v1754_v21 = vpop.f32.mrb[18].mxu1 }
0x1105   : > { %v1758_v22 = vmul.f32 0.25, %v1754_v21  ;;  %v2775_v23 = vpop.f32.mrb[19].mxu1  ;;  %v2589_v21 = vld [vmem:[%s3569_s7 + $0x1] ss:$0 sm:$0xff] }
0x1107   : > { %v1759_v24 = vsel %vm935_vm6, %v1758_v22, -inf }
0x1108   : > { %1760 = vmax.xlane.f32.xlu0 %v1759_v24  ;;  %v1921_v25 = vpop.f32.mrb[20].mxu1  ;;  %v2598_v24 = vld [vmem:[%s3566_s4 + $0x40] sm:$0xff] }
0x1109   : > { %v1925_v26 = vmul.f32 0.25, %v1921_v25  ;;  %v2785_v27 = vpop.f32.mrb[21].mxu1  ;;  %v2599_v25 = vld [vmem:[%s3566_s4 + $0x48] sm:$0xff] }
0x110a   : > { %v2600_v27 = vld [vmem:[%s3566_s4 + $0x50] sm:$0xff] }
0x110b   : > { %v1926_v28 = vsel %vm935_vm6, %v1925_v26, -inf }
0x110c   : > { %1927 = vmax.xlane.f32.xlu1 %v1926_v28 }
0x111d   : > { %1937 = vrot.lane.b32.xlu1 %v1673_v16, %s3597_s29 }
0x1195   : > { %v1761_v29 = vpop.xlane.xlu0 %1760 }
0x1196   : > { %v1762_v30 = vsub.f32 %v1758_v22, %v1761_v29  ;;  %v2602_v29 = vld [vmem:[%s3566_s4 + $0x60] sm:$0xff] }
0x1198   : > { %v1763_v31 = vmul.f32 1.442695, %v1762_v30  ;;  %v2603_v30 = vld [vmem:[%s3566_s4 + $0x68] sm:$0xff] }
0x1199   : > { %v1928_v32 = vpop.xlane.xlu1 %1927 }
0x119a   : > { %2984 = vpow2.f32 %v1763_v31  ;;  %v1929_v33 = vsub.f32 %v1925_v26, %v1928_v32  ;;  %v2931_v26 = vpack.c.bf16 %v2599_v25, %v2598_v24  ;;  %v2937_v31 = vpack.c.bf16 %v2603_v30, %v2602_v29  ;;  %v2604_v32 = vld [vmem:[%s3566_s4 + $0x70] sm:$0xff] }
0x119c   : > { %v1930_v34 = vmul.f32 1.442695, %v1929_v33  ;;  %v2605_v33 = vld [vmem:[%s3566_s4 + $0x78] sm:$0xff] }
0x119d   : > { %v1938_v47 = vpop.permute.xlu1 %1937 }
0x119e   : > { %2986 = vpow2.f32 %v1930_v34  ;;  %v2940_v34 = vpack.c.bf16 %v2605_v33, %v2604_v32 }
0x11a4   : > { %v2985_v35 = vpop.eup %2984 }
0x11a5   : > { %v1765_v36 = vsel %vm935_vm6, %v2985_v35, 0.0 }
0x11a6   : > { %1766 = vadd.xlane.f32.xlu0 %v1765_v36  ;;  %v2387_v36 = vld [vmem:[%s3580_s18 + $0x8] sm:$0xff] }
0x11a8   : > { %v2987_v37 = vpop.eup %2986 }
0x11a9   : > { %v1932_v39 = vsel %vm935_vm6, %v2987_v37, 0.0 }
0x11aa   : > { %1933 = vadd.xlane.f32.xlu0 %v1932_v39  ;;  %v2595_v39 = vld [vmem:[%s3594_s23 + $0x1] ss:$0 sm:$0xff] }
0x11c0   : > { %1770 = vrot.lane.b32.xlu0 %v1673_v16, %s3598_s20 }
0x1233   : > { %v1767_v40 = vpop.xlane.xlu0 %1766 }
0x1234   : > { %2988 = vrcp.f32 %v1767_v40 }
0x1237   : > { %v1934_v41 = vpop.xlane.xlu0 %1933 }
0x1238   : > { %2990 = vrcp.f32 %v1934_v41 }
0x123b   : > { %v1771_v42 = vpop.permute.xlu0 %1770 }
0x123c   : > { %2777 = vmatpush3.msk.msra.mxu0 %vm953_vm7, %v1771_v42 }
0x123d   : > { %2786 = vmatprep.subr.mxu0 %v3007_v38 }
0x123e   : > { %v2989_v43 = vpop.eup %2988 }
0x123f   : > { %v1769_v44 = vmul.f32 %v2989_v43, %v2985_v35  ;;  %v2386_v35 = vld [vmem:[%s3580_s18] sm:$0xff] }
0x1241   : > { %2779 = vmatmul.mubr.msk.f32.vlgmr.msra.gmra.mrb[4].mxu0 %vm949_vm8, %v1769_v44 }
0x1242   : > { %v2991_v48 = vpop.eup %2990  ;;  %2787 = vmatpush3.msk.msra.mxu0 %vm953_vm7, %v1938_v47  ;;  %2788 = vmatprep.mubr.msk.f32.mxu0 %vm3008_vm3, %v3007_v38 }
0x1243   : > { %v1936_v50 = vmul.f32 %v2991_v48, %v2987_v37  ;;  %2921 = vmatprep.subr.bf16.mxu0 %v3006_v3  ;;  %v2943_v37 = vpack.c.bf16 %v2387_v36, %v2386_v35 }
0x1245   : > { %2789 = vmatmul.mubr.msk.f32.vlgmr.msra.gmra.mrb[6].mxu0 %vm949_vm8, %v1936_v50 }
0x1246   : > { %2923 = vmatpush3.bf16.msra.mxu0 %v2922_v49  ;;  %2802 = vmatprep.mubr.msk.f32.mxu0 %vm3008_vm3, %v3007_v38  ;;  %v2389_v49 = vld [vmem:[%s3580_s18 + $0x18] sm:$0xff] }
0x1247   : > { %2930 = vmatprep.subr.bf16.mxu0 %v3006_v3 }
0x1314   : > { %v1843_v54 = vpop.f32.mrb[4].mxu0 }
0x1315   : > { %v2780_v56 = vpop.f32.mrb[5].mxu0  ;;  %2803 = vmatmul.mubr.msk.f32.vlgmr.msra.gmra.mrb[8].mxu0 %vm859_vm5, %v1843_v54 }
0x1316   : > { %2832 = vmatprep.mubr.msk.f32.mxu0 %vm3008_vm3, %v3007_v38  ;;  %2932 = vmatpush3.bf16.msra.mxu0 %v2931_v26 }
0x1317   : > { %2933 = vmatprep.subr.bf16.mxu0 %v3006_v3 }
0x1318   : > { %v2010_v57 = vpop.f32.mrb[6].mxu0 }
0x1319   : > { %v2790_v58 = vpop.f32.mrb[7].mxu0  ;;  %2796 = vmatmul.mubr.msk.f32.vlgmr.msra.gmra.mrb[22].mxu1 %vm859_vm5, %v2010_v57  ;;  %v2609_v57 = vld [vmem:[%s3579_s17] ss:$0 sm:$0xff] }
0x131a   : > { %2813 = vmatprep.mubr.msk.f32.mxu1 %vm3008_vm3, %v3007_v38 }
0x13e8   : > { %v2156_v60 = vpop.f32.mrb[8].mxu0 }
0x13e9   : > { %v2804_v61 = vpop.f32.mrb[9].mxu0 }
0x13ec   : > { %v2083_v62 = vpop.f32.mrb[22].mxu1 }
0x13ed   : > { %v2157_v0 = vadd.f32 %v2156_v60, %v2083_v62  ;;  %v2797_v1 = vpop.f32.mrb[23].mxu1 }
0x13ef   : > { %v2168_v2 = vadd.f32 %v2585_v63, %v2157_v0 }
0x13f1   : > { %v3474_v4 = vadd.f32 %v2168_v2, %v3389_v55  ;;  %v2591_v55 = vld [vmem:[%s3593_s3 + $0x28] sm:$0xff] }
0x13f2   : > { %v2925_v12 = vpack.c.bf16 %v2591_v55, %v2590_v11 }
0x13f3   : > { %v2174_v5 = vsel %vm709_vm2, %v3474_v4, 0.0 }
0x13f4   : > { %2175 = vadd.xlane.f32.xlu0 %v2174_v5  ;;  %2926 = vmatpush3.bf16.msra.mxu1 %v2925_v12 }
0x13f5   : > { %2927 = vmatprep.subr.bf16.mxu1 %v3006_v3 }
0x13f8   : > { %2929 = vmatpush3.bf16.msra.mxu1 %v2928_v59 }
0x13f9   : > { %2942 = vmatprep.subr.bf16.mxu1 %v3006_v3 }
0x1481   : > { %v2176_v6 = vpop.xlane.xlu0 %2175 }
0x1482   : > { %v2177_v7 = vmul.f32 0.03125, %v2176_v6 }
0x1484   : > { %v2178_v8 = vsub.f32 %v3474_v4, %v2177_v7 }
0x1486   : > { %v2179_v9 = vmul.f32 %v2178_v8, %v2178_v8 }
0x1488   : > { %v2180_v10 = vsel %vm709_vm2, %v2179_v9, 0.0 }
0x1489   : > { %2181 = vadd.xlane.f32.xlu1 %v2180_v10 }
0x1516   : > { %v2182_v15 = vpop.xlane.xlu1 %2181 }
0x1517   : > { %v2183_v16 = vmul.f32 0.03125, %v2182_v15 }
0x1519   : > { %v2184_v17 = vadd.f32 1e-05, %v2183_v16 }
0x151b   : > { %2992 = vrsqrt.f32 %v2184_v17 }
0x1525   : > { %v2993_v18 = vpop.eup %2992 }
0x1526   : > { %v2186_v20 = vmul.f32 %v2993_v18, %v2178_v8 }
0x1528   : > { %v2193_v22 = vmul.f32 %v2588_v19, %v2186_v20 }
0x152a   : > { %v2200_v23 = vadd.f32 %v2589_v21, %v2193_v22 }
0x152c   : > { %2814 = vmatmul.mubr.msk.f32.vlgmr.msra.gmra.mrb[24].mxu1 %vm778_vm4, %v2200_v23 }
0x152d   : > { %2843 = vmatprep.mubr.msk.f32.mxu1 %vm3008_vm3, %v3007_v38  ;;  %v2601_v38 = vld [vmem:[%s3566_s4 + $0x58] sm:$0xff]  ;;  %2944 = vmatpush3.bf16.msra.mxu1 %v2943_v37 }
0x152e   : > { %v2934_v28 = vpack.c.bf16 %v2601_v38, %v2600_v27  ;;  %2945 = vmatprep.subr.bf16.mxu1 %v3006_v3 }
0x1530   : > { %2935 = vmatpush3.bf16.msra.mxu0 %v2934_v28 }
0x1531   : > { %2936 = vmatprep.subr.bf16.mxu0 %v3006_v3 }
0x1534   : > { %2938 = vmatpush3.bf16.msra.mxu0 %v2937_v31 }
0x1535   : > { %2939 = vmatprep.subr.bf16.mxu0 %v3006_v3  ;;  %v2388_v3 = vld [vmem:[%s3580_s18 + $0x10] sm:$0xff] }
0x1536   : > { %v2946_v50 = vpack.c.bf16 %v2389_v49, %v2388_v3 }
0x1538   : > { %2941 = vmatpush3.bf16.msra.mxu0 %v2940_v34  ;;  %2947 = vmatpush3.bf16.msra.mxu1 %v2946_v50 }
0x15ff   : > { %v2283_v40 = vpop.f32.mrb[24].mxu1 }
0x1600   : > { %v2284_v41 = vadd.f32 %v2595_v39, %v2283_v40  ;;  %v2815_v42 = vpop.f32.mrb[25].mxu1 }
0x1602   : > { %v2597_v43 = vmul.f32 -1.702, %v2284_v41 }
0x1604   : > { %v2289_v44 = vmul.f32 1.442695, %v2597_v43 }
0x1606   : > { %2994 = vpow2.f32 %v2289_v44 }
0x1610   : > { %v2995_v45 = vpop.eup %2994 }
0x1611   : > { %v2291_v46 = vadd.f32 1.0, %v2995_v45 }
0x1613   : > { %2996 = vrcp.f32 %v2291_v46 }
0x161d   : > { %v2997_v47 = vpop.eup %2996 }
0x161e   : > { %v2294_v48 = vmul.f32 %v2997_v47, %v2284_v41 }
0x1620   : > { %2833 = vmatmul.mubr.msk.f32.vlgmr.msra.gmra.mrb[10].mxu0 %vm1484_vm9, %v2294_v48 }
0x16f3   : > { %v2381_v52 = vpop.f32.mrb[10].mxu0 }
0x16f4   : > { %v2382_v53 = vadd.f32 %v2607_v51, %v2381_v52  ;;  %v2834_v54 = vpop.f32.mrb[11].mxu0 }
0x16f6   : > { %v2385_v56 = vadd.f32 %v2382_v53, %v3474_v4 }
0x16f8   : > { %2844 = vmatmul.mubr.msk.f32.vlgmr.msra.gmra.mrb[26].mxu1 %vm778_vm4, %v2385_v56 }
0x17cb   : > { %v2466_v58 = vpop.f32.mrb[26].mxu1 }
0x17cc   : > { %v2467_v60 = vadd.f32 %v2609_v57, %v2466_v58  ;;  %v2845_v61 = vpop.f32.mrb[27].mxu1 }
0x17ce   : > { %2471 = vst.msk [vmem:[%s600_s1] sm:$0x1f] %vm2470_vm10, %v2467_v60 }
0x17cf PF: > { %s29_s0 = sadd.s32 1, %s3004_s0  }
0x17d0   : > { %p26_p4 = scmp.ge.s32.totalorder %s29_s0, 4  }
0x17d2   :  { %28 = sbr.rel (!%p26_p4) target bundleno = 5 (0x5), region = 138 }

// kernel: clip_gpt2_classification.4
= control target key start
LH: loop header
LB: loop body
LE: loop exit
PB: predicated region body
PF: predicated region fallthrough
CT: control target
= control target key end

     0   :  { %s2967_s27 = smov 0   ;;  %s3330_s0 = inlined_call_operand.vmem [shape: f32[2,8,32], index: 0, kind: input, shape index: {}]   ;;  %s3331_s1 = inlined_call_operand.vmem [shape: f32[2,1,8], index: 1, kind: input, shape index: {}]   ;;  %s3332_s2 = inlined_call_operand.vmem [shape: f32[1,32], index: 2, kind: input, shape index: {}]   ;;  %s3333_s3 = inlined_call_operand.vmem [shape: f32[1,32], index: 3, kind: input, shape index: {}]   ;;  %s3334_s4 = inlined_call_operand.vmem [shape: f32[2,1,64], index: 4, kind: input, shape index: {}]   ;;  %s3335_s5 = inlined_call_operand.vmem [shape: f32[2,32,64], index: 5, kind: input, shape index: {}]   ;;  %s3336_s6 = inlined_call_operand.vmem [shape: f32[2,1,32], index: 6, kind: input, shape index: {}, may-alias: {6,8,10,12}]   ;;  %s3337_s7 = inlined_call_operand.vmem [shape: f32[2,64,32], index: 7, kind: input, shape index: {}]   ;;  %s3338_s8 = inlined_call_operand.vmem [shape: f32[2,1,32], index: 8, kind: input, shape index: {}, may-alias: {6,8,10,12}]   ;;  %s3339_s9 = inlined_call_operand.vmem [shape: f32[2,1,32], index: 9, kind: input, shape index: {}, may-alias: {9,11}]   ;;  %s3340_s10 = inlined_call_operand.vmem [shape: f32[2,1,32], index: 10, kind: input, shape index: {}, may-alias: {6,8,10,12}]   ;;  %s3341_s11 = inlined_call_operand.vmem [shape: f32[2,1,32], index: 11, kind: input, shape index: {}, may-alias: {9,11}]   ;;  %s3342_s12 = inlined_call_operand.vmem [shape: f32[2,1,32], index: 12, kind: input, shape index: {}, may-alias: {6,8,10,12}]   ;;  %s3343_s13 = inlined_call_operand.vmem [shape: f32[2,32,32], index: 13, kind: input, shape index: {}]   ;;  %s3344_s14 = inlined_call_operand.vmem [shape: f32[2,1,96], index: 14, kind: input, shape index: {}]   ;;  %s3345_s15 = inlined_call_operand.vmem [shape: f32[2,32,96], index: 15, kind: input, shape index: {}]   ;;  %s3346_s16 = inlined_call_operand.vmem [shape: f32[1,64], index: 16, kind: input, shape index: {}]   ;;  %s3347_s17 = inlined_call_operand.vmem [shape: f32[32,64], index: 17, kind: input, shape index: {}]   ;;  %s3348_s18 = inlined_call_operand.vmem [shape: f32[2,8,64], index: 18, kind: output, shape index: {}]  }
   0x1   :  { %3350 = sst [smem:[#allocation2_spill]] %s3330_s0 }
   0x2   :  { %3351 = sst [smem:[#allocation3_spill]] %s3331_s1 }
   0x3   :  { %3352 = sst [smem:[#allocation4_spill]] %s3332_s2 }
   0x4 LB: > { %s2425_s28 = sadd.s32 4294967295, %s2861_s27   ;;  %p2429_p0 = scmp.ge.s32.totalorder %s2861_s27, 1  ;;  %s2861_s27 = sphi %s2967_s27, %s28_s27  }
   0x5   : > { %p519_p1 = scmp.lt.s32.totalorder %s2861_s27, 3 }
   0x7   : > { %p520_p2 = pnand %p2429_p0, %p519_p1 }
   0x8   : > { %p574_p3 = scmp.lt.s32.totalorder (!%p520_p2), %s2425_s28, 1  ;;  %vm604_vm0 = vcmask (!%p520_p2), 261120   ;;  %s3353_s19 = sld [smem:[#allocation2_spill]] (!%p520_p2)  ;;  %v633_v7 = vld [vmem:[%s3345_s15] sm:$0xff] (!%p520_p2)  ;;  %v634_v8 = vld [vmem:[%s3345_s15 + $0x8] sm:$0xff] (!%p520_p2)  ;;  %v635_v9 = vld [vmem:[%s3345_s15 + $0x10] sm:$0xff] (!%p520_p2)  ;;  %v587_v31 = vlaneseq (!%p520_p2) }
   0x9   : > { %523 = sbr.rel (%p520_p2) target bundleno = 5312 (0x14c0), region = 92  ;;  %v2863_v10 = vmov (!%p520_p2), 0.0|0.0   ;;  %v2739_v11 = vpack.c.bf16 (!%p520_p2), %v634_v8, %v633_v7  ;;  %v636_v12 = vld [vmem:[%s3345_s15 + $0x18] sm:$0xff] (!%p520_p2)  ;;  %vm2864_vm1 = vmmov (!%p520_p2), 0   ;;  %v2865_v13 = vmov (!%p520_p2), 0.0   ;;  %s2866_s22 = smov (!%p520_p2), 112  }
   0xa   : > { %2738 = vmatprep.subr.bf16.mxu0 (!%p520_p2), %v2863_v10  ;;  %2585 = vmatprep.mubr.msk.f32.mxu0 (!%p520_p2), %vm2864_vm1, %v2865_v13  ;;  %v2742_v14 = vpack.c.bf16 (!%p520_p2), %v636_v12, %v635_v9  ;;  %v2432_v19 = vld [vmem:[%s3339_s9] ss:$0 sm:$0xff] (!%p520_p2)  ;;  %s2867_s2 = smov (!%p520_p2), 96   ;;  %s2868_s23 = smov (!%p520_p2), 80   ;;  %vm724_vm2 = vcmask (!%p520_p2), 130048   ;;  %v588_v33 = vshrl.u32 (!%p520_p2), %v587_v31, 7 }
   0xb   : > { %2588 = vmatprep.subr.mxu1 (!%p520_p2), %v2865_v13  ;;  %2590 = vmatprep.mubr.msk.f32.mxu1 (!%p520_p2), %vm2864_vm1, %v2865_v13  ;;  %v2433_v21 = vld [vmem:[%s3338_s8] ss:$0 sm:$0xff] (!%p520_p2)  ;;  %s3354_s26 = sld [smem:[#allocation3_spill]] (!%p520_p2)  ;;  %v590_v35 = vand.u32 (!%p520_p2), 127, %v587_v31  ;;  %v2869_v39 = vmov (!%p520_p2), -1e+09  }
   0xc   : > { %2740 = vmatpush3.bf16.msra.mxu0 (!%p520_p2), %v2739_v11  ;;  %v2434_v24 = vld [vmem:[%s3344_s14] ss:$0 sm:$0xff] (!%p520_p2)  ;;  %v598_v37 = vsub.s32 (!%p520_p2), 0, %v588_v33  ;;  %vm801_vm4 = vcmask (!%p520_p2), 64512   ;;  %s2870_s0 = smov (!%p520_p2), 48   ;;  %v719_v11 = vld [vmem:[%s3343_s13 + $0x10] sm:$0xff] (!%p520_p2) }
   0xd   : > { %2741 = vmatprep.subr.bf16.mxu0 (!%p520_p2), %v2863_v10  ;;  %vm591_vm3 = vcmp.ge.s32.totalorder (!%p520_p2), %v588_v33, %v590_v35  ;;  %v720_v12 = vld [vmem:[%s3343_s13 + $0x18] sm:$0xff] (!%p520_p2)  ;;  %v1240_v33 = vld [vmem:[%s3335_s5] sm:$0xff] (!%p520_p2)  ;;  %v1242_v35 = vld [vmem:[%s3335_s5 + $0x10] sm:$0xff] (!%p520_p2)  ;;  %vm1347_vm5 = vcmask (!%p520_p2), 523264  }
   0xe   : > { %v592_v40 = vsel (!%p520_p2), %vm591_vm3, 0.0, %v2869_v39 }
  0x10   : > { %s3358_s28 = smov (!%p574_p3, %s2425_s28), 1  ;;  %2743 = vmatpush3.bf16.msra.mxu0 %v2742_v14  ;;  %v2745_v14 = vpack.c.bf16 %v720_v12, %v719_v11 }
  0x11   : > { %s3349_s29 = sshll.u32 %s3358_s28, 3  ;;  %2598 = vmatprep.subr.mxu0 %v2865_v13  ;;  %s580_s30 = scalar_lea.vmem %s3354_s26, %s3358_s28 }
  0x12   : > { %s577_s1 = scalar_lea.vmem %s3353_s19, %s3349_s29  ;;  %v586_v32 = vld [vmem:[%s580_s30] sm:$0x1]  ;;  %s2871_s19 = smov 64  }
  0x13   : > { %v2983_v0 = vld [vmem:[%s577_s1] sm:$0xff]  ;;  %v593_v34 = vsub.f32 1.0, %v586_v32 }
  0x14   : > { %v605_v1 = vsel %vm604_vm0, %v2983_v0, 0.0 }
  0x15   : > { %606 = vadd.xlane.f32.xlu0 %v605_v1  ;;  %v594_v36 = vmul.f32 -1e+09, %v593_v34 }
  0x17   : > { %v599_v38 = vrot.slane %v594_v36, %v598_v37  ;;  %v1243_v36 = vld [vmem:[%s3335_s5 + $0x18] sm:$0xff] }
  0x18   : > { %v2754_v37 = vpack.c.bf16 %v1243_v36, %v1242_v35 }
  0x19   : > { %v3038_v41 = vadd.f32 %v599_v38, %v592_v40 }
  0xa2   : > { %v607_v2 = vpop.xlane.xlu0 %606 }
  0xa3   : > { %v609_v3 = vmul.f32 0.03125, %v607_v2 }
  0xa5   : > { %v610_v4 = vsub.f32 %v2983_v0, %v609_v3 }
  0xa7   : > { %v611_v5 = vmul.f32 %v610_v4, %v610_v4 }
  0xa9   : > { %v612_v6 = vsel %vm604_vm0, %v611_v5, 0.0  ;;  %v718_v5 = vld [vmem:[%s3343_s13 + $0x8] sm:$0xff] }
  0xaa   : > { %613 = vadd.xlane.f32.xlu0 %v612_v6 }
 0x137   : > { %v614_v15 = vpop.xlane.xlu0 %613 }
 0x138   : > { %v615_v16 = vmul.f32 0.03125, %v614_v15 }
 0x13a   : > { %v616_v17 = vadd.f32 1e-05, %v615_v16 }
 0x13c   : > { %2821 = vrsqrt.f32 %v616_v17 }
 0x146   : > { %v2822_v18 = vpop.eup %2821 }
 0x147   : > { %v618_v20 = vmul.f32 %v2822_v18, %v610_v4  ;;  %v717_v4 = vld [vmem:[%s3343_s13] sm:$0xff] }
 0x148   : > { %v2748_v8 = vpack.c.bf16 %v718_v5, %v717_v4 }
 0x149   : > { %v625_v22 = vmul.f32 %v2432_v19, %v618_v20 }
 0x14b   : > { %v632_v23 = vadd.f32 %v2433_v21, %v625_v22  ;;  %v2444_v22 = vld [vmem:[%s3342_s12] ss:$0 sm:$0xff] }
 0x14d   : > { %2586 = vmatmul.mubr.msk.f32.vlgmr.msra.gmra.mrb[0].mxu0 %vm604_vm0, %v632_v23 }
 0x14e   : > { %2600 = vmatprep.mubr.msk.f32.mxu0 %vm2864_vm1, %v2865_v13 }
 0x220   : > { %v713_v25 = vpop.f32.mrb[0].mxu0 }
 0x221   : > { %v714_v26 = vadd.f32 %v2434_v24, %v713_v25  ;;  %v2587_v27 = vpop.f32.mrb[1].mxu0 }
 0x223   : > { %889 = vrot.lane.b32.xlu0 %v714_v26, %s2866_s22  ;;  %722 = vrot.lane.b32.xlu1 %v714_v26, %s2867_s2 }
 0x227   : > { %891 = vrot.lane.b32.xlu1 %v714_v26, %s2868_s23 }
 0x295   : > { %v723_v28 = vpop.permute.xlu1 %722  ;;  %v890_v30 = vpop.permute.xlu0 %889 }
 0x296   : > { %2589 = vmatpush3.xpose.msk.msra.mxu1 %vm724_vm2, %v723_v28 }
 0x297   : > { %2593 = vmatprep.subr.mxu1 %v2865_v13 }
 0x299   : > { %2591 = vmatmul.mubr.msk.f32.vlgmr.msra.gmra.mrb[0].mxu1 %vm724_vm2, %v714_v26  ;;  %v892_v29 = vpop.permute.xlu1 %891 }
 0x29a   : > { %2599 = vmatpush3.xpose.msk.msra.mxu0 %vm724_vm2, %v892_v29  ;;  %2595 = vmatprep.mubr.msk.f32.mxu1 %vm2864_vm1, %v2865_v13 }
 0x29b   : > { %2744 = vmatprep.subr.bf16.mxu0 %v2863_v10 }
 0x29d   : > { %2601 = vmatmul.mubr.msk.f32.vlgmr.msra.gmra.mrb[2].mxu0 %vm724_vm2, %v890_v30 }
 0x29e   : > { %2612 = vmatprep.mubr.msk.f32.mxu0 %vm2864_vm1, %v2865_v13  ;;  %2746 = vmatpush3.bf16.msra.mxu0 %v2745_v14 }
 0x29f   : > { %2750 = vmatprep.subr.bf16.mxu0 %v2863_v10 }
 0x36c   : > { %v795_v42 = vpop.f32.mrb[0].mxu1 }
 0x36d   : > { %v799_v43 = vmul.f32 0.25, %v795_v42  ;;  %v2592_v44 = vpop.f32.mrb[1].mxu1 }
 0x36f   : > { %v800_v45 = vadd.f32 %v799_v43, %v3038_v41  ;;  %v2445_v43 = vld [vmem:[%s3341_s11] ss:$0 sm:$0xff] }
 0x370   : > { %v963_v46 = vpop.f32.mrb[2].mxu0 }
 0x371   : > { %v967_v47 = vmul.f32 0.25, %v963_v46  ;;  %v2602_v48 = vpop.f32.mrb[3].mxu0  ;;  %v802_v49 = vsel %vm801_vm4, %v800_v45, -inf }
 0x372   : > { %803 = vmax.xlane.f32.xlu1 %v802_v49  ;;  %v1332_v48 = vld [vmem:[%s3337_s7] sm:$0xff]  ;;  %v1333_v49 = vld [vmem:[%s3337_s7 + $0x8] sm:$0xff] }
 0x373   : > { %v968_v50 = vadd.f32 %v967_v47, %v3038_v41 }
 0x375   : > { %v969_v51 = vsel %vm801_vm4, %v968_v50, -inf }
 0x376   : > { %970 = vmax.xlane.f32.xlu0 %v969_v51  ;;  %v1334_v51 = vld [vmem:[%s3337_s7 + $0x10] sm:$0xff] }
 0x38c   : > { %980 = vrot.lane.b32.xlu0 %v714_v26, %s2870_s0 }
 0x3ff   : > { %v804_v52 = vpop.xlane.xlu1 %803 }
 0x400   : > { %v805_v53 = vsub.f32 %v800_v45, %v804_v52  ;;  %v2446_v45 = vld [vmem:[%s3340_s10] ss:$0 sm:$0xff]  ;;  %v1335_v52 = vld [vmem:[%s3337_s7 + $0x18] sm:$0xff] }
 0x402   : > { %v806_v54 = vmul.f32 1.442695, %v805_v53  ;;  %v2760_v53 = vpack.c.bf16 %v1335_v52, %v1334_v51 }
 0x403   : > { %v971_v55 = vpop.xlane.xlu0 %970 }
 0x404   : > { %2823 = vpow2.f32 %v806_v54  ;;  %v972_v56 = vsub.f32 %v968_v50, %v971_v55  ;;  %v2757_v50 = vpack.c.bf16 %v1333_v49, %v1332_v48  ;;  %v1336_v54 = vld [vmem:[%s3337_s7 + $0x20] sm:$0xff]  ;;  %v1337_v55 = vld [vmem:[%s3337_s7 + $0x28] sm:$0xff] }
 0x406   : > { %v973_v57 = vmul.f32 1.442695, %v972_v56  ;;  %v2763_v56 = vpack.c.bf16 %v1337_v55, %v1336_v54 }
 0x407   : > { %v981_v6 = vpop.permute.xlu0 %980 }
 0x408   : > { %2825 = vpow2.f32 %v973_v57  ;;  %v1338_v57 = vld [vmem:[%s3337_s7 + $0x30] sm:$0xff] }
 0x40e   : > { %v2824_v58 = vpop.eup %2823 }
 0x40f   : > { %v808_v59 = vsel %vm801_vm4, %v2824_v58, 0.0 }
 0x410   : > { %809 = vadd.xlane.f32.xlu1 %v808_v59 }
 0x412   : > { %v2826_v60 = vpop.eup %2825 }
 0x413   : > { %v975_v61 = vsel %vm801_vm4, %v2826_v60, 0.0 }
 0x414   : > { %976 = vadd.xlane.f32.xlu1 %v975_v61 }
 0x425   : > { %813 = vrot.lane.b32.xlu1 %v714_v26, %s2871_s19 }
 0x49d   : > { %v810_v62 = vpop.xlane.xlu1 %809 }
 0x49e   : > { %2827 = vrcp.f32 %v810_v62 }
 0x4a1   : > { %v977_v63 = vpop.xlane.xlu1 %976 }
 0x4a2   : > { %2829 = vrcp.f32 %v977_v63 }
 0x4a5   : > { %v814_v1 = vpop.permute.xlu1 %813 }
 0x4a6   : > { %2594 = vmatpush3.msra.mxu1 %v814_v1 }
 0x4a7   : > { %2603 = vmatprep.subr.mxu1 %v2865_v13 }
 0x4a8   : > { %v2828_v2 = vpop.eup %2827 }
 0x4a9   : > { %v812_v3 = vmul.f32 %v2828_v2, %v2824_v58  ;;  %v1339_v58 = vld [vmem:[%s3337_s7 + $0x38] sm:$0xff] }
 0x4aa   : > { %v2766_v59 = vpack.c.bf16 %v1339_v58, %v1338_v57 }
 0x4ab   : > { %2596 = vmatmul.mubr.msk.f32.vlgmr.msra.gmra.mrb[2].mxu1 %vm801_vm4, %v812_v3 }
 0x4ac   : > { %v2830_v7 = vpop.eup %2829  ;;  %2604 = vmatpush3.msra.mxu1 %v981_v6  ;;  %2605 = vmatprep.mubr.msk.f32.mxu1 %vm2864_vm1, %v2865_v13 }
 0x4ad   : > { %v979_v9 = vmul.f32 %v2830_v7, %v2826_v60  ;;  %2747 = vmatprep.subr.bf16.mxu1 %v2863_v10  ;;  %v2447_v60 = vld [vmem:[%s3334_s4] ss:$0 sm:$0xff] }
 0x4ae   : > { %v2450_v7 = vld [vmem:[%s3336_s6] ss:$0 sm:$0xff] }
 0x4af   : > { %2606 = vmatmul.mubr.msk.f32.vlgmr.msra.gmra.mrb[4].mxu1 %vm801_vm4, %v979_v9 }
 0x4b0   : > { %2749 = vmatpush3.bf16.msra.mxu1 %v2748_v8  ;;  %2619 = vmatprep.mubr.msk.f32.mxu1 %vm2864_vm1, %v2865_v13 }
 0x4b1   : > { %2756 = vmatprep.subr.bf16.mxu1 %v2863_v10 }
 0x57e   : > { %v885_v15 = vpop.f32.mrb[2].mxu1 }
 0x57f   : > { %v2597_v16 = vpop.f32.mrb[3].mxu1  ;;  %2620 = vmatmul.mubr.msk.f32.vlgmr.msra.gmra.mrb[6].mxu1 %vm724_vm2, %v885_v15 }
 0x580   : > { %2649 = vmatprep.mubr.msk.f32.mxu1 %vm2864_vm1, %v2865_v13  ;;  %2758 = vmatpush3.bf16.msra.mxu1 %v2757_v50 }
 0x581   : > { %2759 = vmatprep.subr.bf16.mxu1 %v2863_v10 }
 0x582   : > { %v1052_v17 = vpop.f32.mrb[4].mxu1 }
 0x583   : > { %v2607_v18 = vpop.f32.mrb[5].mxu1  ;;  %2613 = vmatmul.mubr.msk.f32.vlgmr.msra.gmra.mrb[4].mxu0 %vm724_vm2, %v1052_v17 }
 0x584   : > { %2630 = vmatprep.mubr.msk.f32.mxu0 %vm2864_vm1, %v2865_v13  ;;  %2761 = vmatpush3.bf16.msra.mxu1 %v2760_v53 }
 0x585   : > { %2762 = vmatprep.subr.bf16.mxu1 %v2863_v10 }
 0x588   : > { %2764 = vmatpush3.bf16.msra.mxu1 %v2763_v56 }
 0x589   : > { %2765 = vmatprep.subr.bf16.mxu1 %v2863_v10 }
 0x58c   : > { %2767 = vmatpush3.bf16.msra.mxu1 %v2766_v59 }
 0x58d   : > { %2668 = vmatprep.subr.mxu1 %v2865_v13 }
 0x652   : > { %v1198_v19 = vpop.f32.mrb[6].mxu1 }
 0x653   : > { %v2621_v20 = vpop.f32.mrb[7].mxu1 }
 0x654   : > { %v2456_v20 = vld [vmem:[%s3345_s15 + $0x20] sm:$0xff] }
 0x656   : > { %v1125_v21 = vpop.f32.mrb[4].mxu0 }
 0x657   : > { %v1199_v23 = vadd.f32 %v1198_v19, %v1125_v21  ;;  %v2614_v24 = vpop.f32.mrb[5].mxu0  ;;  %v2457_v21 = vld [vmem:[%s3345_s15 + $0x28] sm:$0xff] }
 0x658   : > { %v2459_v24 = vld [vmem:[%s3345_s15 + $0x38] sm:$0xff] }
 0x659   : > { %v1209_v25 = vadd.f32 %v2444_v22, %v1199_v23  ;;  %v2769_v22 = vpack.c.bf16 %v2457_v21, %v2456_v20  ;;  %v2458_v23 = vld [vmem:[%s3345_s15 + $0x30] sm:$0xff] }
 0x65b   : > { %v3080_v26 = vadd.f32 %v1209_v25, %v2983_v0  ;;  %v1241_v0 = vld [vmem:[%s3335_s5 + $0x8] sm:$0xff]  ;;  %v2772_v25 = vpack.c.bf16 %v2459_v24, %v2458_v23 }
 0x65c   : > { %v2751_v34 = vpack.c.bf16 %v1241_v0, %v1240_v33 }
 0x65d   : > { %v1213_v27 = vsel %vm604_vm0, %v3080_v26, 0.0 }
 0x65e   : > { %1214 = vadd.xlane.f32.xlu1 %v1213_v27  ;;  %2752 = vmatpush3.bf16.msra.mxu0 %v2751_v34  ;;  %v2461_v34 = vld [vmem:[%s3344_s14 + $0x1] ss:$0 sm:$0xff] }
 0x65f   : > { %2753 = vmatprep.subr.bf16.mxu0 %v2863_v10 }
 0x662   : > { %2755 = vmatpush3.bf16.msra.mxu0 %v2754_v37 }
 0x663   : > { %2768 = vmatprep.subr.bf16.mxu0 %v2863_v10 }
 0x6eb   : > { %v1215_v28 = vpop.xlane.xlu1 %1214 }
 0x6ec   : > { %v1216_v29 = vmul.f32 0.03125, %v1215_v28 }
 0x6ee   : > { %v1217_v30 = vsub.f32 %v3080_v26, %v1216_v29 }
 0x6f0   : > { %v1218_v31 = vmul.f32 %v1217_v30, %v1217_v30 }
 0x6f2   : > { %v1219_v32 = vsel %vm604_vm0, %v1218_v31, 0.0 }
 0x6f3   : > { %1220 = vadd.xlane.f32.xlu0 %v1219_v32  ;;  %v2455_v32 = vld [vmem:[%s3338_s8 + $0x1] ss:$0 sm:$0xff] }
 0x780   : > { %v1221_v38 = vpop.xlane.xlu0 %1220 }
 0x781   : > { %v1222_v39 = vmul.f32 0.03125, %v1221_v38 }
 0x783   : > { %v1223_v40 = vadd.f32 1e-05, %v1222_v39 }
 0x785   : > { %2831 = vrsqrt.f32 %v1223_v40 }
 0x78f   : > { %v2832_v42 = vpop.eup %2831 }
 0x790   : > { %v1225_v44 = vmul.f32 %v2832_v42, %v1217_v30  ;;  %v2454_v30 = vld [vmem:[%s3339_s9 + $0x1] ss:$0 sm:$0xff] }
 0x792   : > { %v1232_v46 = vmul.f32 %v2445_v43, %v1225_v44 }
 0x794   : > { %v1239_v47 = vadd.f32 %v2446_v45, %v1232_v46 }
 0x796   : > { %2631 = vmatmul.mubr.msk.f32.vlgmr.msra.gmra.mrb[6].mxu0 %vm604_vm0, %v1239_v47 }
 0x797   : > { %2660 = vmatprep.mubr.msk.f32.mxu0 %vm2864_vm1, %v2865_v13  ;;  %2770 = vmatpush3.bf16.msra.mxu0 %v2769_v22  ;;  %v2476_v22 = vld [vmem:[%s3342_s12 + $0x1] ss:$0 sm:$0xff] }
 0x798   : > { %2771 = vmatprep.subr.bf16.mxu0 %v2863_v10 }
 0x79b   : > { %2773 = vmatpush3.bf16.msra.mxu0 %v2772_v25 }
 0x79c   : > { %2663 = vmatprep.subr.mxu0 %v2865_v13 }
 0x869   : > { %v1320_v61 = vpop.f32.mrb[6].mxu0 }
 0x86a   : > { %v1321_v62 = vadd.f32 %v2447_v60, %v1320_v61  ;;  %v2632_v63 = vpop.f32.mrb[7].mxu0 }
 0x86c   : > { %v2449_v1 = vmul.f32 -1.702, %v1321_v62 }
 0x86e   : > { %v1326_v2 = vmul.f32 1.442695, %v2449_v1 }
 0x870   : > { %2833 = vpow2.f32 %v1326_v2 }
 0x87a   : > { %v2834_v3 = vpop.eup %2833 }
 0x87b   : > { %v1328_v4 = vadd.f32 1.0, %v2834_v3  ;;  %v2463_v3 = vld [vmem:[%s3343_s13 + $0x20] sm:$0xff] }
 0x87d   : > { %2835 = vrcp.f32 %v1328_v4  ;;  %v2464_v4 = vld [vmem:[%s3343_s13 + $0x28] sm:$0xff] }
 0x887   : > { %v2836_v5 = vpop.eup %2835 }
 0x888   : > { %v1331_v6 = vmul.f32 %v2836_v5, %v1321_v62 }
 0x88a   : > { %2650 = vmatmul.mubr.msk.f32.vlgmr.msra.gmra.mrb[8].mxu1 %vm1347_vm5, %v1331_v6 }
 0x88b   : > { %2670 = vmatprep.mubr.msk.f32.mxu1 %vm2864_vm1, %v2865_v13 }
 0x95d   : > { %v1417_v8 = vpop.f32.mrb[8].mxu1 }
 0x95e   : > { %v1418_v9 = vadd.f32 %v2450_v7, %v1417_v8  ;;  %v2651_v11 = vpop.f32.mrb[9].mxu1  ;;  %v2778_v7 = vpack.c.bf16 %v2464_v4, %v2463_v3  ;;  %v2498_v4 = vld [vmem:[%s3336_s6 + $0x1] ss:$0 sm:$0xff] }
 0x95f   : > { %v2466_v11 = vld [vmem:[%s3343_s13 + $0x38] sm:$0xff] }
 0x960   : > { %v3147_v12 = vadd.f32 %v1418_v9, %v3080_v26  ;;  %v2465_v9 = vld [vmem:[%s3343_s13 + $0x30] sm:$0xff] }
 0x962   : > { %v1426_v14 = vsel %vm604_vm0, %v3147_v12, 0.0 }
 0x963   : > { %1427 = vadd.xlane.f32.xlu1 %v1426_v14  ;;  %v2775_v14 = vpack.c.bf16 %v2466_v11, %v2465_v9 }
 0x9f0   : > { %v1428_v15 = vpop.xlane.xlu1 %1427 }
 0x9f1   : > { %v1429_v16 = vmul.f32 0.03125, %v1428_v15 }
 0x9f3   : > { %v1430_v17 = vsub.f32 %v3147_v12, %v1429_v16 }
 0x9f5   : > { %v1431_v18 = vmul.f32 %v1430_v17, %v1430_v17 }
 0x9f7   : > { %v1432_v19 = vsel %vm604_vm0, %v1431_v18, 0.0 }
 0x9f8   : > { %1433 = vadd.xlane.f32.xlu1 %v1432_v19 }
 0xa85   : > { %v1434_v26 = vpop.xlane.xlu1 %1433 }
 0xa86   : > { %v1435_v27 = vmul.f32 0.03125, %v1434_v26 }
 0xa88   : > { %v1436_v28 = vadd.f32 1e-05, %v1435_v27 }
 0xa8a   : > { %2837 = vrsqrt.f32 %v1436_v28 }
 0xa94   : > { %v2838_v29 = vpop.eup %2837 }
 0xa95   : > { %v1438_v31 = vmul.f32 %v2838_v29, %v1430_v17 }
 0xa97   : > { %v1445_v33 = vmul.f32 %v2454_v30, %v1438_v31 }
 0xa99   : > { %v1452_v0 = vadd.f32 %v2455_v32, %v1445_v33  ;;  %v2481_v33 = vld [vmem:[%s3335_s5 + $0x20] sm:$0xff] }
 0xa9b   : > { %2661 = vmatmul.mubr.msk.f32.vlgmr.msra.gmra.mrb[8].mxu0 %vm604_vm0, %v1452_v0 }
 0xa9c   : > { %2665 = vmatprep.mubr.msk.f32.mxu0 %vm2864_vm1, %v2865_v13 }
 0xb6e   : > { %v1535_v35 = vpop.f32.mrb[8].mxu0 }
 0xb6f   : > { %v1536_v36 = vadd.f32 %v2461_v34, %v1535_v35  ;;  %v2662_v37 = vpop.f32.mrb[9].mxu0  ;;  %v2483_v34 = vld [vmem:[%s3335_s5 + $0x30] sm:$0xff]  ;;  %v2484_v35 = vld [vmem:[%s3335_s5 + $0x38] sm:$0xff] }
 0xb71   : > { %1712 = vrot.lane.b32.xlu0 %v1536_v36, %s2868_s23  ;;  %1545 = vrot.lane.b32.xlu1 %v1536_v36, %s2867_s2  ;;  %s3355_s23 = sld [smem:[#allocation4_spill]] }
 0xb75   : > { %1710 = vrot.lane.b32.xlu1 %v1536_v36, %s2866_s22 }
 0xbe3   : > { %v1546_v38 = vpop.permute.xlu1 %1545  ;;  %v1713_v39 = vpop.permute.xlu0 %1712 }
 0xbe4   : > { %2664 = vmatpush3.xpose.msk.msra.mxu0 %vm724_vm2, %v1546_v38 }
 0xbe5   : > { %2673 = vmatprep.subr.mxu0 %v2865_v13 }
 0xbe7   : > { %2666 = vmatmul.mubr.msk.f32.vlgmr.msra.gmra.mrb[10].mxu0 %vm724_vm2, %v1536_v36  ;;  %v1711_v40 = vpop.permute.xlu1 %1710 }
 0xbe8   : > { %2674 = vmatpush3.xpose.msk.msra.mxu0 %vm724_vm2, %v1713_v39  ;;  %2675 = vmatprep.mubr.msk.f32.mxu0 %vm2864_vm1, %v2865_v13 }
 0xbe9   : > { %2774 = vmatprep.subr.bf16.mxu0 %v2863_v10 }
 0xbeb   : > { %2676 = vmatmul.mubr.msk.f32.vlgmr.msra.gmra.mrb[12].mxu0 %vm724_vm2, %v1711_v40 }
 0xbec   : > { %2687 = vmatprep.mubr.msk.f32.mxu0 %vm2864_vm1, %v2865_v13  ;;  %2776 = vmatpush3.bf16.msra.mxu0 %v2775_v14 }
 0xbed   : > { %2780 = vmatprep.subr.bf16.mxu0 %v2863_v10 }
 0xcba   : > { %v1617_v42 = vpop.f32.mrb[10].mxu0 }
 0xcbb   : > { %v1621_v43 = vmul.f32 0.25, %v1617_v42  ;;  %v2667_v44 = vpop.f32.mrb[11].mxu0  ;;  %v2479_v42 = vld [vmem:[%s3341_s11 + $0x1] ss:$0 sm:$0xff] }
 0xcbc   : > { %v2480_v44 = vld [vmem:[%s3340_s10 + $0x1] ss:$0 sm:$0xff] }
 0xcbd   : > { %v1622_v45 = vadd.f32 %v1621_v43, %v3038_v41 }
 0xcbe   : > { %v1784_v46 = vpop.f32.mrb[12].mxu0 }
 0xcbf   : > { %v1788_v47 = vmul.f32 0.25, %v1784_v46  ;;  %v2677_v48 = vpop.f32.mrb[13].mxu0  ;;  %v1623_v49 = vsel %vm801_vm4, %v1622_v45, -inf }
 0xcc0   : > { %1624 = vmax.xlane.f32.xlu1 %v1623_v49  ;;  %v2490_v48 = vld [vmem:[%s3337_s7 + $0x48] sm:$0xff] }
 0xcc1   : > { %v1789_v50 = vadd.f32 %v1788_v47, %v3038_v41  ;;  %v2489_v47 = vld [vmem:[%s3337_s7 + $0x40] sm:$0xff] }
 0xcc2   : > { %v2787_v49 = vpack.c.bf16 %v2490_v48, %v2489_v47 }
 0xcc3   : > { %v1790_v51 = vsel %vm801_vm4, %v1789_v50, -inf }
 0xcc4   : > { %1791 = vmax.xlane.f32.xlu0 %v1790_v51 }
 0xd4d   : > { %v1625_v52 = vpop.xlane.xlu1 %1624 }
 0xd4e   : > { %v1626_v53 = vsub.f32 %v1622_v45, %v1625_v52  ;;  %v2493_v52 = vld [vmem:[%s3337_s7 + $0x60] sm:$0xff] }
 0xd50   : > { %v1627_v54 = vmul.f32 1.442695, %v1626_v53  ;;  %v2494_v53 = vld [vmem:[%s3337_s7 + $0x68] sm:$0xff] }
 0xd51   : > { %v1792_v55 = vpop.xlane.xlu0 %1791 }
 0xd52   : > { %2839 = vpow2.f32 %v1627_v54  ;;  %v1793_v56 = vsub.f32 %v1789_v50, %v1792_v55  ;;  %v2491_v50 = vld [vmem:[%s3337_s7 + $0x50] sm:$0xff]  ;;  %v2793_v54 = vpack.c.bf16 %v2494_v53, %v2493_v52 }
 0xd53   : > { %v2495_v55 = vld [vmem:[%s3337_s7 + $0x70] sm:$0xff] }
 0xd54   : > { %v1794_v57 = vmul.f32 1.442695, %v1793_v56  ;;  %v2496_v56 = vld [vmem:[%s3337_s7 + $0x78] sm:$0xff] }
 0xd56   : > { %2841 = vpow2.f32 %v1794_v57  ;;  %v2796_v57 = vpack.c.bf16 %v2496_v56, %v2495_v55 }
 0xd5c   : > { %v2840_v58 = vpop.eup %2839 }
 0xd5d   : > { %v1629_v59 = vsel %vm801_vm4, %v2840_v58, 0.0 }
 0xd5e   : > { %1630 = vadd.xlane.f32.xlu0 %v1629_v59 }
 0xd60   : > { %v2842_v60 = vpop.eup %2841 }
 0xd61   : > { %v1796_v61 = vsel %vm801_vm4, %v2842_v60, 0.0 }
 0xd62   : > { %1797 = vadd.xlane.f32.xlu1 %v1796_v61 }
 0xd73   : > { %1801 = vrot.lane.b32.xlu1 %v1536_v36, %s2870_s0 }
 0xd74   : > { %1634 = vrot.lane.b32.xlu0 %v1536_v36, %s2871_s19  ;;  %v2784_v36 = vpack.c.bf16 %v2484_v35, %v2483_v34  ;;  %s3356_s19 = sshll.u32 %s3358_s28, 3 }
 0xd75   : > { %s584_s25 = scalar_lea.vmem %s3348_s18, %s3356_s19 }
 0xdeb   : > { %v1631_v41 = vpop.xlane.xlu0 %1630 }
 0xdec   : > { %2843 = vrcp.f32 %v1631_v41 }
 0xdef   : > { %v1798_v62 = vpop.xlane.xlu1 %1797  ;;  %v1635_v63 = vpop.permute.xlu0 %1634 }
 0xdf0   : > { %2845 = vrcp.f32 %v1798_v62  ;;  %2669 = vmatpush3.msra.mxu1 %v1635_v63 }
 0xdf1   : > { %2678 = vmatprep.subr.mxu1 %v2865_v13 }
 0xdf3   : > { %v1802_v5 = vpop.permute.xlu1 %1801 }
 0xdf6   : > { %v2844_v1 = vpop.eup %2843 }
 0xdf7   : > { %v1633_v2 = vmul.f32 %v2844_v1, %v2840_v58  ;;  %v2486_v58 = vld [vmem:[%s3334_s4 + $0x1] ss:$0 sm:$0xff] }
 0xdf9   : > { %2671 = vmatmul.mubr.msk.f32.vlgmr.msra.gmra.mrb[10].mxu1 %vm801_vm4, %v1633_v2 }
 0xdfa   : > { %v2846_v6 = vpop.eup %2845  ;;  %2679 = vmatpush3.msra.mxu1 %v1802_v5  ;;  %2680 = vmatprep.mubr.msk.f32.mxu1 %vm2864_vm1, %v2865_v13 }
 0xdfb   : > { %v1800_v8 = vmul.f32 %v2846_v6, %v2842_v60  ;;  %2777 = vmatprep.subr.bf16.mxu1 %v2863_v10 }
 0xdfd   : > { %2681 = vmatmul.mubr.msk.f32.vlgmr.msra.gmra.mrb[12].mxu1 %vm801_vm4, %v1800_v8 }
 0xdfe   : > { %2779 = vmatpush3.bf16.msra.mxu1 %v2778_v7  ;;  %2694 = vmatprep.mubr.msk.f32.mxu1 %vm2864_vm1, %v2865_v13 }
 0xdff   : > { %2786 = vmatprep.subr.bf16.mxu1 %v2863_v10 }
 0xecc   : > { %v1706_v15 = vpop.f32.mrb[10].mxu1 }
 0xecd   : > { %v2672_v16 = vpop.f32.mrb[11].mxu1  ;;  %2695 = vmatmul.mubr.msk.f32.vlgmr.msra.gmra.mrb[14].mxu1 %vm724_vm2, %v1706_v15 }
 0xece   : > { %2724 = vmatprep.mubr.msk.f32.mxu1 %vm2864_vm1, %v2865_v13  ;;  %2788 = vmatpush3.bf16.msra.mxu1 %v2787_v49 }
 0xecf   : > { %2789 = vmatprep.subr.bf16.mxu1 %v2863_v10 }
 0xed0   : > { %v1873_v17 = vpop.f32.mrb[12].mxu1 }
 0xed1   : > { %v2682_v18 = vpop.f32.mrb[13].mxu1  ;;  %2688 = vmatmul.mubr.msk.f32.vlgmr.msra.gmra.mrb[14].mxu0 %vm724_vm2, %v1873_v17 }
 0xed2   : > { %2705 = vmatprep.mubr.msk.f32.mxu0 %vm2864_vm1, %v2865_v13  ;;  %v2278_v18 = vld [vmem:[%s3347_s17] sm:$0xff] }
 0xfa0   : > { %v2019_v19 = vpop.f32.mrb[14].mxu1 }
 0xfa1   : > { %v2696_v20 = vpop.f32.mrb[15].mxu1 }
 0xfa4   : > { %v1946_v21 = vpop.f32.mrb[14].mxu0 }
 0xfa5   : > { %v2020_v23 = vadd.f32 %v2019_v19, %v1946_v21  ;;  %v2689_v24 = vpop.f32.mrb[15].mxu0  ;;  %v2279_v19 = vld [vmem:[%s3347_s17 + $0x8] sm:$0xff]  ;;  %v2280_v21 = vld [vmem:[%s3347_s17 + $0x10] sm:$0xff] }
 0xfa6   : > { %v2799_v20 = vpack.c.bf16 %v2279_v19, %v2278_v18 }
 0xfa7   : > { %v2031_v25 = vadd.f32 %v2476_v22, %v2020_v23  ;;  %v2281_v22 = vld [vmem:[%s3347_s17 + $0x18] sm:$0xff] }
 0xfa8   : > { %v2802_v23 = vpack.c.bf16 %v2281_v22, %v2280_v21 }
 0xfa9   : > { %v3232_v26 = vadd.f32 %v2031_v25, %v3147_v12  ;;  %v2482_v12 = vld [vmem:[%s3335_s5 + $0x28] sm:$0xff] }
 0xfaa   : > { %v2781_v0 = vpack.c.bf16 %v2482_v12, %v2481_v33 }
 0xfab   : > { %v2037_v27 = vsel %vm604_vm0, %v3232_v26, 0.0 }
 0xfac   : > { %2038 = vadd.xlane.f32.xlu1 %v2037_v27  ;;  %2782 = vmatpush3.bf16.msra.mxu0 %v2781_v0 }
 0xfad   : > { %2783 = vmatprep.subr.bf16.mxu0 %v2863_v10 }
 0xfb0   : > { %2785 = vmatpush3.bf16.msra.mxu0 %v2784_v36 }
 0xfb1   : > { %2798 = vmatprep.subr.bf16.mxu0 %v2863_v10 }
0x1039   : > { %v2039_v28 = vpop.xlane.xlu1 %2038 }
0x103a   : > { %v2040_v29 = vmul.f32 0.03125, %v2039_v28 }
0x103c   : > { %v2041_v30 = vsub.f32 %v3232_v26, %v2040_v29  ;;  %v2501_v29 = vld [vmem:[%s3355_s23] ss:$0 sm:$0xff] }
0x103e   : > { %v2042_v31 = vmul.f32 %v2041_v30, %v2041_v30 }
0x1040   : > { %v2043_v32 = vsel %vm604_vm0, %v2042_v31, 0.0 }
0x1041   : > { %2044 = vadd.xlane.f32.xlu0 %v2043_v32  ;;  %v2502_v32 = vld [vmem:[%s3346_s16] ss:$0 sm:$0xff] }
0x10ce   : > { %v2045_v37 = vpop.xlane.xlu0 %2044 }
0x10cf   : > { %v2046_v38 = vmul.f32 0.03125, %v2045_v37 }
0x10d1   : > { %v2047_v39 = vadd.f32 1e-05, %v2046_v38 }
0x10d3   : > { %2847 = vrsqrt.f32 %v2047_v39 }
0x10dd   : > { %v2848_v40 = vpop.eup %2847 }
0x10de   : > { %v2049_v43 = vmul.f32 %v2848_v40, %v2041_v30 }
0x10e0   : > { %v2056_v45 = vmul.f32 %v2479_v42, %v2049_v43 }
0x10e2   : > { %v2063_v46 = vadd.f32 %v2480_v44, %v2056_v45 }
0x10e4   : > { %2706 = vmatmul.mubr.msk.f32.vlgmr.msra.gmra.mrb[16].mxu0 %vm604_vm0, %v2063_v46 }
0x10e5   : > { %2735 = vmatprep.mubr.msk.f32.mxu0 %vm2864_vm1, %v2865_v13  ;;  %v2492_v13 = vld [vmem:[%s3337_s7 + $0x58] sm:$0xff]  ;;  %2800 = vmatpush3.bf16.msra.mxu0 %v2799_v20 }
0x10e6   : > { %v2790_v51 = vpack.c.bf16 %v2492_v13, %v2491_v50  ;;  %2801 = vmatprep.subr.bf16.mxu0 %v2863_v10 }
0x10e8   : > { %2791 = vmatpush3.bf16.msra.mxu1 %v2790_v51 }
0x10e9   : > { %2792 = vmatprep.subr.bf16.mxu1 %v2863_v10  ;;  %2803 = vmatpush3.bf16.msra.mxu0 %v2802_v23 }
0x10ec   : > { %2794 = vmatpush3.bf16.msra.mxu1 %v2793_v54 }
0x10ed   : > { %2795 = vmatprep.subr.bf16.mxu1 %v2863_v10  ;;  %v2500_v10 = vld [vmem:[%s3333_s3] ss:$0 sm:$0xff] }
0x10f0   : > { %2797 = vmatpush3.bf16.msra.mxu1 %v2796_v57 }
0x11b7   : > { %v2146_v59 = vpop.f32.mrb[16].mxu0 }
0x11b8   : > { %v2147_v60 = vadd.f32 %v2486_v58, %v2146_v59  ;;  %v2707_v61 = vpop.f32.mrb[17].mxu0 }
0x11ba   : > { %v2488_v41 = vmul.f32 -1.702, %v2147_v60 }
0x11bc   : > { %v2152_v62 = vmul.f32 1.442695, %v2488_v41 }
0x11be   : > { %2849 = vpow2.f32 %v2152_v62 }
0x11c8   : > { %v2850_v63 = vpop.eup %2849 }
0x11c9   : > { %v2154_v1 = vadd.f32 1.0, %v2850_v63 }
0x11cb   : > { %2851 = vrcp.f32 %v2154_v1 }
0x11d5   : > { %v2852_v2 = vpop.eup %2851 }
0x11d6   : > { %v2157_v3 = vmul.f32 %v2852_v2, %v2147_v60 }
0x11d8   : > { %2725 = vmatmul.mubr.msk.f32.vlgmr.msra.gmra.mrb[16].mxu1 %vm1347_vm5, %v2157_v3 }
0x12ab   : > { %v2244_v5 = vpop.f32.mrb[16].mxu1 }
0x12ac   : > { %v2245_v6 = vadd.f32 %v2498_v4, %v2244_v5  ;;  %v2726_v7 = vpop.f32.mrb[17].mxu1 }
0x12ae   : > { %v2248_v8 = vadd.f32 %v2245_v6, %v3232_v26 }
0x12b0   : > { %v2251_v9 = vsel %vm604_vm0, %v2248_v8, 0.0 }
0x12b1   : > { %2252 = vadd.xlane.f32.xlu0 %v2251_v9 }
0x133e   : > { %v2253_v11 = vpop.xlane.xlu0 %2252 }
0x133f   : > { %v2254_v14 = vmul.f32 0.03125, %v2253_v11 }
0x1341   : > { %v2255_v15 = vsub.f32 %v2248_v8, %v2254_v14 }
0x1343   : > { %v2256_v16 = vmul.f32 %v2255_v15, %v2255_v15 }
0x1345   : > { %v2257_v17 = vsel %vm604_vm0, %v2256_v16, 0.0 }
0x1346   : > { %2258 = vadd.xlane.f32.xlu1 %v2257_v17 }
0x13d3   : > { %v2259_v24 = vpop.xlane.xlu1 %2258 }
0x13d4   : > { %v2260_v25 = vmul.f32 0.03125, %v2259_v24 }
0x13d6   : > { %v2261_v26 = vadd.f32 1e-05, %v2260_v25 }
0x13d8   : > { %2853 = vrsqrt.f32 %v2261_v26 }
0x13e2   : > { %v2854_v27 = vpop.eup %2853 }
0x13e3   : > { %v2263_v28 = vmul.f32 %v2854_v27, %v2255_v15 }
0x13e5   : > { %v2270_v30 = vmul.f32 %v2500_v10, %v2263_v28 }
0x13e7   : > { %v2277_v31 = vadd.f32 %v2501_v29, %v2270_v30 }
0x13e9   : > { %2736 = vmatmul.mubr.msk.f32.vlgmr.msra.gmra.mrb[18].mxu0 %vm604_vm0, %v2277_v31 }
0x14bc   : > { %v2358_v33 = vpop.f32.mrb[18].mxu0 }
0x14bd   : > { %v2359_v12 = vadd.f32 %v2502_v32, %v2358_v33  ;;  %v2737_v0 = vpop.f32.mrb[19].mxu0 }
0x14bf   : > { %2362 = vst.msk [vmem:[%s584_s25] sm:$0xff] %vm1347_vm5, %v2359_v12 }
0x14c0 PF: > { %s28_s27 = sadd.s32 1, %s2861_s27  }
0x14c1   : > { %p25_p4 = scmp.ge.s32.totalorder %s28_s27, 4  }
0x14c3   :  { %27 = sbr.rel (!%p25_p4) target bundleno = 4 (0x4), region = 137 }

// kernel: clip_gpt2_classification.5
= control target key start
LH: loop header
LB: loop body
LE: loop exit
PB: predicated region body
PF: predicated region fallthrough
CT: control target
= control target key end

     0   :  { %s4831_s0 = inlined_call_operand.vmem [shape: f32[2,13,64], index: 0, kind: input, shape index: {}]   ;;  %s4832_s1 = inlined_call_operand.vmem [shape: f32[2,1,13], index: 1, kind: input, shape index: {}]   ;;  %s4833_s2 = inlined_call_operand.vmem [shape: f32[1,128], index: 2, kind: input, shape index: {}]   ;;  %s4834_s3 = inlined_call_operand.vmem [shape: f32[32,128], index: 3, kind: input, shape index: {}]   ;;  %s4835_s4 = inlined_call_operand.vmem [shape: f32[1,32], index: 4, kind: input, shape index: {}, may-alias: {4,6}]   ;;  %s4836_s5 = inlined_call_operand.vmem [shape: f32[1,32], index: 5, kind: input, shape index: {}]   ;;  %s4837_s6 = inlined_call_operand.vmem [shape: f32[1,32], index: 6, kind: input, shape index: {}, may-alias: {4,6}]   ;;  %s4838_s7 = inlined_call_operand.vmem [shape: f32[64,32], index: 7, kind: input, shape index: {}]   ;;  %s4839_s8 = inlined_call_operand.vmem [shape: f32[2,1,128], index: 8, kind: input, shape index: {}]   ;;  %s4840_s9 = inlined_call_operand.vmem [shape: f32[2,64,128], index: 9, kind: input, shape index: {}]   ;;  %s4841_s10 = inlined_call_operand.vmem [shape: f32[2,1,64], index: 10, kind: input, shape index: {}, may-alias: {10,12,14,16}]   ;;  %s4842_s11 = inlined_call_operand.vmem [shape: f32[2,128,64], index: 11, kind: input, shape index: {}]   ;;  %s4843_s12 = inlined_call_operand.vmem [shape: f32[2,1,64], index: 12, kind: input, shape index: {}, may-alias: {10,12,14,16}]   ;;  %s4844_s13 = inlined_call_operand.vmem [shape: f32[2,1,64], index: 13, kind: input, shape index: {}, may-alias: {13,15}]   ;;  %s4845_s14 = inlined_call_operand.vmem [shape: f32[2,1,64], index: 14, kind: input, shape index: {}, may-alias: {10,12,14,16}]   ;;  %s4846_s15 = inlined_call_operand.vmem [shape: f32[2,1,64], index: 15, kind: input, shape index: {}, may-alias: {13,15}]   ;;  %s4847_s16 = inlined_call_operand.vmem [shape: f32[2,1,64], index: 16, kind: input, shape index: {}, may-alias: {10,12,14,16}]   ;;  %s4848_s17 = inlined_call_operand.vmem [shape: f32[2,64,64], index: 17, kind: input, shape index: {}]   ;;  %s4849_s18 = inlined_call_operand.vmem [shape: f32[2,1,192], index: 18, kind: input, shape index: {}]   ;;  %s4850_s19 = inlined_call_operand.vmem [shape: f32[2,64,192], index: 19, kind: input, shape index: {}]   ;;  %s4851_s20 = inlined_call_operand.vmem [shape: f32[1,64], index: 20, kind: input, shape index: {}]   ;;  %s4852_s21 = inlined_call_operand.vmem [shape: f32[1,64], index: 21, kind: input, shape index: {}]   ;;  %s4853_s22 = inlined_call_operand.hbm [shape: f32[2,1,128], index: 22, kind: output, shape index: {}]  }
   0x1   :  { %4863 = sst [smem:[#allocation10_spill]] %s4831_s0 }
   0x2   :  { %4864 = sst [smem:[#allocation11_spill]] %s4832_s1 }
   0x3   :  { %4865 = sst [smem:[#allocation12_spill]] %s4833_s2 }
   0x4   :  { %4866 = sst [smem:[#allocation13_spill]] %s4834_s3 }
   0x5   :  { %4867 = sst [smem:[#allocation14_spill]] %s4835_s4 }
   0x6   :  { %4868 = sst [smem:[#allocation15_spill]] %s4836_s5 }
   0x7   :  { %4869 = sst [smem:[#allocation16_spill]] %s4837_s6 }
   0x8   :  { %4870 = sst [smem:[#allocation17_spill]] %s4838_s7 }
   0x9   :  { %4871 = sst [smem:[#allocation18_spill]] %s4839_s8 }
   0xa   :  { %4872 = sst [smem:[#allocation19_spill]] %s4840_s9 }
   0xb   :  { %27 = vsyncpa [#allocation3], 0 }
   0xc   :  { %29 = vsyncpa [#allocation3 + $0x1], 0  ;;  %s4095_s3 = smov 0   ;;  %s4097_s28 = smov 0  }
   0xd   :  { %s4099_s29 = smov 0   ;;  %s4101_s30 = smov 0  }
   0xe LB: > { %4873 = sst [smem:[#allocation5_spill]] %s3957_s3  ;;  %s4116_s4 = sadd.s32 4294967295, %s3969_s30   ;;  %s3969_s30 = sphi %s4101_s30, %s4898_s30   ;;  %s3965_s29 = sphi %s4099_s29, %s4900_s29   ;;  %s3961_s28 = sphi %s4097_s28, %s4902_s28   ;;  %s3957_s3 = sphi %s4095_s3, %s4901_s3  }
   0xf   : > { %4874 = sst [smem:[#allocation6_spill]] %s3965_s29  ;;  %s3046_s0 = sadd.s32 4294967294, %s3969_s30  }
  0x10   : > { %s4120_s23 = sadd.s32 1, %s3969_s30   ;;  %s514_s1 = sadd.s32 1, %s3965_s29 }
  0x11   : > { %4875 = sst [smem:[#allocation7_spill]] %s4120_s23  ;;  %s511_s5 = ssub.s32 %s3969_s30, %s4120_s23 }
  0x12   : > { %p524_p0 = scmp.ne.s32.totalorder %s3965_s29, %s3961_s28  ;;  %p512_p1 = scmp.eq.s32.totalorder %s511_s5, 0 }
  0x13   : > { %p525_p2 = scmp.eq.s32.totalorder %s4116_s4, 1  ;;  %p530_p3 = scmp.ne.s32.totalorder %s3961_s28, %s3957_s3 }
  0x14   : > { %p531_p4 = scmp.eq.s32.totalorder %s3046_s0, 1  ;;  %p3049_p7 = scmp.ge.s32.totalorder %s3969_s30, 1 }
  0x15   : > { %s4131_s24 = scalar_select %p512_p1, %s3965_s29, %s514_s1  }
  0x16   : > { %p4133_p5 = por %p525_p2, %p524_p0  ;;  %p4137_p6 = por %p531_p4, %p530_p3 }
  0x17   : > { %4876 = sst [smem:[#allocation8_spill]] %s4131_s24  ;;  %p623_p8 = scmp.lt.s32.totalorder %s3969_s30, 3 }
  0x18   : > { %s4878_s25 = scalar_select %p4137_p6, 1, 0 }
  0x19   : > { %p624_p9 = pnand %p3049_p7, %p623_p8 }
  0x1a   : > { %4879 = sst [smem:[#allocation9_spill]] %s4878_s25  ;;  %p687_p10 = scmp.lt.s32.totalorder (!%p624_p9), %s4116_s4, 1  ;;  %vm719_vm0 = vcmask (!%p624_p9), 523264   ;;  %vm723_vm1 = vcmask (!%p624_p9), 520192   ;;  %v765_v14 = vld [vmem:[%s4850_s19 + $0x8] sm:$0xff] (!%p624_p9)  ;;  %v767_v15 = vld [vmem:[%s4850_s19 + $0x18] sm:$0xff] (!%p624_p9)  ;;  %v698_v55 = vlaneseq (!%p624_p9) }
  0x1b   : > { %627 = sbr.rel (%p624_p9) target bundleno = 7037 (0x1b7d), region = 108  ;;  %s4880_s1 = sld [smem:[#allocation10_spill]] (!%p624_p9)  ;;  %v3538_v16 = vpack.c.bf16 (!%p624_p9), %v767_v15, %v765_v14  ;;  %v764_v17 = vld [vmem:[%s4850_s19] sm:$0xff] (!%p624_p9)  ;;  %v766_v18 = vld [vmem:[%s4850_s19 + $0x10] sm:$0xff] (!%p624_p9)  ;;  %v769_v20 = vld [vmem:[%s4850_s19 + $0x28] sm:$0xff] (!%p624_p9)  ;;  %v3971_v33 = vmov (!%p624_p9), 0.0  }
  0x1c   : > { %v3540_v19 = vpack.c.bf16 (!%p624_p9), %v766_v18, %v764_v17  ;;  %v771_v21 = vld [vmem:[%s4850_s19 + $0x38] sm:$0xff] (!%p624_p9)  ;;  %v768_v23 = vld [vmem:[%s4850_s19 + $0x20] sm:$0xff] (!%p624_p9)  ;;  %v770_v24 = vld [vmem:[%s4850_s19 + $0x30] sm:$0xff] (!%p624_p9)  ;;  %862 = vmatprep.mubr.f32.mxu0 (!%p624_p9), %v3971_v33  ;;  %v4221_v56 = vshrl.u32 (!%p624_p9), %v698_v55, 7  ;;  %vm889_vm2 = vcmask (!%p624_p9), 261120   ;;  %s3972_s3 = smov (!%p624_p9), 64  }
  0x1d   : > { %3539 = vmatprep.subr.bf16.mxu0 (!%p624_p9), %v3538_v16  ;;  %v3542_v22 = vpack.c.bf16 (!%p624_p9), %v771_v21, %v769_v20  ;;  %v3544_v25 = vpack.c.bf16 (!%p624_p9), %v770_v24, %v768_v23  ;;  %v773_v26 = vld [vmem:[%s4850_s19 + $0x48] sm:$0xff] (!%p624_p9)  ;;  %v775_v27 = vld [vmem:[%s4850_s19 + $0x58] sm:$0xff] (!%p624_p9)  ;;  %v772_v28 = vld [vmem:[%s4850_s19 + $0x40] sm:$0xff] (!%p624_p9)  ;;  %s4861_s25 = smov (!%p624_p9), 96   ;;  %vm1007_vm3 = vcmask (!%p624_p9), 1044480   ;;  %vm3974_vm5 = vmmov (!%p624_p9), 1  }
  0x1e   : > { %3541 = vmatpush1.bf16.msra.mxu0 (!%p624_p9), %v3540_v19  ;;  %v3546_v29 = vpack.c.bf16 (!%p624_p9), %v775_v27, %v773_v26  ;;  %v774_v30 = vld [vmem:[%s4850_s19 + $0x50] sm:$0xff] (!%p624_p9)  ;;  %v777_v31 = vld [vmem:[%s4850_s19 + $0x68] sm:$0xff] (!%p624_p9)  ;;  %v779_v32 = vld [vmem:[%s4850_s19 + $0x78] sm:$0xff] (!%p624_p9)  ;;  %v4224_v57 = vsub.s32 (!%p624_p9), 0, %v4221_v56  ;;  %v788_v60 = vsub.s32 (!%p624_p9), 1, %v4221_v56  ;;  %s4885_s0 = sld [smem:[#allocation11_spill]] (!%p624_p9) }
  0x1f   : > { %3543 = vmatprep.subr.bf16.mxu0 (!%p624_p9), %v3542_v22  ;;  %v3548_v34 = vpack.c.bf16 (!%p624_p9), %v774_v30, %v772_v28  ;;  %v3550_v35 = vpack.c.bf16 (!%p624_p9), %v779_v32, %v777_v31  ;;  %v776_v36 = vld [vmem:[%s4850_s19 + $0x60] sm:$0xff] (!%p624_p9)  ;;  %v778_v37 = vld [vmem:[%s4850_s19 + $0x70] sm:$0xff] (!%p624_p9)  ;;  %vm4247_vm4 = vmpackc.low (!%p624_p9), %vm889_vm2, %vm889_vm2  ;;  %v702_v19 = vand.u32 (!%p624_p9), 127, %v698_v55  ;;  %v700_v21 = vadd.s32 (!%p624_p9), 8, %v4221_v56  ;;  %s4886_s9 = sld [smem:[#allocation19_spill]] (!%p624_p9)  ;;  %s4887_s8 = sld [smem:[#allocation18_spill]] (!%p624_p9) }
  0x20   : > { %v3552_v38 = vpack.c.bf16 (!%p624_p9), %v778_v37, %v776_v36  ;;  %v3052_v46 = vld [vmem:[%s4844_s13] ss:$0 sm:$0xff] (!%p624_p9)  ;;  %vm4251_vm6 = vmpackc.low (!%p624_p9), %vm1007_vm3, %vm3974_vm5  ;;  %v3975_v23 = vmov (!%p624_p9), -1e+09   ;;  %vm977_vm9 = vcmask (!%p624_p9), 105472   ;;  %vm981_vm10 = vcmask (!%p624_p9), 102400  }
  0x21   : > { %v3053_v48 = vld [vmem:[%s4843_s12] ss:$0 sm:$0xff] (!%p624_p9)  ;;  %vm703_vm7 = vcmp.ge.s32.totalorder (!%p624_p9), %v4221_v56, %v702_v19  ;;  %vm704_vm8 = vcmp.ge.s32.totalorder (!%p624_p9), %v700_v21, %v702_v19  ;;  %s4890_s7 = sld [smem:[#allocation17_spill]] (!%p624_p9)  ;;  %vm3978_vm11 = vmmov (!%p624_p9), 0   ;;  %s4891_s23 = sld [smem:[#allocation16_spill]] (!%p624_p9)  ;;  %vm2873_vm12 = vcmask (!%p624_p9), 253952  }
  0x22   : > { %s4145_s26 = scalar_select %p687_p10, %s4116_s4, 1  ;;  %3545 = vmatpush1.bf16.msra.mxu0 %v3544_v25  ;;  %v780_v58 = vld [vmem:[%s4849_s18] sm:$0x3]  ;;  %v705_v24 = vsel %vm703_vm7, 0.0, %v3975_v23  ;;  %v706_v25 = vsel %vm704_vm8, 0.0, %v3975_v23 }
  0x23   : > { %3547 = vmatprep.subr.bf16.mxu0 %v3546_v29  ;;  %v785_v59 = vrot.slane %v780_v58, %v4224_v57  ;;  %v3104_v16 = vld [vmem:[%s4848_s17 + $0x40] sm:$0xff]  ;;  %s4894_s27 = sld [smem:[#allocation14_spill]] }
  0x24   : > { %s3173_s2 = sshll.u32 %s4145_s26, 4 }
  0x25   : > { %s691_s5 = scalar_lea.vmem %s4880_s1, %s3173_s2  ;;  %s694_s1 = scalar_lea.vmem %s4885_s0, %s4145_s26 }
  0x26   : > { %v4151_v0 = vld [vmem:[%s691_s5] sm:$0xff]  ;;  %v4153_v1 = vld [vmem:[%s691_s5 + $0x8] sm:$0x1f]  ;;  %3549 = vmatpush1.bf16.msra.mxu0 %v3548_v34  ;;  %s4860_s26 = smov 32   ;;  %s4889_s2 = smov 32  }
  0x27   : > { %v720_v2 = vsel %vm719_vm0, %v4151_v0, 0.0  ;;  %v724_v3 = vsel %vm723_vm1, %v4153_v1, 0.0  ;;  %3551 = vmatprep.subr.bf16.mxu0 %v3550_v35  ;;  %v697_v17 = vld [vmem:[%s694_s1] sm:$0x1]  ;;  %s685_s0 = sand.u32 1, %s3961_s28   ;;  %s4895_s5 = sld [smem:[#allocation12_spill]] }
  0x28   : > { %721 = vadd.xlane.f32.xlu0 %v720_v2  ;;  %v789_v2 = vrot.slane %v780_v58, %v788_v60  ;;  %v707_v18 = vsub.f32 1.0, %v697_v17 }
  0x2a   : > { %3553 = vmatpush1.bf16.msra.mxu0 %v3552_v38  ;;  %v708_v20 = vmul.f32 -1e+09, %v707_v18 }
  0x2c   : > { %725 = vadd.xlane.f32.xlu0 %v724_v3  ;;  %v713_v22 = vrot.slane %v708_v20, %v4224_v57 }
  0x2e   : > { %v4271_v27 = vadd.f32 %v713_v22, %v705_v24  ;;  %v4273_v31 = vadd.f32 %v713_v22, %v706_v25  ;;  %v879_v25 = vld [vmem:[%s4848_s17 + $0x20] sm:$0xff] }
  0xb5   : > { %v722_v4 = vpop.xlane.xlu0 %721 }
  0xb6   : > { %v728_v5 = vmul.f32 0.015625, %v722_v4 }
  0xb8   : > { %v730_v6 = vsub.f32 %v4151_v0, %v728_v5 }
  0xb9   : > { %v726_v7 = vpop.xlane.xlu0 %725 }
  0xba   : > { %v729_v8 = vmul.f32 0.015625, %v726_v7  ;;  %v732_v9 = vmul.f32 %v730_v6, %v730_v6 }
  0xbc   : > { %v731_v10 = vsub.f32 %v4153_v1, %v729_v8  ;;  %v734_v11 = vsel %vm719_vm0, %v732_v9, 0.0 }
  0xbd   : > { %735 = vadd.xlane.f32.xlu1 %v734_v11 }
  0xbe   : > { %v733_v12 = vmul.f32 %v731_v10, %v731_v10 }
  0xc0   : > { %v737_v13 = vsel %vm723_vm1, %v733_v12, 0.0 }
  0xc1   : > { %738 = vadd.xlane.f32.xlu1 %v737_v13 }
 0x14a   : > { %v736_v39 = vpop.xlane.xlu1 %735 }
 0x14b   : > { %v740_v40 = vmul.f32 0.015625, %v736_v39 }
 0x14d   : > { %v742_v41 = vadd.f32 1e-05, %v740_v40 }
 0x14e   : > { %v739_v42 = vpop.xlane.xlu1 %738 }
 0x14f   : > { %3845 = vrsqrt.f32 %v742_v41  ;;  %v741_v43 = vmul.f32 0.015625, %v739_v42 }
 0x151   : > { %v743_v44 = vadd.f32 1e-05, %v741_v43 }
 0x153   : > { %3847 = vrsqrt.f32 %v743_v44 }
 0x159   : > { %v3846_v45 = vpop.eup %3845 }
 0x15a   : > { %v746_v47 = vmul.f32 %v3846_v45, %v730_v6 }
 0x15c   : > { %v754_v49 = vmul.f32 %v3052_v46, %v746_v47 }
 0x15d   : > { %v3848_v50 = vpop.eup %3847 }
 0x15e   : > { %v762_v51 = vadd.f32 %v3053_v48, %v754_v49  ;;  %v747_v52 = vmul.f32 %v3848_v50, %v731_v10 }
 0x160   : > { %3054 = vmatmul.mubr.msk.f32.vlgmr.msra.gmra.mrb[0].mxu0 %vm719_vm0, %v762_v51  ;;  %v755_v53 = vmul.f32 %v3052_v46, %v747_v52 }
 0x161   : > { %868 = vmatprep.mubr.f32.mxu0 %v3971_v33 }
 0x162   : > { %v763_v54 = vadd.f32 %v3053_v48, %v755_v53 }
 0x164   : > { %3055 = vmatmul.mubr.msk.f32.gmra.mrb[2].mxu0 %vm719_vm0, %v763_v54 }
 0x233   : > { %v864_v61 = vpop.f32.mrb[0].mxu0 }
 0x234   : > { %v865_v62 = vadd.f32 %v864_v61, %v785_v59  ;;  %v866_v63 = vpop.f32.mrb[1].mxu0 }
 0x235   : > { %v4234_v6 = vadd.f32 %v866_v63, %v789_v2 }
 0x236   : > { %3304 = vmatprep.mubr.msk.f32.mxu1 %vm889_vm2, %v865_v62 }
 0x237   : > { %v870_v3 = vpop.f32.mrb[2].mxu0 }
 0x238   : > { %v871_v4 = vadd.f32 %v870_v3, %v785_v59  ;;  %v872_v5 = vpop.f32.mrb[3].mxu0 }
 0x239   : > { %v4236_v7 = vadd.f32 %v872_v5, %v789_v2 }
 0x23a   : > { %v3815_v8 = vpack.i.bf16 %v871_v4, %v865_v62 }
 0x23b   : > { %v3825_v9 = vpack.i.bf16 %v4236_v7, %v4234_v6  ;;  %v3560_v10 = vpack.c.bf16 %v4236_v7, %v4234_v6 }
 0x23c   : > { %3816 = vrot.lane.b32.xlu0 %v3815_v8, %s3972_s3 }
 0x240   : > { %1086 = vrot.lane.b32.xlu0 %v865_v62, %s4861_s25 }
 0x244   : > { %1088 = vrot.lane.b32.xlu0 %v871_v4, %s4861_s25 }
 0x2ae   : > { %v3817_v11 = vpop.permute.xlu0 %3816 }
 0x2af   : > { %v3819_v12 = vunpack.i.h.bf16 %v3817_v11  ;;  %v3818_v13 = vunpack.i.l.bf16 %v3817_v11 }
 0x2b1   : > { %v3554_v15 = vpack.c.bf16 %v3819_v12, %v3818_v13 }
 0x2b2   : > { %v1087_v59 = vpop.permute.xlu0 %1086 }
 0x2b3   : > { %3556 = vmatprep.subr.msk.bf16.mxu1 %vm4247_vm4, %v3554_v15 }
 0x2b4   : > { %3559 = vmatpush3.bf16.xpose.msk.msra.mxu1 %vm4247_vm4, %v3554_v15 }
 0x2b5   : > { %3562 = vmatprep.subr.msk.bf16.mxu1 %vm4251_vm6, %v3560_v10 }
 0x2b6   : > { %v1089_v61 = vpop.permute.xlu0 %1088 }
 0x2bb   : > { %3305 = vmatmul.mubr.msk.f32.vlgmr.msra.gmra.mrb[0].mxu1 %vm889_vm2, %v871_v4 }
 0x2bc   : > { %3565 = vmatpush3.bf16.msk.msra.mxu1 %vm4251_vm6, %v3560_v10 }
 0x38e   : > { %v3306_v26 = vpop.f32.mrb[0].mxu1 }
 0x38f   : > { %v964_v28 = vpop.f32.mrb[1].mxu1  ;;  %v974_v29 = vmul.f32 0.17677669, %v3306_v26  ;;  %v880_v26 = vld [vmem:[%s4848_s17 + $0x28] sm:$0xff] }
 0x390   : > { %v973_v30 = vmul.f32 0.17677669, %v964_v28  ;;  %v881_v28 = vld [vmem:[%s4848_s17 + $0x30] sm:$0xff] }
 0x391   : > { %v976_v35 = vadd.f32 %v974_v29, %v4273_v31  ;;  %v3578_v29 = vpack.c.bf16 %v880_v26, %v879_v25  ;;  %v1624_v25 = vld [vmem:[%s4842_s11 + $0x8] sm:$0xff] }
 0x392   : > { %v975_v32 = vadd.f32 %v973_v30, %v4271_v27  ;;  %v882_v30 = vld [vmem:[%s4848_s17 + $0x38] sm:$0xff] }
 0x393   : > { %v982_v36 = vsel %vm981_vm10, %v976_v35, -inf }
 0x394   : > { %v978_v34 = vsel %vm977_vm9, %v975_v32, -inf }
 0x395   : > { %979 = vmax.xlane.f32.xlu1 %v978_v34 }
 0x399   : > { %983 = vmax.xlane.f32.xlu1 %v982_v36 }
 0x422   : > { %v980_v37 = vpop.xlane.xlu1 %979 }
 0x423   : > { %v985_v38 = vsub.f32 %v975_v32, %v980_v37  ;;  %v3582_v32 = vpack.c.bf16 %v882_v30, %v881_v28 }
 0x425   : > { %v987_v41 = vmul.f32 1.442695, %v985_v38 }
 0x426   : > { %v984_v39 = vpop.xlane.xlu1 %983 }
 0x427   : > { %v986_v40 = vsub.f32 %v976_v35, %v984_v39 }
 0x429   : > { %v989_v42 = vmul.f32 1.442695, %v986_v40 }
 0x42b   : > { %3849 = vpow2.f32 %v989_v42  ;;  %v876_v42 = vld [vmem:[%s4848_s17 + $0x8] sm:$0xff] }
 0x42c   : > { %3851 = vpow2.f32 %v987_v41  ;;  %v875_v41 = vld [vmem:[%s4848_s17] sm:$0xff] }
 0x435   : > { %v3850_v43 = vpop.eup %3849 }
 0x436   : > { %v994_v44 = vsel %vm981_vm10, %v3850_v43, 0.0  ;;  %v3852_v45 = vpop.eup %3851 }
 0x437   : > { %995 = vadd.xlane.f32.xlu1 %v994_v44  ;;  %v991_v46 = vsel %vm977_vm9, %v3852_v45, 0.0  ;;  %v877_v44 = vld [vmem:[%s4848_s17 + $0x10] sm:$0xff] }
 0x43b   : > { %992 = vadd.xlane.f32.xlu1 %v991_v46 }
 0x44c   : > { %3821 = vrot.lane.b32.xlu1 %v3815_v8, %s4860_s26 }
 0x4c4   : > { %v996_v47 = vpop.xlane.xlu1 %995 }
 0x4c5   : > { %3853 = vrcp.f32 %v996_v47 }
 0x4c8   : > { %v993_v48 = vpop.xlane.xlu1 %992 }
 0x4c9   : > { %3855 = vrcp.f32 %v993_v48 }
 0x4cc   : > { %v3822_v49 = vpop.permute.xlu1 %3821 }
 0x4cd   : > { %v3824_v50 = vunpack.i.h.bf16 %v3822_v49  ;;  %v3823_v51 = vunpack.i.l.bf16 %v3822_v49  ;;  %v3074_v49 = vld [vmem:[%s4847_s16] ss:$0 sm:$0xff] }
 0x4cf   : > { %v3566_v52 = vpack.c.bf16 %v3824_v50, %v3823_v51  ;;  %v3854_v53 = vpop.eup %3853 }
 0x4d0   : > { %v1000_v58 = vmul.f32 %v3854_v53, %v3850_v43  ;;  %v3586_v43 = vpack.c.bf16 %v876_v42, %v875_v41 }
 0x4d1   : > { %3568 = vmatprep.subr.msk.bf16.mxu1 %vm4247_vm4, %v3566_v52 }
 0x4d3   : > { %v3856_v54 = vpop.eup %3855 }
 0x4d4   : > { %v999_v55 = vmul.f32 %v3856_v54, %v3852_v45  ;;  %v878_v45 = vld [vmem:[%s4848_s17 + $0x18] sm:$0xff] }
 0x4d5   : > { %v3590_v48 = vpack.c.bf16 %v878_v45, %v877_v44  ;;  %v1626_v44 = vld [vmem:[%s4842_s11 + $0x18] sm:$0xff] }
 0x4d6   : > { %3311 = vmatprep.mubr.msk.f32.mxu1 %vm977_vm9, %v999_v55 }
 0x4d7   : > { %3312 = vmatmul.mubr.msk.f32.vlgmr.msra.gmra.mrb[2].mxu1 %vm977_vm9, %v1000_v58 }
 0x4d8   : > { %3571 = vmatpush3.bf16.xpose.msk.msra.mxu1 %vm4247_vm4, %v3566_v52  ;;  %3318 = vmatprep.mubr.msk.f32.mxu1 %vm889_vm2, %v1087_v59 }
 0x4d9   : > { %3579 = vmatprep.subr.bf16.mxu1 %v3578_v29 }
 0x4df   : > { %3319 = vmatmul.mubr.msk.f32.vlgmr.msra.gmra.mrb[4].mxu1 %vm889_vm2, %v1089_v61 }
 0x4e0   : > { %3581 = vmatpush3.bf16.msra.mxu1 %v3578_v29 }
 0x4e1   : > { %3583 = vmatprep.subr.bf16.mxu1 %v3582_v32 }
 0x4e4   : > { %3585 = vmatpush3.bf16.msra.mxu1 %v3582_v32 }
 0x4e5   : > { %3587 = vmatprep.subr.bf16.mxu1 %v3586_v43 }
 0x5aa   : > { %v4290_v62 = vpop.f32.mrb[2].mxu1 }
 0x5ab   : > { %v4292_v63 = vpop.f32.mrb[3].mxu1 }
 0x5b2   : > { %v3320_v2 = vpop.f32.mrb[4].mxu1 }
 0x5b3   : > { %v1178_v3 = vmul.f32 0.17677669, %v3320_v2  ;;  %v1168_v4 = vpop.f32.mrb[5].mxu1 }
 0x5b4   : > { %v1177_v5 = vmul.f32 0.17677669, %v1168_v4 }
 0x5b5   : > { %v1180_v8 = vadd.f32 %v1178_v3, %v4273_v31 }
 0x5b6   : > { %v1179_v10 = vadd.f32 %v1177_v5, %v4271_v27 }
 0x5b7   : > { %v1184_v11 = vsel %vm981_vm10, %v1180_v8, -inf }
 0x5b8   : > { %1185 = vmax.xlane.f32.xlu1 %v1184_v11  ;;  %v1181_v12 = vsel %vm977_vm9, %v1179_v10, -inf  ;;  %v1510_v11 = vld [vmem:[%s4886_s9 + $0x8] sm:$0xff] }
 0x5b9   : > { %1182 = vmax.xlane.f32.xlu0 %v1181_v12 }
 0x645   : > { %v1186_v13 = vpop.xlane.xlu1 %1185 }
 0x646   : > { %v1188_v15 = vsub.f32 %v1180_v8, %v1186_v13  ;;  %v1183_v17 = vpop.xlane.xlu0 %1182  ;;  %v1511_v13 = vld [vmem:[%s4886_s9 + $0x10] sm:$0xff] }
 0x647   : > { %v1187_v18 = vsub.f32 %v1179_v10, %v1183_v17  ;;  %v1509_v10 = vld [vmem:[%s4886_s9] sm:$0xff] }
 0x648   : > { %v1191_v19 = vmul.f32 1.442695, %v1188_v15  ;;  %v3594_v12 = vpack.c.bf16 %v1510_v11, %v1509_v10  ;;  %v1512_v15 = vld [vmem:[%s4886_s9 + $0x18] sm:$0xff] }
 0x649   : > { %v1189_v20 = vmul.f32 1.442695, %v1187_v18  ;;  %v3598_v17 = vpack.c.bf16 %v1512_v15, %v1511_v13  ;;  %v1513_v18 = vld [vmem:[%s4886_s9 + $0x20] sm:$0xff] }
 0x64a   : > { %3857 = vpow2.f32 %v1191_v19  ;;  %v1514_v19 = vld [vmem:[%s4886_s9 + $0x28] sm:$0xff] }
 0x64b   : > { %3859 = vpow2.f32 %v1189_v20  ;;  %v3602_v20 = vpack.c.bf16 %v1514_v19, %v1513_v18 }
 0x654   : > { %v3858_v21 = vpop.eup %3857 }
 0x655   : > { %v1196_v22 = vsel %vm981_vm10, %v3858_v21, 0.0  ;;  %v3860_v23 = vpop.eup %3859 }
 0x656   : > { %1197 = vadd.xlane.f32.xlu0 %v1196_v22  ;;  %v1193_v24 = vsel %vm977_vm9, %v3860_v23, 0.0  ;;  %v1516_v22 = vld [vmem:[%s4886_s9 + $0x38] sm:$0xff] }
 0x65a   : > { %1194 = vadd.xlane.f32.xlu0 %v1193_v24  ;;  %v1623_v24 = vld [vmem:[%s4842_s11] sm:$0xff] }
 0x65b   : > { %v3610_v26 = vpack.c.bf16 %v1624_v25, %v1623_v24 }
 0x670   : > { %3826 = vrot.lane.b32.xlu0 %v3825_v9, %s4861_s25  ;;  %s4892_s25 = sld [smem:[#allocation13_spill]] }
 0x6e3   : > { %v1198_v6 = vpop.xlane.xlu0 %1197 }
 0x6e4   : > { %3861 = vrcp.f32 %v1198_v6 }
 0x6e7   : > { %v1195_v7 = vpop.xlane.xlu0 %1194 }
 0x6e8   : > { %3863 = vrcp.f32 %v1195_v7 }
 0x6eb   : > { %v3827_v9 = vpop.permute.xlu0 %3826 }
 0x6ec   : > { %v3829_v34 = vunpack.i.h.bf16 %v3827_v9  ;;  %v3828_v35 = vunpack.i.l.bf16 %v3827_v9 }
 0x6ee   : > { %v3572_v36 = vpack.c.bf16 %v3829_v34, %v3828_v35  ;;  %v3862_v37 = vpop.eup %3861  ;;  %v3075_v34 = vld [vmem:[%s4846_s15] ss:$0 sm:$0xff] }
 0x6ef   : > { %v1202_v40 = vmul.f32 %v3862_v37, %v3858_v21  ;;  %v1515_v21 = vld [vmem:[%s4886_s9 + $0x30] sm:$0xff] }
 0x6f0   : > { %3574 = vmatprep.subr.msk.bf16.mxu0 %vm4251_vm6, %v3572_v36 }
 0x6f1   : > { %3577 = vmatpush3.bf16.msk.msra.mxu0 %vm4251_vm6, %v3572_v36  ;;  %v3076_v36 = vld [vmem:[%s4845_s14] ss:$0 sm:$0xff] }
 0x6f2   : > { %v3864_v38 = vpop.eup %3863  ;;  %3595 = vmatprep.subr.bf16.mxu0 %v3594_v12 }
 0x6f3   : > { %v1201_v39 = vmul.f32 %v3864_v38, %v3860_v23  ;;  %v3606_v23 = vpack.c.bf16 %v1516_v22, %v1515_v21 }
 0x6f5   : > { %3325 = vmatprep.mubr.msk.f32.mxu0 %vm977_vm9, %v1201_v39 }
 0x6f6   : > { %3326 = vmatmul.mubr.msk.f32.vlgmr.msra.gmra.mrb[4].mxu0 %vm977_vm9, %v1202_v40 }
 0x6f7   : > { %3597 = vmatpush3.bf16.msra.mxu0 %v3594_v12 }
 0x6f8   : > { %3599 = vmatprep.subr.bf16.mxu0 %v3598_v17 }
 0x6fb   : > { %3601 = vmatpush3.bf16.msra.mxu0 %v3598_v17 }
 0x6fc   : > { %3603 = vmatprep.subr.bf16.mxu0 %v3602_v20 }
 0x6ff   : > { %3605 = vmatpush3.bf16.msra.mxu0 %v3602_v20 }
 0x700   : > { %3607 = vmatprep.subr.bf16.mxu0 %v3606_v23 }
 0x703   : > { %3609 = vmatpush3.bf16.msra.mxu0 %v3606_v23 }
 0x7c9   : > { %v3327_v46 = vpop.f32.mrb[4].mxu0 }
 0x7ca   : > { %v1283_v47 = vpop.f32.mrb[5].mxu0 }
 0x7cb   : > { %3336 = vmatprep.mubr.msk.f32.mxu1 %vm889_vm2, %v1283_v47  ;;  %v1628_v47 = vld [vmem:[%s4842_s11 + $0x28] sm:$0xff] }
 0x7cc   : > { %3337 = vmatmul.mubr.msk.f32.vlgmr.msra.gmra.mrb[6].mxu1 %vm889_vm2, %v3327_v46  ;;  %v1627_v46 = vld [vmem:[%s4842_s11 + $0x20] sm:$0xff] }
 0x7cd   : > { %3589 = vmatpush3.bf16.msra.mxu1 %v3586_v43  ;;  %3347 = vmatprep.mubr.msk.f32.mxu1 %vm889_vm2, %v4292_v63  ;;  %v1625_v43 = vld [vmem:[%s4842_s11 + $0x10] sm:$0xff] }
 0x7ce   : > { %3591 = vmatprep.subr.bf16.mxu1 %v3590_v48  ;;  %v3614_v45 = vpack.c.bf16 %v1626_v44, %v1625_v43 }
 0x7d1   : > { %3593 = vmatpush3.bf16.msra.mxu1 %v3590_v48  ;;  %v3618_v48 = vpack.c.bf16 %v1628_v47, %v1627_v46 }
 0x7d2   : > { %3611 = vmatprep.subr.bf16.mxu1 %v3610_v26 }
 0x7d4   : > { %3348 = vmatmul.mubr.msk.f32.vlgmr.msra.gmra.mrb[6].mxu1 %vm889_vm2, %v4290_v62 }
 0x7d5   : > { %3613 = vmatpush3.bf16.msra.mxu1 %v3610_v26 }
 0x7d6   : > { %3615 = vmatprep.subr.bf16.mxu1 %v3614_v45 }
 0x7d9   : > { %3617 = vmatpush3.bf16.msra.mxu1 %v3614_v45 }
 0x7da   : > { %3619 = vmatprep.subr.bf16.mxu1 %v3618_v48 }
 0x7dd   : > { %3621 = vmatpush3.bf16.msra.mxu1 %v3618_v48 }
 0x8a7   : > { %v3349_v50 = vpop.f32.mrb[6].mxu1 }
 0x8a8   : > { %v1445_v51 = vpop.f32.mrb[7].mxu1  ;;  %v1462_v52 = vadd.f32 %v3349_v50, %v3074_v49  ;;  %v1630_v50 = vld [vmem:[%s4842_s11 + $0x38] sm:$0xff] }
 0x8a9   : > { %v1461_v53 = vadd.f32 %v3074_v49, %v1445_v51  ;;  %v1629_v49 = vld [vmem:[%s4842_s11 + $0x30] sm:$0xff] }
 0x8aa   : > { %v4347_v55 = vadd.f32 %v1462_v52, %v4153_v1  ;;  %v3622_v51 = vpack.c.bf16 %v1630_v50, %v1629_v49  ;;  %v1631_v52 = vld [vmem:[%s4842_s11 + $0x40] sm:$0xff]  ;;  %v3086_v50 = vld [vmem:[%s4850_s19 + $0x88] sm:$0xff] }
 0x8ab   : > { %v4344_v54 = vadd.f32 %v1461_v53, %v4151_v0  ;;  %v1632_v53 = vld [vmem:[%s4842_s11 + $0x48] sm:$0xff] }
 0x8ac   : > { %v1470_v59 = vsel %vm723_vm1, %v4347_v55, 0.0  ;;  %3623 = vmatprep.subr.bf16.mxu1 %v3622_v51 }
 0x8ad   : > { %v1467_v58 = vsel %vm719_vm0, %v4344_v54, 0.0  ;;  %3625 = vmatpush3.bf16.msra.mxu1 %v3622_v51  ;;  %v3088_v51 = vld [vmem:[%s4850_s19 + $0x98] sm:$0xff] }
 0x8ae   : > { %1468 = vadd.xlane.f32.xlu1 %v1467_v58  ;;  %v1633_v58 = vld [vmem:[%s4842_s11 + $0x50] sm:$0xff] }
 0x8b2   : > { %1471 = vadd.xlane.f32.xlu1 %v1470_v59  ;;  %v3626_v59 = vpack.c.bf16 %v1632_v53, %v1631_v52  ;;  %v3642_v52 = vpack.c.bf16 %v3088_v51, %v3086_v50  ;;  %v3085_v53 = vld [vmem:[%s4850_s19 + $0x80] sm:$0xff] }
 0x8b4   : > { %3627 = vmatprep.subr.bf16.mxu1 %v3626_v59  ;;  %3643 = vmatprep.subr.bf16.mxu0 %v3642_v52 }
 0x8b5   : > { %3629 = vmatpush3.bf16.msra.mxu1 %v3626_v59 }
 0x93b   : > { %v1469_v61 = vpop.xlane.xlu1 %1468 }
 0x93c   : > { %v1473_v62 = vmul.f32 0.015625, %v1469_v61  ;;  %v1634_v61 = vld [vmem:[%s4842_s11 + $0x58] sm:$0xff] }
 0x93e   : > { %v1475_v63 = vsub.f32 %v4344_v54, %v1473_v62  ;;  %v3630_v62 = vpack.c.bf16 %v1634_v61, %v1633_v58  ;;  %v3087_v58 = vld [vmem:[%s4850_s19 + $0x90] sm:$0xff]  ;;  %v3090_v61 = vld [vmem:[%s4850_s19 + $0xa8] sm:$0xff] }
 0x93f   : > { %v1472_v2 = vpop.xlane.xlu1 %1471  ;;  %v3644_v59 = vpack.c.bf16 %v3087_v58, %v3085_v53 }
 0x940   : > { %v1474_v3 = vmul.f32 0.015625, %v1472_v2  ;;  %v1477_v4 = vmul.f32 %v1475_v63, %v1475_v63  ;;  %v1636_v2 = vld [vmem:[%s4842_s11 + $0x68] sm:$0xff]  ;;  %3631 = vmatprep.subr.bf16.mxu1 %v3630_v62 }
 0x941   : > { %3633 = vmatpush3.bf16.msra.mxu1 %v3630_v62  ;;  %v3092_v62 = vld [vmem:[%s4850_s19 + $0xb8] sm:$0xff] }
 0x942   : > { %v1476_v0 = vsub.f32 %v4347_v55, %v1474_v3  ;;  %v1479_v1 = vsel %vm719_vm0, %v1477_v4, 0.0  ;;  %v1637_v4 = vld [vmem:[%s4842_s11 + $0x70] sm:$0xff] }
 0x943   : > { %1480 = vadd.xlane.f32.xlu1 %v1479_v1 }
 0x944   : > { %v1478_v5 = vmul.f32 %v1476_v0, %v1476_v0 }
 0x946   : > { %v1482_v8 = vsel %vm723_vm1, %v1478_v5, 0.0  ;;  %v3077_v5 = vld [vmem:[%s4887_s8] ss:$0 sm:$0xff] }
 0x947   : > { %1483 = vadd.xlane.f32.xlu1 %v1482_v8 }
 0x9d0   : > { %v1481_v28 = vpop.xlane.xlu1 %1480 }
 0x9d1   : > { %v1485_v29 = vmul.f32 0.015625, %v1481_v28 }
 0x9d3   : > { %v1487_v30 = vadd.f32 1e-05, %v1485_v29 }
 0x9d4   : > { %v1484_v32 = vpop.xlane.xlu1 %1483 }
 0x9d5   : > { %3865 = vrsqrt.f32 %v1487_v30  ;;  %v1486_v6 = vmul.f32 0.015625, %v1484_v32 }
 0x9d7   : > { %v1488_v7 = vadd.f32 1e-05, %v1486_v6 }
 0x9d9   : > { %3867 = vrsqrt.f32 %v1488_v7 }
 0x9df   : > { %v3866_v9 = vpop.eup %3865 }
 0x9e0   : > { %v1491_v35 = vmul.f32 %v3866_v9, %v1475_v63  ;;  %v1635_v63 = vld [vmem:[%s4842_s11 + $0x60] sm:$0xff] }
 0x9e1   : > { %v3634_v3 = vpack.c.bf16 %v1636_v2, %v1635_v63  ;;  %v3080_v9 = vld [vmem:[%s4841_s10] ss:$0 sm:$0xff]  ;;  %v3646_v63 = vpack.c.bf16 %v3092_v62, %v3090_v61 }
 0x9e2   : > { %v1499_v37 = vmul.f32 %v3075_v34, %v1491_v35  ;;  %v3089_v2 = vld [vmem:[%s4850_s19 + $0xa0] sm:$0xff] }
 0x9e3   : > { %v3868_v38 = vpop.eup %3867  ;;  %3635 = vmatprep.subr.bf16.mxu1 %v3634_v3 }
 0x9e4   : > { %v1492_v39 = vmul.f32 %v3868_v38, %v1476_v0  ;;  %v1507_v40 = vadd.f32 %v3076_v36, %v1499_v37  ;;  %v1638_v0 = vld [vmem:[%s4842_s11 + $0x78] sm:$0xff]  ;;  %3637 = vmatpush3.bf16.msra.mxu1 %v3634_v3  ;;  %v3091_v3 = vld [vmem:[%s4850_s19 + $0xb0] sm:$0xff] }
 0x9e5   : > { %v3638_v1 = vpack.c.bf16 %v1638_v0, %v1637_v4  ;;  %v3648_v4 = vpack.c.bf16 %v3091_v3, %v3089_v2  ;;  %v3094_v0 = vld [vmem:[%s4850_s19 + $0xc8] sm:$0xff] }
 0x9e6   : > { %v1500_v41 = vmul.f32 %v3075_v34, %v1492_v39  ;;  %3366 = vmatprep.mubr.msk.f32.mxu0 %vm719_vm0, %v1507_v40 }
 0x9e7   : > { %3639 = vmatprep.subr.bf16.mxu1 %v3638_v1 }
 0x9e8   : > { %v1508_v42 = vadd.f32 %v3076_v36, %v1500_v41  ;;  %3641 = vmatpush3.bf16.msra.mxu1 %v3638_v1  ;;  %v3096_v1 = vld [vmem:[%s4850_s19 + $0xd8] sm:$0xff] }
 0x9ea   : > { %3367 = vmatmul.mubr.msk.f32.vlgmr.msra.gmra.mrb[6].mxu0 %vm719_vm0, %v1508_v42 }
 0x9eb   : > { %1869 = vmatprep.mubr.f32.mxu0 %v3971_v33  ;;  %3645 = vmatpush1.bf16.msra.mxu0 %v3644_v59 }
 0x9ec   : > { %3647 = vmatprep.subr.bf16.mxu0 %v3646_v63 }
 0x9ef   : > { %3649 = vmatpush1.bf16.msra.mxu0 %v3648_v4 }
 0xabd   : > { %v3368_v8 = vpop.f32.mrb[6].mxu0 }
 0xabe   : > { %v1602_v10 = vadd.f32 %v3368_v8, %v3077_v5  ;;  %v1596_v11 = vpop.f32.mrb[7].mxu0  ;;  %v3093_v8 = vld [vmem:[%s4850_s19 + $0xc0] sm:$0xff] }
 0xabf   : > { %v1597_v12 = vadd.f32 %v3077_v5, %v1596_v11  ;;  %v3650_v5 = vpack.c.bf16 %v3096_v1, %v3094_v0 }
 0xac0   : > { %v1608_v13 = vmul.f32 0.044715, %v1602_v10  ;;  %v1606_v32 = vmul.f32 0.5, %v1602_v10 }
 0xac1   : > { %v1607_v15 = vmul.f32 0.044715, %v1597_v12  ;;  %v1605_v29 = vmul.f32 0.5, %v1597_v12  ;;  %3651 = vmatprep.subr.bf16.mxu0 %v3650_v5 }
 0xac2   : > { %v1610_v17 = vmul.f32 %v1608_v13, %v1602_v10  ;;  %v3100_v13 = vld [vmem:[%s4850_s19 + $0xf8] sm:$0xff] }
 0xac3   : > { %v1609_v18 = vmul.f32 %v1607_v15, %v1597_v12 }
 0xac4   : > { %v1612_v19 = vmul.f32 %v1610_v17, %v1602_v10  ;;  %v3097_v17 = vld [vmem:[%s4850_s19 + $0xe0] sm:$0xff] }
 0xac5   : > { %v1611_v20 = vmul.f32 %v1609_v18, %v1597_v12  ;;  %v3099_v18 = vld [vmem:[%s4850_s19 + $0xf0] sm:$0xff] }
 0xac6   : > { %v1614_v21 = vadd.f32 %v1612_v19, %v1602_v10  ;;  %v3095_v10 = vld [vmem:[%s4850_s19 + $0xd0] sm:$0xff]  ;;  %v3656_v19 = vpack.c.bf16 %v3099_v18, %v3097_v17 }
 0xac7   : > { %v1613_v22 = vadd.f32 %v1611_v20, %v1597_v12  ;;  %v3652_v11 = vpack.c.bf16 %v3095_v10, %v3093_v8  ;;  %v3098_v12 = vld [vmem:[%s4850_s19 + $0xe8] sm:$0xff] }
 0xac8   : > { %v1616_v23 = vmul.f32 0.7978846, %v1614_v21  ;;  %v3654_v15 = vpack.c.bf16 %v3100_v13, %v3098_v12 }
 0xac9   : > { %v1615_v24 = vmul.f32 0.7978846, %v1613_v22  ;;  %3653 = vmatpush1.bf16.msra.mxu0 %v3652_v11 }
 0xaca   : > { %3869 = vtanh.f32 %v1616_v23  ;;  %3655 = vmatprep.subr.bf16.mxu0 %v3654_v15 }
 0xacb   : > { %3871 = vtanh.f32 %v1615_v24 }
 0xacd   : > { %3657 = vmatpush1.bf16.msra.mxu0 %v3656_v19 }
 0xad4   : > { %v3870_v25 = vpop.eup %3869 }
 0xad5   : > { %v3872_v26 = vpop.eup %3871  ;;  %v1620_v28 = vadd.f32 1.0, %v3870_v25 }
 0xad6   : > { %v1619_v30 = vadd.f32 1.0, %v3872_v26 }
 0xad7   : > { %v1622_v7 = vmul.f32 %v1620_v28, %v1606_v32  ;;  %v3083_v28 = vld [vmem:[%s4844_s13 + $0x1] ss:$0 sm:$0xff] }
 0xad8   : > { %v1621_v6 = vmul.f32 %v1619_v30, %v1605_v29  ;;  %v3084_v30 = vld [vmem:[%s4843_s12 + $0x1] ss:$0 sm:$0xff] }
 0xada   : > { %3401 = vmatprep.mubr.f32.mxu1 %v1621_v6 }
 0xadb   : > { %3402 = vmatmul.mubr.f32.vlgmr.msra.gmra.mrb[8].mxu1 %v1622_v7 }
 0xbae   : > { %v3403_v34 = vpop.f32.mrb[8].mxu1 }
 0xbaf   : > { %v1712_v35 = vpop.f32.mrb[9].mxu1  ;;  %v1718_v36 = vadd.f32 %v3403_v34, %v3080_v9 }
 0xbb0   : > { %v1713_v37 = vadd.f32 %v3080_v9, %v1712_v35 }
 0xbb1   : > { %v4448_v39 = vadd.f32 %v1718_v36, %v4347_v55  ;;  %v3101_v36 = vld [vmem:[%s4849_s18 + $0x2] sm:$0x3] }
 0xbb2   : > { %v4445_v38 = vadd.f32 %v1713_v37, %v4344_v54  ;;  %v1792_v37 = vrot.slane %v3101_v36, %v4224_v57 }
 0xbb3   : > { %v1730_v41 = vsel %vm723_vm1, %v4448_v39, 0.0 }
 0xbb4   : > { %v1727_v40 = vsel %vm719_vm0, %v4445_v38, 0.0 }
 0xbb5   : > { %1728 = vadd.xlane.f32.xlu1 %v1727_v40 }
 0xbb9   : > { %1731 = vadd.xlane.f32.xlu1 %v1730_v41 }
 0xc42   : > { %v1729_v42 = vpop.xlane.xlu1 %1728 }
 0xc43   : > { %v1733_v43 = vmul.f32 0.015625, %v1729_v42 }
 0xc45   : > { %v1735_v44 = vsub.f32 %v4445_v38, %v1733_v43  ;;  %v1796_v43 = vrot.slane %v3101_v36, %v788_v60 }
 0xc46   : > { %v1732_v45 = vpop.xlane.xlu1 %1731 }
 0xc47   : > { %v1734_v46 = vmul.f32 0.015625, %v1732_v45  ;;  %v1737_v47 = vmul.f32 %v1735_v44, %v1735_v44 }
 0xc49   : > { %v1736_v54 = vsub.f32 %v4448_v39, %v1734_v46  ;;  %v1739_v55 = vsel %vm719_vm0, %v1737_v47, 0.0 }
 0xc4a   : > { %1740 = vadd.xlane.f32.xlu0 %v1739_v55 }
 0xc4b   : > { %v1738_v48 = vmul.f32 %v1736_v54, %v1736_v54 }
 0xc4d   : > { %v1742_v49 = vsel %vm723_vm1, %v1738_v48, 0.0 }
 0xc4e   : > { %1743 = vadd.xlane.f32.xlu1 %v1742_v49 }
 0xcd7   : > { %v1741_v20 = vpop.xlane.xlu0 %1740 }
 0xcd8   : > { %v1745_v21 = vmul.f32 0.015625, %v1741_v20 }
 0xcda   : > { %v1747_v22 = vadd.f32 1e-05, %v1745_v21 }
 0xcdb   : > { %v1744_v23 = vpop.xlane.xlu1 %1743 }
 0xcdc   : > { %3873 = vrsqrt.f32 %v1747_v22  ;;  %v1746_v24 = vmul.f32 0.015625, %v1744_v23 }
 0xcde   : > { %v1748_v25 = vadd.f32 1e-05, %v1746_v24 }
 0xce0   : > { %3875 = vrsqrt.f32 %v1748_v25 }
 0xce6   : > { %v3874_v26 = vpop.eup %3873 }
 0xce7   : > { %v1751_v29 = vmul.f32 %v3874_v26, %v1735_v44 }
 0xce9   : > { %v1759_v32 = vmul.f32 %v3083_v28, %v1751_v29 }
 0xcea   : > { %v3876_v6 = vpop.eup %3875 }
 0xceb   : > { %v1767_v7 = vadd.f32 %v3084_v30, %v1759_v32  ;;  %v1752_v9 = vmul.f32 %v3876_v6, %v1736_v54 }
 0xced   : > { %3102 = vmatmul.mubr.msk.f32.vlgmr.msra.gmra.mrb[8].mxu0 %vm719_vm0, %v1767_v7  ;;  %v1760_v34 = vmul.f32 %v3083_v28, %v1752_v9 }
 0xcee   : > { %1875 = vmatprep.mubr.f32.mxu0 %v3971_v33 }
 0xcef   : > { %v1768_v35 = vadd.f32 %v3084_v30, %v1760_v34 }
 0xcf1   : > { %3103 = vmatmul.mubr.msk.f32.gmra.mrb[10].mxu0 %vm719_vm0, %v1768_v35 }
 0xdc0   : > { %v1871_v40 = vpop.f32.mrb[8].mxu0 }
 0xdc1   : > { %v1872_v41 = vadd.f32 %v1871_v40, %v1792_v37  ;;  %v1873_v42 = vpop.f32.mrb[9].mxu0 }
 0xdc2   : > { %v4522_v47 = vadd.f32 %v1873_v42, %v1796_v43 }
 0xdc3   : > { %3408 = vmatprep.mubr.msk.f32.mxu0 %vm889_vm2, %v1872_v41 }
 0xdc4   : > { %v1877_v44 = vpop.f32.mrb[10].mxu0 }
 0xdc5   : > { %v1878_v45 = vadd.f32 %v1877_v44, %v1792_v37  ;;  %v1879_v46 = vpop.f32.mrb[11].mxu0 }
 0xdc6   : > { %v4524_v54 = vadd.f32 %v1879_v46, %v1796_v43 }
 0xdc7   : > { %v3830_v55 = vpack.i.bf16 %v1878_v45, %v1872_v41 }
 0xdc8   : > { %v3840_v48 = vpack.i.bf16 %v4524_v54, %v4522_v47  ;;  %v3664_v57 = vpack.c.bf16 %v4524_v54, %v4522_v47  ;;  %v3110_v54 = vld [vmem:[%s4848_s17 + $0x70] sm:$0xff] }
 0xdc9   : > { %3831 = vrot.lane.b32.xlu1 %v3830_v55, %s3972_s3  ;;  %s4888_s3 = smov 96  }
 0xe3b   : > { %v3832_v56 = vpop.permute.xlu1 %3831 }
 0xe3c   : > { %v3834_v60 = vunpack.i.h.bf16 %v3832_v56  ;;  %v3833_v49 = vunpack.i.l.bf16 %v3832_v56  ;;  %v3108_v56 = vld [vmem:[%s4848_s17 + $0x60] sm:$0xff] }
 0xe3e   : > { %v3658_v50 = vpack.c.bf16 %v3834_v60, %v3833_v49  ;;  %v3109_v60 = vld [vmem:[%s4848_s17 + $0x68] sm:$0xff] }
 0xe40   : > { %3660 = vmatprep.subr.msk.bf16.mxu0 %vm4247_vm4, %v3658_v50 }
 0xe41   : > { %3663 = vmatpush3.bf16.xpose.msk.msra.mxu0 %vm4247_vm4, %v3658_v50 }
 0xe42   : > { %3666 = vmatprep.subr.msk.bf16.mxu0 %vm4251_vm6, %v3664_v57 }
 0xe48   : > { %3409 = vmatmul.mubr.msk.f32.vlgmr.msra.gmra.mrb[12].mxu0 %vm889_vm2, %v1878_v45 }
 0xe49   : > { %3669 = vmatpush3.bf16.msk.msra.mxu0 %vm4251_vm6, %v3664_v57 }
 0xf1b   : > { %v3410_v51 = vpop.f32.mrb[12].mxu0 }
 0xf1c   : > { %v1981_v52 = vmul.f32 0.17677669, %v3410_v51  ;;  %v1971_v53 = vpop.f32.mrb[13].mxu0 }
 0xf1d   : > { %v1980_v58 = vmul.f32 0.17677669, %v1971_v53 }
 0xf1e   : > { %v1983_v59 = vadd.f32 %v1981_v52, %v4273_v31  ;;  %v3682_v52 = vpack.c.bf16 %v3109_v60, %v3108_v56  ;;  %v3135_v60 = vld [vmem:[%s4845_s14 + $0x1] ss:$0 sm:$0xff] }
 0xf1f   : > { %v1982_v61 = vadd.f32 %v1980_v58, %v4271_v27 }
 0xf20   : > { %v1987_v62 = vsel %vm981_vm10, %v1983_v59, -inf }
 0xf21   : > { %1988 = vmax.xlane.f32.xlu0 %v1987_v62  ;;  %v1984_v63 = vsel %vm977_vm9, %v1982_v61, -inf  ;;  %v3105_v62 = vld [vmem:[%s4848_s17 + $0x48] sm:$0xff] }
 0xf22   : > { %1985 = vmax.xlane.f32.xlu1 %v1984_v63  ;;  %v3690_v63 = vpack.c.bf16 %v3105_v62, %v3104_v16  ;;  %v3154_v62 = vld [vmem:[%s4842_s11 + $0xb0] sm:$0xff] }
 0xf33   : > { %2090 = vrot.lane.b32.xlu1 %v1872_v41, %s4888_s3 }
 0xfae   : > { %v1989_v2 = vpop.xlane.xlu0 %1988 }
 0xfaf   : > { %v1991_v3 = vsub.f32 %v1983_v59, %v1989_v2  ;;  %v1986_v4 = vpop.xlane.xlu1 %1985  ;;  %v3106_v2 = vld [vmem:[%s4848_s17 + $0x50] sm:$0xff] }
 0xfb0   : > { %v1990_v0 = vsub.f32 %v1982_v61, %v1986_v4 }
 0xfb1   : > { %v1994_v1 = vmul.f32 1.442695, %v1991_v3  ;;  %v3107_v3 = vld [vmem:[%s4848_s17 + $0x58] sm:$0xff] }
 0xfb2   : > { %v1992_v5 = vmul.f32 1.442695, %v1990_v0 }
 0xfb3   : > { %3877 = vpow2.f32 %v1994_v1  ;;  %v2091_v25 = vpop.permute.xlu1 %2090  ;;  %v3694_v1 = vpack.c.bf16 %v3107_v3, %v3106_v2  ;;  %v3156_v3 = vld [vmem:[%s4842_s11 + $0xc0] sm:$0xff] }
 0xfb4   : > { %3879 = vpow2.f32 %v1992_v5  ;;  %v3131_v5 = vld [vmem:[%s4847_s16 + $0x1] ss:$0 sm:$0xff] }
 0xfbd   : > { %v3878_v8 = vpop.eup %3877 }
 0xfbe   : > { %v1999_v10 = vsel %vm981_vm10, %v3878_v8, 0.0  ;;  %v3880_v11 = vpop.eup %3879 }
 0xfbf   : > { %2000 = vadd.xlane.f32.xlu0 %v1999_v10  ;;  %v1996_v12 = vsel %vm977_vm9, %v3880_v11, 0.0 }
 0xfc3   : > { %1997 = vadd.xlane.f32.xlu0 %v1996_v12 }
 0xfd9   : > { %3836 = vrot.lane.b32.xlu0 %v3830_v55, %s4889_s2  ;;  %s2970_s2 = scalar_lea.sflag [#allocation3], %s685_s0 }
 0xfdd   : > { %2092 = vrot.lane.b32.xlu0 %v1878_v45, %s4888_s3 }
0x104c   : > { %v2001_v13 = vpop.xlane.xlu0 %2000 }
0x104d   : > { %3881 = vrcp.f32 %v2001_v13 }
0x1050   : > { %v1998_v15 = vpop.xlane.xlu0 %1997 }
0x1051   : > { %3883 = vrcp.f32 %v1998_v15 }
0x1054   : > { %v3837_v17 = vpop.permute.xlu0 %3836 }
0x1055   : > { %v3839_v18 = vunpack.i.h.bf16 %v3837_v17  ;;  %v3838_v19 = vunpack.i.l.bf16 %v3837_v17 }
0x1057   : > { %v3670_v20 = vpack.c.bf16 %v3839_v18, %v3838_v19  ;;  %v3882_v21 = vpop.eup %3881 }
0x1058   : > { %v2005_v24 = vmul.f32 %v3882_v21, %v3878_v8  ;;  %v2093_v26 = vpop.permute.xlu0 %2092 }
0x1059   : > { %3672 = vmatprep.subr.msk.bf16.mxu0 %vm4247_vm4, %v3670_v20 }
0x105b   : > { %v3884_v22 = vpop.eup %3883 }
0x105c   : > { %v2004_v23 = vmul.f32 %v3884_v22, %v3880_v11 }
0x105e   : > { %3415 = vmatprep.mubr.msk.f32.mxu0 %vm977_vm9, %v2004_v23 }
0x105f   : > { %3416 = vmatmul.mubr.msk.f32.vlgmr.msra.gmra.mrb[14].mxu0 %vm977_vm9, %v2005_v24 }
0x1060   : > { %3675 = vmatpush3.bf16.xpose.msk.msra.mxu0 %vm4247_vm4, %v3670_v20  ;;  %3422 = vmatprep.mubr.msk.f32.mxu0 %vm889_vm2, %v2091_v25 }
0x1067   : > { %3423 = vmatmul.mubr.msk.f32.vlgmr.msra.gmra.mrb[16].mxu0 %vm889_vm2, %v2093_v26 }
0x1132   : > { %v4557_v28 = vpop.f32.mrb[14].mxu0 }
0x1133   : > { %v4559_v29 = vpop.f32.mrb[15].mxu0 }
0x113a   : > { %v3424_v30 = vpop.f32.mrb[16].mxu0 }
0x113b   : > { %v2182_v32 = vmul.f32 0.17677669, %v3424_v30  ;;  %v2172_v6 = vpop.f32.mrb[17].mxu0 }
0x113c   : > { %v2181_v7 = vmul.f32 0.17677669, %v2172_v6  ;;  %v3139_v6 = vld [vmem:[%s4886_s9 + $0x58] sm:$0xff] }
0x113d   : > { %v2184_v9 = vadd.f32 %v2182_v32, %v4273_v31  ;;  %v3138_v32 = vld [vmem:[%s4886_s9 + $0x50] sm:$0xff] }
0x113e   : > { %v2183_v34 = vadd.f32 %v2181_v7, %v4271_v27  ;;  %v3702_v7 = vpack.c.bf16 %v3139_v6, %v3138_v32 }
0x113f   : > { %v2188_v14 = vsel %vm981_vm10, %v2184_v9, -inf }
0x1140   : > { %2189 = vmax.xlane.f32.xlu1 %v2188_v14  ;;  %v2185_v35 = vsel %vm977_vm9, %v2183_v34, -inf }
0x1141   : > { %2186 = vmax.xlane.f32.xlu0 %v2185_v35  ;;  %v3142_v35 = vld [vmem:[%s4886_s9 + $0x70] sm:$0xff] }
0x11cd   : > { %v2190_v36 = vpop.xlane.xlu1 %2189 }
0x11ce   : > { %v2192_v37 = vsub.f32 %v2184_v9, %v2190_v36  ;;  %v2187_v40 = vpop.xlane.xlu0 %2186  ;;  %v3140_v9 = vld [vmem:[%s4886_s9 + $0x60] sm:$0xff]  ;;  %v3143_v36 = vld [vmem:[%s4886_s9 + $0x78] sm:$0xff] }
0x11cf   : > { %v2191_v41 = vsub.f32 %v2183_v34, %v2187_v40  ;;  %v3141_v34 = vld [vmem:[%s4886_s9 + $0x68] sm:$0xff]  ;;  %v3148_v40 = vld [vmem:[%s4842_s11 + $0x80] sm:$0xff] }
0x11d0   : > { %v2195_v42 = vmul.f32 1.442695, %v2192_v37  ;;  %v3706_v14 = vpack.c.bf16 %v3141_v34, %v3140_v9  ;;  %v3710_v37 = vpack.c.bf16 %v3143_v36, %v3142_v35 }
0x11d1   : > { %v2193_v43 = vmul.f32 1.442695, %v2191_v41  ;;  %v3149_v41 = vld [vmem:[%s4842_s11 + $0x88] sm:$0xff] }
0x11d2   : > { %3885 = vpow2.f32 %v2195_v42  ;;  %v3714_v42 = vpack.c.bf16 %v3149_v41, %v3148_v40 }
0x11d3   : > { %3887 = vpow2.f32 %v2193_v43 }
0x11dc   : > { %v3886_v44 = vpop.eup %3885 }
0x11dd   : > { %v2200_v45 = vsel %vm981_vm10, %v3886_v44, 0.0  ;;  %v3888_v31 = vpop.eup %3887 }
0x11de   : > { %2201 = vadd.xlane.f32.xlu0 %v2200_v45  ;;  %v2197_v27 = vsel %vm977_vm9, %v3888_v31, 0.0 }
0x11e2   : > { %2198 = vadd.xlane.f32.xlu0 %v2197_v27 }
0x11f8   : > { %3841 = vrot.lane.b32.xlu0 %v3840_v48, %s4888_s3  ;;  %v3111_v48 = vld [vmem:[%s4848_s17 + $0x78] sm:$0xff]  ;;  %s4893_s3 = sld [smem:[#allocation15_spill]] }
0x11f9   : > { %v3686_v61 = vpack.c.bf16 %v3111_v48, %v3110_v54  ;;  %v3150_v48 = vld [vmem:[%s4842_s11 + $0x90] sm:$0xff] }
0x126b   : > { %v2202_v46 = vpop.xlane.xlu0 %2201 }
0x126c   : > { %3889 = vrcp.f32 %v2202_v46 }
0x126f   : > { %v2199_v55 = vpop.xlane.xlu0 %2198 }
0x1270   : > { %3891 = vrcp.f32 %v2199_v55 }
0x1273   : > { %v3842_v57 = vpop.permute.xlu0 %3841 }
0x1274   : > { %v3844_v49 = vunpack.i.h.bf16 %v3842_v57  ;;  %v3843_v50 = vunpack.i.l.bf16 %v3842_v57  ;;  %v3134_v57 = vld [vmem:[%s4846_s15 + $0x1] ss:$0 sm:$0xff] }
0x1276   : > { %v3676_v51 = vpack.c.bf16 %v3844_v49, %v3843_v50  ;;  %v3890_v47 = vpop.eup %3889 }
0x1277   : > { %v2206_v59 = vmul.f32 %v3890_v47, %v3886_v44 }
0x1278   : > { %3678 = vmatprep.subr.msk.bf16.mxu1 %vm4251_vm6, %v3676_v51 }
0x1279   : > { %3681 = vmatpush3.bf16.msk.msra.mxu1 %vm4251_vm6, %v3676_v51 }
0x127a   : > { %v3892_v53 = vpop.eup %3891  ;;  %3683 = vmatprep.subr.bf16.mxu1 %v3682_v52 }
0x127b   : > { %v2205_v58 = vmul.f32 %v3892_v53, %v3888_v31  ;;  %v3151_v53 = vld [vmem:[%s4842_s11 + $0x98] sm:$0xff] }
0x127d   : > { %3429 = vmatprep.mubr.msk.f32.mxu1 %vm977_vm9, %v2205_v58  ;;  %v3718_v58 = vpack.c.bf16 %v3151_v53, %v3150_v48  ;;  %v2790_v53 = vld [vmem:[%s4890_s7 + $0x8] sm:$0xff] }
0x127e   : > { %3430 = vmatmul.mubr.msk.f32.vlgmr.msra.gmra.mrb[10].mxu1 %vm977_vm9, %v2206_v59  ;;  %v3152_v59 = vld [vmem:[%s4842_s11 + $0xa0] sm:$0xff] }
0x127f   : > { %3685 = vmatpush3.bf16.msra.mxu1 %v3682_v52 }
0x1280   : > { %3687 = vmatprep.subr.bf16.mxu1 %v3686_v61 }
0x1283   : > { %3689 = vmatpush3.bf16.msra.mxu1 %v3686_v61  ;;  %v3153_v61 = vld [vmem:[%s4842_s11 + $0xa8] sm:$0xff] }
0x1284   : > { %3691 = vmatprep.subr.bf16.mxu1 %v3690_v63  ;;  %v3722_v16 = vpack.c.bf16 %v3153_v61, %v3152_v59  ;;  %v2791_v59 = vld [vmem:[%s4890_s7 + $0x10] sm:$0xff]  ;;  %v2792_v61 = vld [vmem:[%s4890_s7 + $0x18] sm:$0xff] }
0x1351   : > { %v3431_v4 = vpop.f32.mrb[10].mxu1 }
0x1352   : > { %v2287_v0 = vpop.f32.mrb[11].mxu1 }
0x1353   : > { %3440 = vmatprep.mubr.msk.f32.mxu1 %vm889_vm2, %v2287_v0  ;;  %v3158_v0 = vld [vmem:[%s4842_s11 + $0xd0] sm:$0xff] }
0x1354   : > { %3441 = vmatmul.mubr.msk.f32.vlgmr.msra.gmra.mrb[12].mxu1 %vm889_vm2, %v3431_v4  ;;  %v3157_v4 = vld [vmem:[%s4842_s11 + $0xc8] sm:$0xff] }
0x1355   : > { %3693 = vmatpush3.bf16.msra.mxu1 %v3690_v63  ;;  %3451 = vmatprep.mubr.msk.f32.mxu1 %vm889_vm2, %v4559_v29  ;;  %v3137_v29 = vld [vmem:[%s4886_s9 + $0x48] sm:$0xff]  ;;  %v3155_v63 = vld [vmem:[%s4842_s11 + $0xb8] sm:$0xff] }
0x1356   : > { %3695 = vmatprep.subr.bf16.mxu1 %v3694_v1  ;;  %v3726_v2 = vpack.c.bf16 %v3155_v63, %v3154_v62  ;;  %v3750_v62 = vpack.c.bf16 %v2792_v61, %v2791_v59  ;;  %v2793_v63 = vld [vmem:[%s4890_s7 + $0x20] sm:$0xff] }
0x1359   : > { %3697 = vmatpush3.bf16.msra.mxu1 %v3694_v1  ;;  %v3730_v1 = vpack.c.bf16 %v3157_v4, %v3156_v3  ;;  %v2795_v4 = vld [vmem:[%s4890_s7 + $0x30] sm:$0xff] }
0x135a   : > { %3715 = vmatprep.subr.bf16.mxu1 %v3714_v42 }
0x135c   : > { %3452 = vmatmul.mubr.msk.f32.vlgmr.msra.gmra.mrb[12].mxu1 %vm889_vm2, %v4557_v28  ;;  %v3136_v28 = vld [vmem:[%s4886_s9 + $0x40] sm:$0xff] }
0x135d   : > { %v3698_v30 = vpack.c.bf16 %v3137_v29, %v3136_v28  ;;  %3717 = vmatpush3.bf16.msra.mxu1 %v3714_v42  ;;  %v3165_v42 = vld [vmem:[%s4841_s10 + $0x1] ss:$0 sm:$0xff] }
0x135e   : > { %3719 = vmatprep.subr.bf16.mxu1 %v3718_v58 }
0x135f   : > { %3699 = vmatprep.subr.bf16.mxu0 %v3698_v30 }
0x1360   : > { %3701 = vmatpush3.bf16.msra.mxu0 %v3698_v30 }
0x1361   : > { %3703 = vmatprep.subr.bf16.mxu0 %v3702_v7  ;;  %3721 = vmatpush3.bf16.msra.mxu1 %v3718_v58 }
0x1362   : > { %3723 = vmatprep.subr.bf16.mxu1 %v3722_v16 }
0x1364   : > { %3705 = vmatpush3.bf16.msra.mxu0 %v3702_v7 }
0x1365   : > { %3707 = vmatprep.subr.bf16.mxu0 %v3706_v14  ;;  %3725 = vmatpush3.bf16.msra.mxu1 %v3722_v16  ;;  %v3977_v16 = vmov 0.0|0.0  }
0x1366   : > { %3727 = vmatprep.subr.bf16.mxu1 %v3726_v2 }
0x1368   : > { %3709 = vmatpush3.bf16.msra.mxu0 %v3706_v14 }
0x1369   : > { %3711 = vmatprep.subr.bf16.mxu0 %v3710_v37  ;;  %3729 = vmatpush3.bf16.msra.mxu1 %v3726_v2  ;;  %v2794_v2 = vld [vmem:[%s4890_s7 + $0x28] sm:$0xff] }
0x136a   : > { %3731 = vmatprep.subr.bf16.mxu1 %v3730_v1  ;;  %v3753_v3 = vpack.c.bf16 %v2794_v2, %v2793_v63 }
0x136c   : > { %3713 = vmatpush3.bf16.msra.mxu0 %v3710_v37 }
0x136d   : > { %3733 = vmatpush3.bf16.msra.mxu1 %v3730_v1  ;;  %3746 = vmatprep.subr.bf16.mxu0 %v3977_v16 }
0x142f   : > { %v3453_v8 = vpop.f32.mrb[12].mxu1 }
0x1430   : > { %v2449_v10 = vpop.f32.mrb[13].mxu1  ;;  %v2467_v11 = vadd.f32 %v3453_v8, %v3131_v5 }
0x1431   : > { %v2466_v12 = vadd.f32 %v3131_v5, %v2449_v10  ;;  %v3159_v5 = vld [vmem:[%s4842_s11 + $0xd8] sm:$0xff]  ;;  %v3160_v10 = vld [vmem:[%s4842_s11 + $0xe0] sm:$0xff] }
0x1432   : > { %v4614_v15 = vadd.f32 %v2467_v11, %v4448_v39  ;;  %v3734_v8 = vpack.c.bf16 %v3159_v5, %v3158_v0  ;;  %v3161_v11 = vld [vmem:[%s4842_s11 + $0xe8] sm:$0xff]  ;;  %v2796_v0 = vld [vmem:[%s4890_s7 + $0x38] sm:$0xff] }
0x1433   : > { %v4611_v13 = vadd.f32 %v2466_v12, %v4445_v38  ;;  %v3738_v12 = vpack.c.bf16 %v3161_v11, %v3160_v10  ;;  %v3756_v1 = vpack.c.bf16 %v2796_v0, %v2795_v4 }
0x1434   : > { %v2477_v18 = vsel %vm723_vm1, %v4614_v15, 0.0  ;;  %3735 = vmatprep.subr.bf16.mxu1 %v3734_v8 }
0x1435   : > { %v2474_v17 = vsel %vm719_vm0, %v4611_v13, 0.0  ;;  %3737 = vmatpush3.bf16.msra.mxu1 %v3734_v8 }
0x1436   : > { %2475 = vadd.xlane.f32.xlu1 %v2474_v17  ;;  %v3162_v17 = vld [vmem:[%s4842_s11 + $0xf0] sm:$0xff]  ;;  %3739 = vmatprep.subr.bf16.mxu1 %v3738_v12 }
0x1439   : > { %3741 = vmatpush3.bf16.msra.mxu1 %v3738_v12 }
0x143a   : > { %2478 = vadd.xlane.f32.xlu1 %v2477_v18  ;;  %v3163_v18 = vld [vmem:[%s4842_s11 + $0xf8] sm:$0xff] }
0x14c3   : > { %v2476_v19 = vpop.xlane.xlu1 %2475 }
0x14c4   : > { %v2480_v20 = vmul.f32 0.015625, %v2476_v19  ;;  %v3742_v19 = vpack.c.bf16 %v3163_v18, %v3162_v17 }
0x14c6   : > { %v2482_v21 = vsub.f32 %v4611_v13, %v2480_v20  ;;  %3743 = vmatprep.subr.bf16.mxu1 %v3742_v19  ;;  %v3145_v20 = vld [vmem:[%s4887_s8 + $0x1] ss:$0 sm:$0xff]  ;;  %s686_s8 = scalar_lea.vmem [#allocation2], %s685_s0 }
0x14c7   : > { %v2479_v22 = vpop.xlane.xlu1 %2478  ;;  %3745 = vmatpush3.bf16.msra.mxu1 %v3742_v19  ;;  %v3166_v19 = vld [vmem:[%s4852_s21] ss:$0 sm:$0xff]  ;;  %s2982_s9 = sshll.u32 %s686_s8, 4  ;;  %s4791_s9 = int_to_ptr.vmem [resolvable:$true] %s2982_s9 }
0x14c8   : > { %v2481_v23 = vmul.f32 0.015625, %v2479_v22  ;;  %v2484_v24 = vmul.f32 %v2482_v21, %v2482_v21  ;;  %s3907_s26 = scalar_lea.vmem %s4791_s9, 16 }
0x14c9   : > { %p3908_p11 = scmp.ne.s32.totalorder %s4791_s9, %s3907_s26 }
0x14ca   : > { %v2483_v38 = vsub.f32 %v4614_v15, %v2481_v23  ;;  %v2486_v39 = vsel %vm719_vm0, %v2484_v24, 0.0 }
0x14cb   : > { %2487 = vadd.xlane.f32.xlu1 %v2486_v39  ;;  %p3909_p12 = pnand %p3908_p11, %p4133_p5 }
0x14cc   : > { %v2485_v25 = vmul.f32 %v2483_v38, %v2483_v38 }
0x14cd   : > { %p3910_p13 = pneg %p3909_p12 }
0x14ce   : > { %v2489_v26 = vsel %vm723_vm1, %v2485_v25, 0.0 }
0x14cf   : > { %2490 = vadd.xlane.f32.xlu1 %v2489_v26 }
0x1558   : > { %v2488_v43 = vpop.xlane.xlu1 %2487 }
0x1559   : > { %v2492_v44 = vmul.f32 0.015625, %v2488_v43 }
0x155b   : > { %v2494_v45 = vadd.f32 1e-05, %v2492_v44 }
0x155c   : > { %v2491_v31 = vpop.xlane.xlu1 %2490 }
0x155d   : > { %3893 = vrsqrt.f32 %v2494_v45  ;;  %v2493_v27 = vmul.f32 0.015625, %v2491_v31 }
0x155f   : > { %v2495_v46 = vadd.f32 1e-05, %v2493_v27 }
0x1561   : > { %3895 = vrsqrt.f32 %v2495_v46 }
0x1567   : > { %v3894_v55 = vpop.eup %3893 }
0x1568   : > { %v2498_v56 = vmul.f32 %v3894_v55, %v2482_v21 }
0x156a   : > { %v2506_v49 = vmul.f32 %v3134_v57, %v2498_v56 }
0x156b   : > { %v3896_v50 = vpop.eup %3895 }
0x156c   : > { %v2499_v51 = vmul.f32 %v3896_v50, %v2483_v38  ;;  %v2514_v52 = vadd.f32 %v3135_v60, %v2506_v49 }
0x156e   : > { %v2507_v47 = vmul.f32 %v3134_v57, %v2499_v51  ;;  %3470 = vmatprep.mubr.msk.f32.mxu0 %vm719_vm0, %v2514_v52 }
0x1570   : > { %v2515_v54 = vadd.f32 %v3135_v60, %v2507_v47 }
0x1572   : > { %3471 = vmatmul.mubr.msk.f32.vlgmr.msra.gmra.mrb[18].mxu0 %vm719_vm0, %v2515_v54 }
0x1573   : > { %3524 = vmatprep.mubr.msk.f32.mxu0 %vm3978_vm11, %v3971_v33 }
0x1645   : > { %v3472_v21 = vpop.f32.mrb[18].mxu0 }
0x1646   : > { %v2611_v22 = vadd.f32 %v3472_v21, %v3145_v20  ;;  %v2605_v23 = vpop.f32.mrb[19].mxu0 }
0x1647   : > { %v2606_v24 = vadd.f32 %v3145_v20, %v2605_v23  ;;  %v3167_v23 = vld [vmem:[%s4851_s20] ss:$0 sm:$0xff] }
0x1648   : > { %v2617_v38 = vmul.f32 0.044715, %v2611_v22  ;;  %v2615_v37 = vmul.f32 0.5, %v2611_v22 }
0x1649   : > { %v2616_v39 = vmul.f32 0.044715, %v2606_v24  ;;  %v2614_v35 = vmul.f32 0.5, %v2606_v24 }
0x164a   : > { %v2619_v25 = vmul.f32 %v2617_v38, %v2611_v22 }
0x164b   : > { %v2618_v26 = vmul.f32 %v2616_v39, %v2606_v24 }
0x164c   : > { %v2621_v28 = vmul.f32 %v2619_v25, %v2611_v22 }
0x164d   : > { %v2620_v29 = vmul.f32 %v2618_v26, %v2606_v24 }
0x164e   : > { %v2623_v30 = vadd.f32 %v2621_v28, %v2611_v22 }
0x164f   : > { %v2622_v32 = vadd.f32 %v2620_v29, %v2606_v24 }
0x1650   : > { %v2625_v6 = vmul.f32 0.7978846, %v2623_v30 }
0x1651   : > { %v2624_v7 = vmul.f32 0.7978846, %v2622_v32 }
0x1652   : > { %3897 = vtanh.f32 %v2625_v6 }
0x1653   : > { %3899 = vtanh.f32 %v2624_v7 }
0x165c   : > { %v3898_v9 = vpop.eup %3897 }
0x165d   : > { %v3900_v34 = vpop.eup %3899  ;;  %v2629_v14 = vadd.f32 1.0, %v3898_v9 }
0x165e   : > { %v2628_v36 = vadd.f32 1.0, %v3900_v34 }
0x165f   : > { %v2631_v41 = vmul.f32 %v2629_v14, %v2615_v37 }
0x1660   : > { %v2630_v40 = vmul.f32 %v2628_v36, %v2614_v35  ;;  %v2797_v35 = vld [vmem:[%s4891_s23] sm:$0x1] }
0x1662   : > { %3505 = vmatprep.mubr.f32.mxu1 %v2630_v40 }
0x1663   : > { %3506 = vmatmul.mubr.f32.vlgmr.msra.gmra.mrb[14].mxu1 %v2631_v41 }
0x1736   : > { %v3507_v43 = vpop.f32.mrb[14].mxu1 }
0x1737   : > { %v2729_v44 = vadd.f32 %v3507_v43, %v3165_v42  ;;  %v2723_v45 = vpop.f32.mrb[15].mxu1 }
0x1738   : > { %v2724_v31 = vadd.f32 %v3165_v42, %v2723_v45 }
0x1739   : > { %v2733_v27 = vadd.f32 %v2729_v44, %v4614_v15 }
0x173a   : > { %v2732_v46 = vadd.f32 %v2724_v31, %v4611_v13  ;;  %v2789_v13 = vld [vmem:[%s4890_s7] sm:$0xff]  ;;  %s3170_s7 = sshll.u32 %s4116_s4, 4  ;;  %s3979_s4 = smov [#allocation2]  }
0x173b   : > { %v2739_v55 = vsel %vm723_vm1, %v2733_v27, 0.0  ;;  %v3747_v58 = vpack.c.bf16 %v2790_v53, %v2789_v13  ;;  %v2894_v13 = vld [vmem:[%s4895_s5] sm:$0x1] }
0x173c   : > { %2740 = vadd.xlane.f32.xlu0 %v2739_v55  ;;  %v2736_v57 = vsel %vm719_vm0, %v2732_v46, 0.0  ;;  %v2892_v55 = vld [vmem:[%s4892_s25 + $0x10] sm:$0xff] }
0x173d   : > { %2737 = vadd.xlane.f32.xlu1 %v2736_v57  ;;  %3748 = vmatpush3.bf16.msra.mxu0 %v3747_v58  ;;  %v2893_v57 = vld [vmem:[%s4892_s25 + $0x18] sm:$0xff] }
0x173e   : > { %3749 = vmatprep.subr.bf16.mxu0 %v3977_v16 }
0x1741   : > { %3751 = vmatpush3.bf16.msra.mxu0 %v3750_v62 }
0x1742   : > { %3752 = vmatprep.subr.bf16.mxu0 %v3977_v16 }
0x1745   : > { %3754 = vmatpush3.bf16.msra.mxu0 %v3753_v3 }
0x1746   : > { %3755 = vmatprep.subr.bf16.mxu0 %v3977_v16 }
0x1749   : > { %3757 = vmatpush3.bf16.msra.mxu0 %v3756_v1 }
0x174a   : > { %3758 = vmatprep.subr.bf16.mxu0 %v3977_v16 }
0x17c9   : > { %v2741_v56 = vpop.xlane.xlu0 %2740 }
0x17ca   : > { %v2743_v60 = vmul.f32 0.015625, %v2741_v56  ;;  %v2738_v49 = vpop.xlane.xlu1 %2737  ;;  %v3762_v56 = vpack.c.bf16 %v2893_v57, %v2892_v55 }
0x17cb   : > { %v2742_v50 = vmul.f32 0.015625, %v2738_v49 }
0x17cc   : > { %v2745_v51 = vsub.f32 %v2733_v27, %v2743_v60  ;;  %v2891_v27 = vld [vmem:[%s4892_s25 + $0x8] sm:$0xff] }
0x17cd   : > { %v2744_v52 = vsub.f32 %v2732_v46, %v2742_v50 }
0x17ce   : > { %v2747_v48 = vmul.f32 %v2745_v51, %v2745_v51 }
0x17cf   : > { %v2746_v47 = vmul.f32 %v2744_v52, %v2744_v52 }
0x17d0   : > { %v2751_v15 = vsel %vm723_vm1, %v2747_v48, 0.0 }
0x17d1   : > { %v2748_v54 = vsel %vm719_vm0, %v2746_v47, 0.0 }
0x17d2   : > { %2749 = vadd.xlane.f32.xlu1 %v2748_v54  ;;  %v2872_v54 = vld [vmem:[%s4894_s27] sm:$0x1]  ;;  %s3911_s27 = sshll.u32 %s3979_s4, 4  ;;  %s3912_s27 = int_to_ptr.vmem [resolvable:$false] %s3911_s27 }
0x17d3   : > { %s3913_s1 = scalar_lea.vmem %s3912_s27, 32  ;;  %p3914_p0 = scmp.lt.s32.totalorder %s4791_s9, %s3912_s27 }
0x17d4   : > { %p3915_p1 = scmp.lt.s32.totalorder %s3913_s1, %s3907_s26 }
0x17d6   : > { %2752 = vadd.xlane.f32.xlu1 %v2751_v15  ;;  %p3916_p2 = por %p3915_p1, %p3914_p0 }
0x17d8   : > { %p3917_p3 = pnand %p3916_p2, %p3910_p13 }
0x185f   : > { %v2750_v5 = vpop.xlane.xlu1 %2749 }
0x1860   : > { %v2754_v8 = vmul.f32 0.015625, %v2750_v5 }
0x1862   : > { %v2756_v10 = vadd.f32 1e-05, %v2754_v8 }
0x1863   : > { %v2753_v11 = vpop.xlane.xlu1 %2752 }
0x1864   : > { %3901 = vrsqrt.f32 %v2756_v10  ;;  %v2755_v12 = vmul.f32 0.015625, %v2753_v11 }
0x1866   : > { %v2757_v17 = vadd.f32 1e-05, %v2755_v12 }
0x1868   : > { %3903 = vrsqrt.f32 %v2757_v17 }
0x186e   : > { %v3902_v18 = vpop.eup %3901 }
0x186f   : > { %v2760_v20 = vmul.f32 %v3902_v18, %v2744_v52  ;;  %v2871_v52 = vld [vmem:[%s4893_s3] sm:$0x1]  ;;  %s4789_s3 = scalar_lea.hbm %s4853_s22, %s3170_s7 }
0x1871   : > { %v2768_v21 = vmul.f32 %v3166_v19, %v2760_v20 }
0x1872   : > { %v3904_v22 = vpop.eup %3903 }
0x1873   : > { %v2761_v24 = vmul.f32 %v3904_v22, %v2745_v51  ;;  %v2776_v38 = vadd.f32 %v3167_v23, %v2768_v21 }
0x1875   : > { %v2769_v39 = vmul.f32 %v3166_v19, %v2761_v24  ;;  %v2778_v26 = vsel %vm719_vm0, %v2776_v38, 0.0 }
0x1877   : > { %v2777_v25 = vadd.f32 %v3167_v23, %v2769_v39 }
0x1879   : > { %v2779_v28 = vsel %vm723_vm1, %v2777_v25, 0.0 }
0x187a   : > { %v2780_v29 = vadd.f32 %v2779_v28, %v2778_v26 }
0x187c   : > { %v2781_v30 = vrot.slane %v2780_v29, 4 }
0x187e   : > { %v2782_v32 = vadd.f32 %v2781_v30, %v2780_v29 }
0x1880   : > { %v2783_v6 = vrot.slane %v2782_v32, 2 }
0x1882   : > { %v2784_v7 = vadd.f32 %v2783_v6, %v2782_v32 }
0x1884   : > { %v2785_v9 = vrot.slane %v2784_v7, 1 }
0x1886   : > { %v2786_v34 = vadd.f32 %v2785_v9, %v2784_v7 }
0x1888   : > { %v2788_v14 = vmul.f32 0.07692308, %v2786_v34 }
0x188a   : > { %3525 = vmatmul.mubr.msk.f32.vlgmr.msra.gmra.mrb[20].mxu0 %vm719_vm0, %v2788_v14 }
0x188b   : > { %3535 = vmatprep.mubr.msk.f32.mxu0 %vm3978_vm11, %v3971_v33  ;;  %v2890_v33 = vld [vmem:[%s4892_s25] sm:$0xff] }
0x188c   : > { %v3759_v46 = vpack.c.bf16 %v2891_v27, %v2890_v33 }
0x188e   : > { %3760 = vmatpush3.bf16.msra.mxu0 %v3759_v46 }
0x188f   : > { %3761 = vmatprep.subr.bf16.mxu0 %v3977_v16 }
0x1892   : > { %3763 = vmatpush3.bf16.msra.mxu0 %v3762_v56 }
0x195d   : > { %v2867_v36 = vpop.f32.mrb[20].mxu0 }
0x195e   : > { %v2868_v37 = vadd.f32 %v2867_v36, %v2797_v35  ;;  %v3526_v40 = vpop.f32.mrb[21].mxu0 }
0x1960   : > { %v2874_v41 = vsel %vm2873_vm12, %v2868_v37, 0.0 }
0x1961   : > { %2875 = vadd.xlane.f32.xlu1 %v2874_v41 }
0x19ee   : > { %v2876_v42 = vpop.xlane.xlu1 %2875 }
0x19ef   : > { %v2878_v43 = vmul.f32 0.03125, %v2876_v42 }
0x19f1   : > { %v2879_v44 = vsub.f32 %v2868_v37, %v2878_v43 }
0x19f3   : > { %v2880_v45 = vmul.f32 %v2879_v44, %v2879_v44 }
0x19f5   : > { %v2881_v31 = vsel %vm2873_vm12, %v2880_v45, 0.0 }
0x19f6   : > { %2882 = vadd.xlane.f32.xlu1 %v2881_v31 }
0x1a83   : > { %v2883_v60 = vpop.xlane.xlu1 %2882 }
0x1a84   : > { %v2884_v49 = vmul.f32 0.03125, %v2883_v60 }
0x1a86   : > { %v2885_v50 = vadd.f32 1e-05, %v2884_v49 }
0x1a88   : > { %3905 = vrsqrt.f32 %v2885_v50 }
0x1a92   : > { %v3906_v51 = vpop.eup %3905 }
0x1a93   : > { %v2887_v47 = vmul.f32 %v3906_v51, %v2879_v44 }
0x1a95   : > { %v2888_v48 = vmul.f32 %v2887_v47, %v2871_v52 }
0x1a97   : > { %v2889_v15 = vadd.f32 %v2888_v48, %v2872_v54 }
0x1a99   : > { %3536 = vmatmul.mubr.msk.f32.vlgmr.msra.gmra.mrb[22].mxu0 %vm889_vm2, %v2889_v15 }
0x1b6c   : > { %v2964_v53 = vpop.f32.mrb[22].mxu0 }
0x1b6d   : > { %v2965_v58 = vadd.f32 %v2964_v53, %v2894_v13  ;;  %v3537_v59 = vpop.f32.mrb[23].mxu0 }
0x1b6f   : > { %2968 = vst [vmem:[%s686_s8] sm:$0x1] %v2965_v58 }
0x1b70   : > { %3920 = shalt.err (!%p3917_p3)
}
0x1b71   : > { %s3921_s7 = scalar_lea.hbm %s4789_s3, 16  ;;  %s3925_s24 = scalar_lea.hbm %s4853_s22, 32 }
0x1b72   : > { %p3922_p4 = scmp.ne.s32.totalorder %s4789_s3, %s3921_s7  ;;  %p3926_p9 = scmp.lt.u32.totalorder %s4789_s3, %s4853_s22 }
0x1b73   : > { %p3927_p10 = scmp.lt.u32.totalorder %s3925_s24, %s3921_s7  ;;  %p3929_p12 = scmp.lt.u32.totalorder %s3921_s7, %s4789_s3 }
0x1b74   : > { %p3923_p7 = pnand %p3922_p4, %p4133_p5 }
0x1b75   : > { %p3928_p11 = por %p3927_p10, %p3926_p9 }
0x1b76   : > { %p3924_p8 = pneg %p3923_p7 }
0x1b77   : > { %p3930_p13 = por %p3929_p12, %p3928_p11 }
0x1b79   : > { %p3931_p0 = pnand %p3930_p13, %p3924_p8 }
0x1b7b   : > { %3934 = shalt.err (!%p3931_p0)
}
0x1b7c   : > { %3768 = dma.vmem_to_hbm [thread:$0]  (%p4133_p5), %s4791_s9, 16, %s4789_s3, %s2970_s2  }
0x1b7d PF: > { %s4896_s23 = sld [smem:[#allocation5_spill]]  ;;  %p3774_p1 = scmp.ge.s32.totalorder %s3969_s30, 2 }
0x1b7f   : > { %p3771_p2 = pnand %p3774_p1, %p4137_p6 }
0x1b83   : > { %s2994_s4 = sand.u32 1, %s4896_s23  }
0x1b84   : > { %s2995_s27 = scalar_lea.sflag [#allocation3], %s2994_s4 }
0x1b85   : > { %3952 = dma.done.wait (!%p3771_p2), %s2995_s27, 16  }
0x1b86   : > { %3954 = vsyncadd (!%p3771_p2), %s2995_s27, 4294967280  ;;  %s4898_s30 = sld [smem:[#allocation7_spill]]  ;;  %s4899_s1 = sld [smem:[#allocation6_spill]] }
0x1b87   : > { %s4900_s29 = sld [smem:[#allocation8_spill]]  ;;  %s4901_s3 = smov %s3961_s28 }
0x1b8c   : > { %p32_p3 = scmp.ge.s32.totalorder %s4898_s30, 4   ;;  %s4902_s28 = smov %s4899_s1 }
0x1b8e   :  { %34 = sbr.rel (!%p32_p3) target bundleno = 14 (0xe), region = 158 }
0x1b95   :  { %2999 = vsyncpa [#allocation3], 1 }
0x1b96   :  { %3001 = vsyncpa [#allocation3 + $0x1], 1 }

</bundles_post_ra>
